<compile_context>
chip_gen: v5e
topology: v5e:2x2
jax: 0.10.0
libtpu: 0.0.40
codegen_flags: <defaults>
</compile_context>

<pallas_src>
import functools

import jax
import jax.numpy as jnp
from jax.experimental import pallas as pl
from jax.experimental.pallas import tpu as pltpu


# ----------------------------------------------------------------------------
# Fused kernel
# ----------------------------------------------------------------------------
def _policy_net_kernel(tile_ref, ent_ref, st_ref, h0_ref, c0_ref,
                       w1k_ref, b1s_ref, w2k_ref, b2s_ref,
                       we_ref, be_ref, wxt_ref, whx_ref, bl_ref,
                       hw_ref, hb_ref,
                       move_ref, style_ref, attack_ref, h1_ref, c1_ref,
                       *, out_move, out_attack, hidden):
    f32 = jnp.float32

    def sel_rows(n_out, n_in):
        # sel[o, r] = 1.0 iff r == 2*o  (even-row picker)
        o = jax.lax.broadcasted_iota(jnp.int32, (n_out, n_in), 0)
        r = jax.lax.broadcasted_iota(jnp.int32, (n_out, n_in), 1)
        return jnp.where(r == 2 * o, 1.0, 0.0).astype(f32)

    def sel_cols(n_in, n_out):
        # sel[j, k] = 1.0 iff j == 2*k  (even-column picker)
        j = jax.lax.broadcasted_iota(jnp.int32, (n_in, n_out), 0)
        k = jax.lax.broadcasted_iota(jnp.int32, (n_in, n_out), 1)
        return jnp.where(j == 2 * k, 1.0, 0.0).astype(f32)

    def maxpool2x2(a):
        # a: (R, W) with per-channel blocks stacked along rows; R, W even.
        r, w = a.shape
        b = jnp.maximum(a[0:r - 1, :], a[1:r, :])                       # (R-1, W)
        pr = jnp.dot(sel_rows(r // 2, r - 1), b,
                     preferred_element_type=f32)                        # (R/2, W)
        c = jnp.maximum(pr[:, 0:w - 1], pr[:, 1:w])                     # (R/2, W-1)
        return jnp.dot(c, sel_cols(w - 1, w // 2),
                       preferred_element_type=f32)                      # (R/2, W/2)

    def conv3x3(x_colpad, wk_ref, bias, width):
        # x_colpad: (rows, width+2)  column-zero-padded input (channel-stacked)
        # wk_ref  : (9, out_rows, rows)  kron-packed weights (row shift folded in)
        acc = None
        for t in range(9):
            dx = t % 3
            xs = x_colpad[:, dx:dx + width]
            term = jnp.dot(wk_ref[t], xs, preferred_element_type=f32)
            acc = term if acc is None else acc + term
        return jnp.maximum(acc + bias, 0.0)

    # ---- tile conv tower: layout (channels*rows stacked in sublanes, cols in lanes)
    x = tile_ref[...]                                                   # (12, 12)
    zc1 = jnp.zeros((12, 1), f32)
    a1 = conv3x3(jnp.concatenate([zc1, x, zc1], axis=1),
                 w1k_ref, b1s_ref[...], 12)                             # (96, 12)
    p1 = maxpool2x2(a1)                                                 # (48, 6)
    zc2 = jnp.zeros((48, 1), f32)
    a2 = conv3x3(jnp.concatenate([zc2, p1, zc2], axis=1),
                 w2k_ref, b2s_ref[...], 6)                              # (48, 6)
    p2 = maxpool2x2(a2)                                                 # (24, 3)

    # ---- entity FC
    ent = jnp.concatenate([ent_ref[...], st_ref[...]], axis=1)          # (1, 253)
    ent_out = jnp.maximum(
        jnp.dot(ent, we_ref[...], preferred_element_type=f32) + be_ref[...], 0.0)

    # ---- LSTM cell (seq len 1), gates packed as [i | f | g | o]
    # Tile contribution: wxt[j][r, :] holds Wx row (3*r + j), which is exactly
    # torch's NCHW flatten index of p2[r, j]; so no in-kernel flatten is needed.
    gates = bl_ref[...]                                                 # (1, 4H)
    for j in range(3):
        gates = gates + jnp.sum(p2[:, j:j + 1] * wxt_ref[j],
                                axis=0, keepdims=True)
    eh = jnp.concatenate([ent_out, h0_ref[...]], axis=1)                # (1, 32+H)
    gates = gates + jnp.dot(eh, whx_ref[...], preferred_element_type=f32)

    hs = hidden
    i_g = jax.nn.sigmoid(gates[:, 0:hs])
    f_g = jax.nn.sigmoid(gates[:, hs:2 * hs])
    g_g = jnp.tanh(gates[:, 2 * hs:3 * hs])
    o_g = jax.nn.sigmoid(gates[:, 3 * hs:4 * hs])
    c1 = f_g * c0_ref[...] + i_g * g_g
    h1 = o_g * jnp.tanh(c1)
    h1_ref[...] = h1
    c1_ref[...] = c1

    # ---- fused output heads + in-kernel argmax (first occurrence, like torch)
    logits = jnp.dot(h1, hw_ref[...], preferred_element_type=f32) + hb_ref[...]

    def argmax_lanes(v):
        n = v.shape[1]
        idx = jax.lax.broadcasted_iota(jnp.int32, v.shape, 1)
        m = jnp.max(v, axis=1, keepdims=True)
        cand = jnp.where(v == m, idx, n)
        return jnp.min(cand, axis=1, keepdims=True)                     # (1, 1) i32

    move_ref[...] = argmax_lanes(logits[:, 0:out_move])
    style_ref[...] = argmax_lanes(logits[:, out_move:out_move + 3])
    attack_ref[...] = argmax_lanes(logits[:, out_move + 3:out_move + 3 + out_attack])


# ----------------------------------------------------------------------------
# Parameter construction / packing (host-side, done once)
# ----------------------------------------------------------------------------
def init_torch_params(key, out_move, out_attack, hidden=16):
    """Deterministic synthetic params in the exact PyTorch layouts."""
    ks = jax.random.split(key, 16)

    def rnd(k, shape, scale=0.1):
        return scale * jax.random.normal(k, shape, dtype=jnp.float32)

    return {
        "conv1_w": rnd(ks[0], (8, 1, 3, 3)), "conv1_b": rnd(ks[1], (8,)),
        "conv2_w": rnd(ks[2], (8, 8, 3, 3)), "conv2_b": rnd(ks[3], (8,)),
        "ent_w": rnd(ks[4], (32, 25 * 10 + 3)), "ent_b": rnd(ks[5], (32,)),
        "w_ih": rnd(ks[6], (4 * hidden, 72 + 32)),   # gate order i, f, g, o
        "w_hh": rnd(ks[7], (4 * hidden, hidden)),
        "b_ih": rnd(ks[8], (4 * hidden,)), "b_hh": rnd(ks[9], (4 * hidden,)),
        "w_move": rnd(ks[10], (out_move, hidden)), "b_move": rnd(ks[11], (out_move,)),
        "w_style": rnd(ks[12], (3, hidden)), "b_style": rnd(ks[13], (3,)),
        "w_attack": rnd(ks[14], (out_attack, hidden)), "b_attack": rnd(ks[15], (out_attack,)),
    }


def _shift_matrix(n, d):
    # S[i, i'] = 1 iff i' == i + d  (row shift with implicit zero padding)
    i = jnp.arange(n)[:, None]
    ip = jnp.arange(n)[None, :]
    return (ip == i + d).astype(jnp.float32)


def pack_params(raw, hidden=16):
    """Repack torch-layout params into the kernel's fused / kron layouts."""
    w1, b1 = raw["conv1_w"], raw["conv1_b"]
    w2, b2 = raw["conv2_w"], raw["conv2_b"]
    # conv weights: fold the row (dy) shift into a kron with a shift matrix so the
    # kernel only needs 9 matmuls on the channel-stacked activation layout.
    w1k = jnp.stack([jnp.kron(w1[:, 0, dy, dx].reshape(8, 1), _shift_matrix(12, dy - 1))
                     for dy in range(3) for dx in range(3)])            # (9, 96, 12)
    w2k = jnp.stack([jnp.kron(w2[:, :, dy, dx], _shift_matrix(6, dy - 1))
                     for dy in range(3) for dx in range(3)])            # (9, 48, 48)
    b1s = jnp.repeat(b1, 12).reshape(96, 1)
    b2s = jnp.repeat(b2, 6).reshape(48, 1)

    wx = raw["w_ih"].T                                                  # (104, 4H)
    # tile part, regrouped so that wxt[j][r, :] == wx[3*r + j, :]  (torch flatten order)
    wxt = jnp.stack([wx[0:72][j::3, :] for j in range(3)])              # (3, 24, 4H)
    # entity + hidden parts packed into one operand for a single matmul
    whx = jnp.concatenate([wx[72:104, :], raw["w_hh"].T], axis=0)       # (32+H, 4H)
    bl = (raw["b_ih"] + raw["b_hh"]).reshape(1, -1)                     # (1, 4H)

    heads_w = jnp.concatenate(
        [raw["w_move"].T, raw["w_style"].T, raw["w_attack"].T], axis=1)  # (H, M+3+A)
    heads_b = jnp.concatenate(
        [raw["b_move"], raw["b_style"], raw["b_attack"]]).reshape(1, -1)

    return {
        "w1k": w1k, "b1s": b1s, "w2k": w2k, "b2s": b2s,
        "ent_w": raw["ent_w"].T, "ent_b": raw["ent_b"].reshape(1, -1),
        "wxt": wxt, "whx": whx, "lstm_b": bl,
        "heads_w": heads_w, "heads_b": heads_b,
    }


# ----------------------------------------------------------------------------
# Forward pass wrapper (one pallas_call for the whole network)
# ----------------------------------------------------------------------------
@functools.partial(jax.jit, static_argnames=("out_move", "out_attack", "hidden"))
def policy_net_forward(params, tile, entity, state, h0=None, c0=None, *,
                       out_move, out_attack, hidden=16):
    assert tile.shape == (1, 12, 12), "tile_conv_out_size=72 implies a 12x12 tile"
    if h0 is None:
        h0 = jnp.zeros((1, hidden), jnp.float32)
    if c0 is None:
        c0 = jnp.zeros((1, hidden), jnp.float32)
    x = tile[0].astype(jnp.float32)                     # (12, 12)
    ent = entity.reshape(1, -1).astype(jnp.float32)     # (1, 250)
    st = state.reshape(1, -1).astype(jnp.float32)       # (1, 3)

    kernel = functools.partial(_policy_net_kernel, out_move=out_move,
                               out_attack=out_attack, hidden=hidden)

    def vmem():
        return pl.BlockSpec(memory_space=pltpu.MemorySpace.VMEM)

    move, style, attack, h1, c1 = pl.pallas_call(
        kernel,
        out_shape=(
            jax.ShapeDtypeStruct((1, 1), jnp.int32),
            jax.ShapeDtypeStruct((1, 1), jnp.int32),
            jax.ShapeDtypeStruct((1, 1), jnp.int32),
            jax.ShapeDtypeStruct((1, hidden), jnp.float32),
            jax.ShapeDtypeStruct((1, hidden), jnp.float32),
        ),
        in_specs=[vmem() for _ in range(16)],
        out_specs=tuple(vmem() for _ in range(5)),
    )(x, ent, st, h0, c0,
      params["w1k"], params["b1s"], params["w2k"], params["b2s"],
      params["ent_w"], params["ent_b"],
      params["wxt"], params["whx"], params["lstm_b"],
      params["heads_w"], params["heads_b"])

    # TODO(synk): the torch module carries self.hidden across calls; the caller
    # can thread (h1, c1) back in as (h0, c0) to model that statefulness.
    return move[0, 0], style[0, 0], attack[0, 0], (h1, c1)


# ----------------------------------------------------------------------------
# Pure-JAX reference of the torch module (for correctness checking only)
# ----------------------------------------------------------------------------
def reference_forward(raw, tile, entity, state, hidden):
    x = tile[:, None, :, :].astype(jnp.float32)

    def conv(x, w, b):
        y = jax.lax.conv_general_dilated(
            x, w, window_strides=(1, 1), padding=((1, 1), (1, 1)),
            dimension_numbers=("NCHW", "OIHW", "NCHW"))
        return y + b[None, :, None, None]

    def pool(x):
        return jax.lax.reduce_window(x, -jnp.inf, jax.lax.max,
                                     (1, 1, 2, 2), (1, 1, 2, 2), "VALID")

    y = pool(jax.nn.relu(conv(x, raw["conv1_w"], raw["conv1_b"])))
    y = pool(jax.nn.relu(conv(y, raw["conv2_w"], raw["conv2_b"])))
    tile_out = y.reshape(1, -1)                                          # (1, 72)

    ent = jnp.concatenate([entity.reshape(1, -1), state.reshape(1, -1)], axis=-1)
    ent_out = jax.nn.relu(ent @ raw["ent_w"].T + raw["ent_b"][None, :])

    xx = jnp.concatenate([tile_out, ent_out], axis=1)
    h0 = jnp.zeros((1, hidden), jnp.float32)
    c0 = jnp.zeros((1, hidden), jnp.float32)
    gates = (xx @ raw["w_ih"].T + h0 @ raw["w_hh"].T
             + raw["b_ih"][None, :] + raw["b_hh"][None, :])
    i = jax.nn.sigmoid(gates[:, 0:hidden])
    f = jax.nn.sigmoid(gates[:, hidden:2 * hidden])
    g = jnp.tanh(gates[:, 2 * hidden:3 * hidden])
    o = jax.nn.sigmoid(gates[:, 3 * hidden:4 * hidden])
    c1 = f * c0 + i * g
    h1 = o * jnp.tanh(c1)
    move_logits = h1 @ raw["w_move"].T + raw["b_move"][None, :]
    style_logits = h1 @ raw["w_style"].T + raw["b_style"][None, :]
    attack_logits = h1 @ raw["w_attack"].T + raw["b_attack"][None, :]
    return move_logits, style_logits, attack_logits, h1, c1


if __name__ == "__main__":
    OUT_MOVE, OUT_ATTACK, HIDDEN = 9, 10, 16

    key = jax.random.PRNGKey(0)
    k_tile, k_ent, k_state, k_params = jax.random.split(key, 4)

    # tile 12x12 -> conv/pool/conv/pool -> 8*3*3 = 72 = tile_conv_out_size
    tile = jax.random.normal(k_tile, (1, 12, 12), dtype=jnp.float32)
    entity = jax.random.normal(k_ent, (1, 25, 10), dtype=jnp.float32)   # 25*10 = 250
    state = jax.random.normal(k_state, (1, 3), dtype=jnp.float32)       # +3 = 253

    raw = init_torch_params(k_params, OUT_MOVE, OUT_ATTACK, HIDDEN)
    params = pack_params(raw, hidden=HIDDEN)

    move, style, attack, (h1, c1) = policy_net_forward(
        params, tile, entity, state,
        out_move=OUT_MOVE, out_attack=OUT_ATTACK, hidden=HIDDEN)
    jax.block_until_ready((move, style, attack, h1, c1))

    # -- sanity check against the pure-JAX reference (tolerances cover MXU-vs-XLA
    #    f32 matmul differences so the check is robust but still catches real bugs)
    mv_l, st_l, at_l, r_h1, r_c1 = reference_forward(raw, tile, entity, state, HIDDEN)
    assert jnp.allclose(h1, r_h1, atol=2e-2, rtol=2e-2), "h1 mismatch"
    assert jnp.allclose(c1, r_c1, atol=2e-2, rtol=2e-2), "c1 mismatch"

    def near_best(logits_row, idx, tol=1e-2):
        lr = logits_row.reshape(-1)
        return bool(lr[idx] >= jnp.max(lr) - tol)

    assert near_best(mv_l, int(move)), "move argmax mismatch"
    assert near_best(st_l, int(style)), "style argmax mismatch"
    assert near_best(at_l, int(attack)), "attack argmax mismatch"

    print("KERNEL_OK")
</pallas_src>

<mosaic_0001>
module attributes {stable_mosaic.version = 11 : i64} {
  func.func @_policy_net_kernel(%arg0: memref<12x12xf32, #tpu.memory_space<vmem>>, %arg1: memref<1x250xf32, #tpu.memory_space<vmem>>, %arg2: memref<1x3xf32, #tpu.memory_space<vmem>>, %arg3: memref<1x16xf32, #tpu.memory_space<vmem>>, %arg4: memref<1x16xf32, #tpu.memory_space<vmem>>, %arg5: memref<9x96x12xf32, #tpu.memory_space<vmem>>, %arg6: memref<96x1xf32, #tpu.memory_space<vmem>>, %arg7: memref<9x48x48xf32, #tpu.memory_space<vmem>>, %arg8: memref<48x1xf32, #tpu.memory_space<vmem>>, %arg9: memref<253x32xf32, #tpu.memory_space<vmem>>, %arg10: memref<1x32xf32, #tpu.memory_space<vmem>>, %arg11: memref<3x24x64xf32, #tpu.memory_space<vmem>>, %arg12: memref<48x64xf32, #tpu.memory_space<vmem>>, %arg13: memref<1x64xf32, #tpu.memory_space<vmem>>, %arg14: memref<16x22xf32, #tpu.memory_space<vmem>>, %arg15: memref<1x22xf32, #tpu.memory_space<vmem>>, %arg16: memref<1x1xi32, #tpu.memory_space<vmem>>, %arg17: memref<1x1xi32, #tpu.memory_space<vmem>>, %arg18: memref<1x1xi32, #tpu.memory_space<vmem>>, %arg19: memref<1x16xf32, #tpu.memory_space<vmem>>, %arg20: memref<1x16xf32, #tpu.memory_space<vmem>>) attributes {dimension_semantics = [], scalar_prefetch = 0 : i64, scratch_operands = 0 : i64, tpu.core_type = #tpu.core_type<tc>} {
    %c0 = arith.constant 0 : index
    %c0_0 = arith.constant 0 : index
    %0 = vector.load %arg0[%c0, %c0_0] : memref<12x12xf32, #tpu.memory_space<vmem>>, vector<12x12xf32>
    %cst = arith.constant 0.000000e+00 : f32
    %1 = vector.broadcast %cst : f32 to vector<12x1xf32>
    %2 = tpu.concatenate %1, %0, %1 in 1 : vector<12x1xf32>, vector<12x12xf32>, vector<12x1xf32> -> vector<12x14xf32>
    %c0_1 = arith.constant 0 : index
    %c0_2 = arith.constant 0 : index
    %3 = vector.load %arg6[%c0_1, %c0_2] : memref<96x1xf32, #tpu.memory_space<vmem>>, vector<96x1xf32>
    %4 = vector.extract_strided_slice %2 {offsets = [0, 0], sizes = [12, 12], strides = [1, 1]} : vector<12x14xf32> to vector<12x12xf32>
    %c0_3 = arith.constant 0 : index
    %c0_4 = arith.constant 0 : index
    %c0_5 = arith.constant 0 : index
    %5 = vector.load %arg5[%c0_3, %c0_4, %c0_5] : memref<9x96x12xf32, #tpu.memory_space<vmem>>, vector<1x96x12xf32>
    %6 = vector.shape_cast %5 : vector<1x96x12xf32> to vector<96x12xf32>
    %cst_6 = arith.constant dense<0.000000e+00> : vector<96x12xf32>
    %7 = tpu.matmul %6, %4, %cst_6 {dimension_numbers = #tpu.dot_dimension_numbers<[1], [0], [0], [1], [0, 0, 1, 1], [], []>} : vector<96x12xf32>, vector<12x12xf32>, vector<96x12xf32> -> vector<96x12xf32>
    %8 = vector.extract_strided_slice %2 {offsets = [0, 1], sizes = [12, 12], strides = [1, 1]} : vector<12x14xf32> to vector<12x12xf32>
    %c1 = arith.constant 1 : index
    %c0_7 = arith.constant 0 : index
    %c0_8 = arith.constant 0 : index
    %9 = vector.load %arg5[%c1, %c0_7, %c0_8] : memref<9x96x12xf32, #tpu.memory_space<vmem>>, vector<1x96x12xf32>
    %10 = vector.shape_cast %9 : vector<1x96x12xf32> to vector<96x12xf32>
    %cst_9 = arith.constant dense<0.000000e+00> : vector<96x12xf32>
    %11 = tpu.matmul %10, %8, %cst_9 {dimension_numbers = #tpu.dot_dimension_numbers<[1], [0], [0], [1], [0, 0, 1, 1], [], []>} : vector<96x12xf32>, vector<12x12xf32>, vector<96x12xf32> -> vector<96x12xf32>
    %12 = arith.addf %7, %11 : vector<96x12xf32>
    %13 = vector.extract_strided_slice %2 {offsets = [0, 2], sizes = [12, 12], strides = [1, 1]} : vector<12x14xf32> to vector<12x12xf32>
    %c2 = arith.constant 2 : index
    %c0_10 = arith.constant 0 : index
    %c0_11 = arith.constant 0 : index
    %14 = vector.load %arg5[%c2, %c0_10, %c0_11] : memref<9x96x12xf32, #tpu.memory_space<vmem>>, vector<1x96x12xf32>
    %15 = vector.shape_cast %14 : vector<1x96x12xf32> to vector<96x12xf32>
    %cst_12 = arith.constant dense<0.000000e+00> : vector<96x12xf32>
    %16 = tpu.matmul %15, %13, %cst_12 {dimension_numbers = #tpu.dot_dimension_numbers<[1], [0], [0], [1], [0, 0, 1, 1], [], []>} : vector<96x12xf32>, vector<12x12xf32>, vector<96x12xf32> -> vector<96x12xf32>
    %17 = arith.addf %12, %16 : vector<96x12xf32>
    %18 = vector.extract_strided_slice %2 {offsets = [0, 0], sizes = [12, 12], strides = [1, 1]} : vector<12x14xf32> to vector<12x12xf32>
    %c3 = arith.constant 3 : index
    %c0_13 = arith.constant 0 : index
    %c0_14 = arith.constant 0 : index
    %19 = vector.load %arg5[%c3, %c0_13, %c0_14] : memref<9x96x12xf32, #tpu.memory_space<vmem>>, vector<1x96x12xf32>
    %20 = vector.shape_cast %19 : vector<1x96x12xf32> to vector<96x12xf32>
    %cst_15 = arith.constant dense<0.000000e+00> : vector<96x12xf32>
    %21 = tpu.matmul %20, %18, %cst_15 {dimension_numbers = #tpu.dot_dimension_numbers<[1], [0], [0], [1], [0, 0, 1, 1], [], []>} : vector<96x12xf32>, vector<12x12xf32>, vector<96x12xf32> -> vector<96x12xf32>
    %22 = arith.addf %17, %21 : vector<96x12xf32>
    %23 = vector.extract_strided_slice %2 {offsets = [0, 1], sizes = [12, 12], strides = [1, 1]} : vector<12x14xf32> to vector<12x12xf32>
    %c4 = arith.constant 4 : index
    %c0_16 = arith.constant 0 : index
    %c0_17 = arith.constant 0 : index
    %24 = vector.load %arg5[%c4, %c0_16, %c0_17] : memref<9x96x12xf32, #tpu.memory_space<vmem>>, vector<1x96x12xf32>
    %25 = vector.shape_cast %24 : vector<1x96x12xf32> to vector<96x12xf32>
    %cst_18 = arith.constant dense<0.000000e+00> : vector<96x12xf32>
    %26 = tpu.matmul %25, %23, %cst_18 {dimension_numbers = #tpu.dot_dimension_numbers<[1], [0], [0], [1], [0, 0, 1, 1], [], []>} : vector<96x12xf32>, vector<12x12xf32>, vector<96x12xf32> -> vector<96x12xf32>
    %27 = arith.addf %22, %26 : vector<96x12xf32>
    %28 = vector.extract_strided_slice %2 {offsets = [0, 2], sizes = [12, 12], strides = [1, 1]} : vector<12x14xf32> to vector<12x12xf32>
    %c5 = arith.constant 5 : index
    %c0_19 = arith.constant 0 : index
    %c0_20 = arith.constant 0 : index
    %29 = vector.load %arg5[%c5, %c0_19, %c0_20] : memref<9x96x12xf32, #tpu.memory_space<vmem>>, vector<1x96x12xf32>
    %30 = vector.shape_cast %29 : vector<1x96x12xf32> to vector<96x12xf32>
    %cst_21 = arith.constant dense<0.000000e+00> : vector<96x12xf32>
    %31 = tpu.matmul %30, %28, %cst_21 {dimension_numbers = #tpu.dot_dimension_numbers<[1], [0], [0], [1], [0, 0, 1, 1], [], []>} : vector<96x12xf32>, vector<12x12xf32>, vector<96x12xf32> -> vector<96x12xf32>
    %32 = arith.addf %27, %31 : vector<96x12xf32>
    %33 = vector.extract_strided_slice %2 {offsets = [0, 0], sizes = [12, 12], strides = [1, 1]} : vector<12x14xf32> to vector<12x12xf32>
    %c6 = arith.constant 6 : index
    %c0_22 = arith.constant 0 : index
    %c0_23 = arith.constant 0 : index
    %34 = vector.load %arg5[%c6, %c0_22, %c0_23] : memref<9x96x12xf32, #tpu.memory_space<vmem>>, vector<1x96x12xf32>
    %35 = vector.shape_cast %34 : vector<1x96x12xf32> to vector<96x12xf32>
    %cst_24 = arith.constant dense<0.000000e+00> : vector<96x12xf32>
    %36 = tpu.matmul %35, %33, %cst_24 {dimension_numbers = #tpu.dot_dimension_numbers<[1], [0], [0], [1], [0, 0, 1, 1], [], []>} : vector<96x12xf32>, vector<12x12xf32>, vector<96x12xf32> -> vector<96x12xf32>
    %37 = arith.addf %32, %36 : vector<96x12xf32>
    %38 = vector.extract_strided_slice %2 {offsets = [0, 1], sizes = [12, 12], strides = [1, 1]} : vector<12x14xf32> to vector<12x12xf32>
    %c7 = arith.constant 7 : index
    %c0_25 = arith.constant 0 : index
    %c0_26 = arith.constant 0 : index
    %39 = vector.load %arg5[%c7, %c0_25, %c0_26] : memref<9x96x12xf32, #tpu.memory_space<vmem>>, vector<1x96x12xf32>
    %40 = vector.shape_cast %39 : vector<1x96x12xf32> to vector<96x12xf32>
    %cst_27 = arith.constant dense<0.000000e+00> : vector<96x12xf32>
    %41 = tpu.matmul %40, %38, %cst_27 {dimension_numbers = #tpu.dot_dimension_numbers<[1], [0], [0], [1], [0, 0, 1, 1], [], []>} : vector<96x12xf32>, vector<12x12xf32>, vector<96x12xf32> -> vector<96x12xf32>
    %42 = arith.addf %37, %41 : vector<96x12xf32>
    %43 = vector.extract_strided_slice %2 {offsets = [0, 2], sizes = [12, 12], strides = [1, 1]} : vector<12x14xf32> to vector<12x12xf32>
    %c8 = arith.constant 8 : index
    %c0_28 = arith.constant 0 : index
    %c0_29 = arith.constant 0 : index
    %44 = vector.load %arg5[%c8, %c0_28, %c0_29] : memref<9x96x12xf32, #tpu.memory_space<vmem>>, vector<1x96x12xf32>
    %45 = vector.shape_cast %44 : vector<1x96x12xf32> to vector<96x12xf32>
    %cst_30 = arith.constant dense<0.000000e+00> : vector<96x12xf32>
    %46 = tpu.matmul %45, %43, %cst_30 {dimension_numbers = #tpu.dot_dimension_numbers<[1], [0], [0], [1], [0, 0, 1, 1], [], []>} : vector<96x12xf32>, vector<12x12xf32>, vector<96x12xf32> -> vector<96x12xf32>
    %47 = arith.addf %42, %46 : vector<96x12xf32>
    %48 = vector.broadcast %3 : vector<96x1xf32> to vector<96x12xf32>
    %49 = arith.addf %47, %48 : vector<96x12xf32>
    %cst_31 = arith.constant 0.000000e+00 : f32
    %50 = vector.broadcast %cst_31 : f32 to vector<96x12xf32>
    %51 = arith.maximumf %49, %50 : vector<96x12xf32>
    %52 = vector.extract_strided_slice %51 {offsets = [0, 0], sizes = [95, 12], strides = [1, 1]} : vector<96x12xf32> to vector<95x12xf32>
    %53 = vector.extract_strided_slice %51 {offsets = [1, 0], sizes = [95, 12], strides = [1, 1]} : vector<96x12xf32> to vector<95x12xf32>
    %54 = arith.maximumf %52, %53 : vector<95x12xf32>
    %55 = tpu.iota {dimensions = array<i32: 0>} : vector<48x95xi32>
    %56 = tpu.iota {dimensions = array<i32: 1>} : vector<48x95xi32>
    %c2_i32 = arith.constant 2 : i32
    %57 = vector.broadcast %c2_i32 : i32 to vector<48x95xi32>
    %58 = arith.muli %57, %55 : vector<48x95xi32>
    %59 = arith.cmpi eq, %56, %58 : vector<48x95xi32>
    %cst_32 = arith.constant 1.000000e+00 : f32
    %cst_33 = arith.constant 0.000000e+00 : f32
    %60 = vector.broadcast %cst_32 : f32 to vector<48x95xf32>
    %61 = vector.broadcast %cst_33 : f32 to vector<48x95xf32>
    %62 = arith.select %59, %60, %61 : vector<48x95xi1>, vector<48x95xf32>
    %cst_34 = arith.constant dense<0.000000e+00> : vector<48x12xf32>
    %63 = tpu.matmul %62, %54, %cst_34 {dimension_numbers = #tpu.dot_dimension_numbers<[1], [0], [0], [1], [0, 0, 1, 1], [], []>} : vector<48x95xf32>, vector<95x12xf32>, vector<48x12xf32> -> vector<48x12xf32>
    %64 = vector.extract_strided_slice %63 {offsets = [0, 0], sizes = [48, 11], strides = [1, 1]} : vector<48x12xf32> to vector<48x11xf32>
    %65 = vector.extract_strided_slice %63 {offsets = [0, 1], sizes = [48, 11], strides = [1, 1]} : vector<48x12xf32> to vector<48x11xf32>
    %66 = arith.maximumf %64, %65 : vector<48x11xf32>
    %67 = tpu.iota {dimensions = array<i32: 0>} : vector<11x6xi32>
    %68 = tpu.iota {dimensions = array<i32: 1>} : vector<11x6xi32>
    %c2_i32_35 = arith.constant 2 : i32
    %69 = vector.broadcast %c2_i32_35 : i32 to vector<11x6xi32>
    %70 = arith.muli %69, %68 : vector<11x6xi32>
    %71 = arith.cmpi eq, %67, %70 : vector<11x6xi32>
    %cst_36 = arith.constant 1.000000e+00 : f32
    %cst_37 = arith.constant 0.000000e+00 : f32
    %72 = vector.broadcast %cst_36 : f32 to vector<11x6xf32>
    %73 = vector.broadcast %cst_37 : f32 to vector<11x6xf32>
    %74 = arith.select %71, %72, %73 : vector<11x6xi1>, vector<11x6xf32>
    %cst_38 = arith.constant dense<0.000000e+00> : vector<48x6xf32>
    %75 = tpu.matmul %66, %74, %cst_38 {dimension_numbers = #tpu.dot_dimension_numbers<[1], [0], [0], [1], [0, 0, 1, 1], [], []>} : vector<48x11xf32>, vector<11x6xf32>, vector<48x6xf32> -> vector<48x6xf32>
    %cst_39 = arith.constant 0.000000e+00 : f32
    %76 = vector.broadcast %cst_39 : f32 to vector<48x1xf32>
    %77 = tpu.concatenate %76, %75, %76 in 1 : vector<48x1xf32>, vector<48x6xf32>, vector<48x1xf32> -> vector<48x8xf32>
    %c0_40 = arith.constant 0 : index
    %c0_41 = arith.constant 0 : index
    %78 = vector.load %arg8[%c0_40, %c0_41] : memref<48x1xf32, #tpu.memory_space<vmem>>, vector<48x1xf32>
    %79 = vector.extract_strided_slice %77 {offsets = [0, 0], sizes = [48, 6], strides = [1, 1]} : vector<48x8xf32> to vector<48x6xf32>
    %c0_42 = arith.constant 0 : index
    %c0_43 = arith.constant 0 : index
    %c0_44 = arith.constant 0 : index
    %80 = vector.load %arg7[%c0_42, %c0_43, %c0_44] : memref<9x48x48xf32, #tpu.memory_space<vmem>>, vector<1x48x48xf32>
    %81 = vector.shape_cast %80 : vector<1x48x48xf32> to vector<48x48xf32>
    %cst_45 = arith.constant dense<0.000000e+00> : vector<48x6xf32>
    %82 = tpu.matmul %81, %79, %cst_45 {dimension_numbers = #tpu.dot_dimension_numbers<[1], [0], [0], [1], [0, 0, 1, 1], [], []>} : vector<48x48xf32>, vector<48x6xf32>, vector<48x6xf32> -> vector<48x6xf32>
    %83 = vector.extract_strided_slice %77 {offsets = [0, 1], sizes = [48, 6], strides = [1, 1]} : vector<48x8xf32> to vector<48x6xf32>
    %c1_46 = arith.constant 1 : index
    %c0_47 = arith.constant 0 : index
    %c0_48 = arith.constant 0 : index
    %84 = vector.load %arg7[%c1_46, %c0_47, %c0_48] : memref<9x48x48xf32, #tpu.memory_space<vmem>>, vector<1x48x48xf32>
    %85 = vector.shape_cast %84 : vector<1x48x48xf32> to vector<48x48xf32>
    %cst_49 = arith.constant dense<0.000000e+00> : vector<48x6xf32>
    %86 = tpu.matmul %85, %83, %cst_49 {dimension_numbers = #tpu.dot_dimension_numbers<[1], [0], [0], [1], [0, 0, 1, 1], [], []>} : vector<48x48xf32>, vector<48x6xf32>, vector<48x6xf32> -> vector<48x6xf32>
    %87 = arith.addf %82, %86 : vector<48x6xf32>
    %88 = vector.extract_strided_slice %77 {offsets = [0, 2], sizes = [48, 6], strides = [1, 1]} : vector<48x8xf32> to vector<48x6xf32>
    %c2_50 = arith.constant 2 : index
    %c0_51 = arith.constant 0 : index
    %c0_52 = arith.constant 0 : index
    %89 = vector.load %arg7[%c2_50, %c0_51, %c0_52] : memref<9x48x48xf32, #tpu.memory_space<vmem>>, vector<1x48x48xf32>
    %90 = vector.shape_cast %89 : vector<1x48x48xf32> to vector<48x48xf32>
    %cst_53 = arith.constant dense<0.000000e+00> : vector<48x6xf32>
    %91 = tpu.matmul %90, %88, %cst_53 {dimension_numbers = #tpu.dot_dimension_numbers<[1], [0], [0], [1], [0, 0, 1, 1], [], []>} : vector<48x48xf32>, vector<48x6xf32>, vector<48x6xf32> -> vector<48x6xf32>
    %92 = arith.addf %87, %91 : vector<48x6xf32>
    %93 = vector.extract_strided_slice %77 {offsets = [0, 0], sizes = [48, 6], strides = [1, 1]} : vector<48x8xf32> to vector<48x6xf32>
    %c3_54 = arith.constant 3 : index
    %c0_55 = arith.constant 0 : index
    %c0_56 = arith.constant 0 : index
    %94 = vector.load %arg7[%c3_54, %c0_55, %c0_56] : memref<9x48x48xf32, #tpu.memory_space<vmem>>, vector<1x48x48xf32>
    %95 = vector.shape_cast %94 : vector<1x48x48xf32> to vector<48x48xf32>
    %cst_57 = arith.constant dense<0.000000e+00> : vector<48x6xf32>
    %96 = tpu.matmul %95, %93, %cst_57 {dimension_numbers = #tpu.dot_dimension_numbers<[1], [0], [0], [1], [0, 0, 1, 1], [], []>} : vector<48x48xf32>, vector<48x6xf32>, vector<48x6xf32> -> vector<48x6xf32>
    %97 = arith.addf %92, %96 : vector<48x6xf32>
    %98 = vector.extract_strided_slice %77 {offsets = [0, 1], sizes = [48, 6], strides = [1, 1]} : vector<48x8xf32> to vector<48x6xf32>
    %c4_58 = arith.constant 4 : index
    %c0_59 = arith.constant 0 : index
    %c0_60 = arith.constant 0 : index
    %99 = vector.load %arg7[%c4_58, %c0_59, %c0_60] : memref<9x48x48xf32, #tpu.memory_space<vmem>>, vector<1x48x48xf32>
    %100 = vector.shape_cast %99 : vector<1x48x48xf32> to vector<48x48xf32>
    %cst_61 = arith.constant dense<0.000000e+00> : vector<48x6xf32>
    %101 = tpu.matmul %100, %98, %cst_61 {dimension_numbers = #tpu.dot_dimension_numbers<[1], [0], [0], [1], [0, 0, 1, 1], [], []>} : vector<48x48xf32>, vector<48x6xf32>, vector<48x6xf32> -> vector<48x6xf32>
    %102 = arith.addf %97, %101 : vector<48x6xf32>
    %103 = vector.extract_strided_slice %77 {offsets = [0, 2], sizes = [48, 6], strides = [1, 1]} : vector<48x8xf32> to vector<48x6xf32>
    %c5_62 = arith.constant 5 : index
    %c0_63 = arith.constant 0 : index
    %c0_64 = arith.constant 0 : index
    %104 = vector.load %arg7[%c5_62, %c0_63, %c0_64] : memref<9x48x48xf32, #tpu.memory_space<vmem>>, vector<1x48x48xf32>
    %105 = vector.shape_cast %104 : vector<1x48x48xf32> to vector<48x48xf32>
    %cst_65 = arith.constant dense<0.000000e+00> : vector<48x6xf32>
    %106 = tpu.matmul %105, %103, %cst_65 {dimension_numbers = #tpu.dot_dimension_numbers<[1], [0], [0], [1], [0, 0, 1, 1], [], []>} : vector<48x48xf32>, vector<48x6xf32>, vector<48x6xf32> -> vector<48x6xf32>
    %107 = arith.addf %102, %106 : vector<48x6xf32>
    %108 = vector.extract_strided_slice %77 {offsets = [0, 0], sizes = [48, 6], strides = [1, 1]} : vector<48x8xf32> to vector<48x6xf32>
    %c6_66 = arith.constant 6 : index
    %c0_67 = arith.constant 0 : index
    %c0_68 = arith.constant 0 : index
    %109 = vector.load %arg7[%c6_66, %c0_67, %c0_68] : memref<9x48x48xf32, #tpu.memory_space<vmem>>, vector<1x48x48xf32>
    %110 = vector.shape_cast %109 : vector<1x48x48xf32> to vector<48x48xf32>
    %cst_69 = arith.constant dense<0.000000e+00> : vector<48x6xf32>
    %111 = tpu.matmul %110, %108, %cst_69 {dimension_numbers = #tpu.dot_dimension_numbers<[1], [0], [0], [1], [0, 0, 1, 1], [], []>} : vector<48x48xf32>, vector<48x6xf32>, vector<48x6xf32> -> vector<48x6xf32>
    %112 = arith.addf %107, %111 : vector<48x6xf32>
    %113 = vector.extract_strided_slice %77 {offsets = [0, 1], sizes = [48, 6], strides = [1, 1]} : vector<48x8xf32> to vector<48x6xf32>
    %c7_70 = arith.constant 7 : index
    %c0_71 = arith.constant 0 : index
    %c0_72 = arith.constant 0 : index
    %114 = vector.load %arg7[%c7_70, %c0_71, %c0_72] : memref<9x48x48xf32, #tpu.memory_space<vmem>>, vector<1x48x48xf32>
    %115 = vector.shape_cast %114 : vector<1x48x48xf32> to vector<48x48xf32>
    %cst_73 = arith.constant dense<0.000000e+00> : vector<48x6xf32>
    %116 = tpu.matmul %115, %113, %cst_73 {dimension_numbers = #tpu.dot_dimension_numbers<[1], [0], [0], [1], [0, 0, 1, 1], [], []>} : vector<48x48xf32>, vector<48x6xf32>, vector<48x6xf32> -> vector<48x6xf32>
    %117 = arith.addf %112, %116 : vector<48x6xf32>
    %118 = vector.extract_strided_slice %77 {offsets = [0, 2], sizes = [48, 6], strides = [1, 1]} : vector<48x8xf32> to vector<48x6xf32>
    %c8_74 = arith.constant 8 : index
    %c0_75 = arith.constant 0 : index
    %c0_76 = arith.constant 0 : index
    %119 = vector.load %arg7[%c8_74, %c0_75, %c0_76] : memref<9x48x48xf32, #tpu.memory_space<vmem>>, vector<1x48x48xf32>
    %120 = vector.shape_cast %119 : vector<1x48x48xf32> to vector<48x48xf32>
    %cst_77 = arith.constant dense<0.000000e+00> : vector<48x6xf32>
    %121 = tpu.matmul %120, %118, %cst_77 {dimension_numbers = #tpu.dot_dimension_numbers<[1], [0], [0], [1], [0, 0, 1, 1], [], []>} : vector<48x48xf32>, vector<48x6xf32>, vector<48x6xf32> -> vector<48x6xf32>
    %122 = arith.addf %117, %121 : vector<48x6xf32>
    %123 = vector.broadcast %78 : vector<48x1xf32> to vector<48x6xf32>
    %124 = arith.addf %122, %123 : vector<48x6xf32>
    %cst_78 = arith.constant 0.000000e+00 : f32
    %125 = vector.broadcast %cst_78 : f32 to vector<48x6xf32>
    %126 = arith.maximumf %124, %125 : vector<48x6xf32>
    %127 = vector.extract_strided_slice %126 {offsets = [0, 0], sizes = [47, 6], strides = [1, 1]} : vector<48x6xf32> to vector<47x6xf32>
    %128 = vector.extract_strided_slice %126 {offsets = [1, 0], sizes = [47, 6], strides = [1, 1]} : vector<48x6xf32> to vector<47x6xf32>
    %129 = arith.maximumf %127, %128 : vector<47x6xf32>
    %130 = tpu.iota {dimensions = array<i32: 0>} : vector<24x47xi32>
    %131 = tpu.iota {dimensions = array<i32: 1>} : vector<24x47xi32>
    %c2_i32_79 = arith.constant 2 : i32
    %132 = vector.broadcast %c2_i32_79 : i32 to vector<24x47xi32>
    %133 = arith.muli %132, %130 : vector<24x47xi32>
    %134 = arith.cmpi eq, %131, %133 : vector<24x47xi32>
    %cst_80 = arith.constant 1.000000e+00 : f32
    %cst_81 = arith.constant 0.000000e+00 : f32
    %135 = vector.broadcast %cst_80 : f32 to vector<24x47xf32>
    %136 = vector.broadcast %cst_81 : f32 to vector<24x47xf32>
    %137 = arith.select %134, %135, %136 : vector<24x47xi1>, vector<24x47xf32>
    %cst_82 = arith.constant dense<0.000000e+00> : vector<24x6xf32>
    %138 = tpu.matmul %137, %129, %cst_82 {dimension_numbers = #tpu.dot_dimension_numbers<[1], [0], [0], [1], [0, 0, 1, 1], [], []>} : vector<24x47xf32>, vector<47x6xf32>, vector<24x6xf32> -> vector<24x6xf32>
    %139 = vector.extract_strided_slice %138 {offsets = [0, 0], sizes = [24, 5], strides = [1, 1]} : vector<24x6xf32> to vector<24x5xf32>
    %140 = vector.extract_strided_slice %138 {offsets = [0, 1], sizes = [24, 5], strides = [1, 1]} : vector<24x6xf32> to vector<24x5xf32>
    %141 = arith.maximumf %139, %140 : vector<24x5xf32>
    %142 = tpu.iota {dimensions = array<i32: 0>} : vector<5x3xi32>
    %143 = tpu.iota {dimensions = array<i32: 1>} : vector<5x3xi32>
    %c2_i32_83 = arith.constant 2 : i32
    %144 = vector.broadcast %c2_i32_83 : i32 to vector<5x3xi32>
    %145 = arith.muli %144, %143 : vector<5x3xi32>
    %146 = arith.cmpi eq, %142, %145 : vector<5x3xi32>
    %cst_84 = arith.constant 1.000000e+00 : f32
    %cst_85 = arith.constant 0.000000e+00 : f32
    %147 = vector.broadcast %cst_84 : f32 to vector<5x3xf32>
    %148 = vector.broadcast %cst_85 : f32 to vector<5x3xf32>
    %149 = arith.select %146, %147, %148 : vector<5x3xi1>, vector<5x3xf32>
    %cst_86 = arith.constant dense<0.000000e+00> : vector<24x3xf32>
    %150 = tpu.matmul %141, %149, %cst_86 {dimension_numbers = #tpu.dot_dimension_numbers<[1], [0], [0], [1], [0, 0, 1, 1], [], []>} : vector<24x5xf32>, vector<5x3xf32>, vector<24x3xf32> -> vector<24x3xf32>
    %c0_87 = arith.constant 0 : index
    %c0_88 = arith.constant 0 : index
    %151 = vector.load %arg1[%c0_87, %c0_88] : memref<1x250xf32, #tpu.memory_space<vmem>>, vector<1x250xf32>
    %c0_89 = arith.constant 0 : index
    %c0_90 = arith.constant 0 : index
    %152 = vector.load %arg2[%c0_89, %c0_90] : memref<1x3xf32, #tpu.memory_space<vmem>>, vector<1x3xf32>
    %153 = tpu.concatenate %151, %152 in 1 : vector<1x250xf32>, vector<1x3xf32> -> vector<1x253xf32>
    %c0_91 = arith.constant 0 : index
    %c0_92 = arith.constant 0 : index
    %154 = vector.load %arg9[%c0_91, %c0_92] : memref<253x32xf32, #tpu.memory_space<vmem>>, vector<253x32xf32>
    %cst_93 = arith.constant dense<0.000000e+00> : vector<1x32xf32>
    %155 = tpu.matmul %153, %154, %cst_93 {dimension_numbers = #tpu.dot_dimension_numbers<[1], [0], [0], [1], [0, 0, 1, 1], [], []>} : vector<1x253xf32>, vector<253x32xf32>, vector<1x32xf32> -> vector<1x32xf32>
    %c0_94 = arith.constant 0 : index
    %c0_95 = arith.constant 0 : index
    %156 = vector.load %arg10[%c0_94, %c0_95] : memref<1x32xf32, #tpu.memory_space<vmem>>, vector<1x32xf32>
    %157 = arith.addf %155, %156 : vector<1x32xf32>
    %cst_96 = arith.constant 0.000000e+00 : f32
    %158 = vector.broadcast %cst_96 : f32 to vector<1x32xf32>
    %159 = arith.maximumf %157, %158 : vector<1x32xf32>
    %c0_97 = arith.constant 0 : index
    %c0_98 = arith.constant 0 : index
    %160 = vector.load %arg13[%c0_97, %c0_98] : memref<1x64xf32, #tpu.memory_space<vmem>>, vector<1x64xf32>
    %161 = vector.extract_strided_slice %150 {offsets = [0, 0], sizes = [24, 1], strides = [1, 1]} : vector<24x3xf32> to vector<24x1xf32>
    %c0_99 = arith.constant 0 : index
    %c0_100 = arith.constant 0 : index
    %c0_101 = arith.constant 0 : index
    %162 = vector.load %arg11[%c0_99, %c0_100, %c0_101] : memref<3x24x64xf32, #tpu.memory_space<vmem>>, vector<1x24x64xf32>
    %163 = vector.shape_cast %162 : vector<1x24x64xf32> to vector<24x64xf32>
    %164 = vector.broadcast %161 : vector<24x1xf32> to vector<24x64xf32>
    %165 = arith.mulf %164, %163 : vector<24x64xf32>
    %cst_102 = arith.constant dense<0.000000e+00> : vector<64xf32>
    %166 = vector.multi_reduction <add>, %165, %cst_102 [0] : vector<24x64xf32> to vector<64xf32>
    %167 = vector.shape_cast %166 : vector<64xf32> to vector<1x64xf32>
    %168 = arith.addf %160, %167 : vector<1x64xf32>
    %169 = vector.extract_strided_slice %150 {offsets = [0, 1], sizes = [24, 1], strides = [1, 1]} : vector<24x3xf32> to vector<24x1xf32>
    %c1_103 = arith.constant 1 : index
    %c0_104 = arith.constant 0 : index
    %c0_105 = arith.constant 0 : index
    %170 = vector.load %arg11[%c1_103, %c0_104, %c0_105] : memref<3x24x64xf32, #tpu.memory_space<vmem>>, vector<1x24x64xf32>
    %171 = vector.shape_cast %170 : vector<1x24x64xf32> to vector<24x64xf32>
    %172 = vector.broadcast %169 : vector<24x1xf32> to vector<24x64xf32>
    %173 = arith.mulf %172, %171 : vector<24x64xf32>
    %cst_106 = arith.constant dense<0.000000e+00> : vector<64xf32>
    %174 = vector.multi_reduction <add>, %173, %cst_106 [0] : vector<24x64xf32> to vector<64xf32>
    %175 = vector.shape_cast %174 : vector<64xf32> to vector<1x64xf32>
    %176 = arith.addf %168, %175 : vector<1x64xf32>
    %177 = vector.extract_strided_slice %150 {offsets = [0, 2], sizes = [24, 1], strides = [1, 1]} : vector<24x3xf32> to vector<24x1xf32>
    %c2_107 = arith.constant 2 : index
    %c0_108 = arith.constant 0 : index
    %c0_109 = arith.constant 0 : index
    %178 = vector.load %arg11[%c2_107, %c0_108, %c0_109] : memref<3x24x64xf32, #tpu.memory_space<vmem>>, vector<1x24x64xf32>
    %179 = vector.shape_cast %178 : vector<1x24x64xf32> to vector<24x64xf32>
    %180 = vector.broadcast %177 : vector<24x1xf32> to vector<24x64xf32>
    %181 = arith.mulf %180, %179 : vector<24x64xf32>
    %cst_110 = arith.constant dense<0.000000e+00> : vector<64xf32>
    %182 = vector.multi_reduction <add>, %181, %cst_110 [0] : vector<24x64xf32> to vector<64xf32>
    %183 = vector.shape_cast %182 : vector<64xf32> to vector<1x64xf32>
    %184 = arith.addf %176, %183 : vector<1x64xf32>
    %c0_111 = arith.constant 0 : index
    %c0_112 = arith.constant 0 : index
    %185 = vector.load %arg3[%c0_111, %c0_112] : memref<1x16xf32, #tpu.memory_space<vmem>>, vector<1x16xf32>
    %186 = tpu.concatenate %159, %185 in 1 : vector<1x32xf32>, vector<1x16xf32> -> vector<1x48xf32>
    %c0_113 = arith.constant 0 : index
    %c0_114 = arith.constant 0 : index
    %187 = vector.load %arg12[%c0_113, %c0_114] : memref<48x64xf32, #tpu.memory_space<vmem>>, vector<48x64xf32>
    %cst_115 = arith.constant dense<0.000000e+00> : vector<1x64xf32>
    %188 = tpu.matmul %186, %187, %cst_115 {dimension_numbers = #tpu.dot_dimension_numbers<[1], [0], [0], [1], [0, 0, 1, 1], [], []>} : vector<1x48xf32>, vector<48x64xf32>, vector<1x64xf32> -> vector<1x64xf32>
    %189 = arith.addf %184, %188 : vector<1x64xf32>
    %190 = vector.extract_strided_slice %189 {offsets = [0, 0], sizes = [1, 16], strides = [1, 1]} : vector<1x64xf32> to vector<1x16xf32>
    %191 = arith.negf %190 : vector<1x16xf32>
    %192 = math.exp %191 : vector<1x16xf32>
    %cst_116 = arith.constant 1.000000e+00 : f32
    %193 = vector.broadcast %cst_116 : f32 to vector<1x16xf32>
    %194 = arith.addf %193, %192 : vector<1x16xf32>
    %195 = arith.divf %193, %194 : vector<1x16xf32>
    %196 = vector.extract_strided_slice %189 {offsets = [0, 16], sizes = [1, 16], strides = [1, 1]} : vector<1x64xf32> to vector<1x16xf32>
    %197 = arith.negf %196 : vector<1x16xf32>
    %198 = math.exp %197 : vector<1x16xf32>
    %cst_117 = arith.constant 1.000000e+00 : f32
    %199 = vector.broadcast %cst_117 : f32 to vector<1x16xf32>
    %200 = arith.addf %199, %198 : vector<1x16xf32>
    %201 = arith.divf %199, %200 : vector<1x16xf32>
    %202 = vector.extract_strided_slice %189 {offsets = [0, 32], sizes = [1, 16], strides = [1, 1]} : vector<1x64xf32> to vector<1x16xf32>
    %203 = math.tanh %202 : vector<1x16xf32>
    %204 = vector.extract_strided_slice %189 {offsets = [0, 48], sizes = [1, 16], strides = [1, 1]} : vector<1x64xf32> to vector<1x16xf32>
    %205 = arith.negf %204 : vector<1x16xf32>
    %206 = math.exp %205 : vector<1x16xf32>
    %cst_118 = arith.constant 1.000000e+00 : f32
    %207 = vector.broadcast %cst_118 : f32 to vector<1x16xf32>
    %208 = arith.addf %207, %206 : vector<1x16xf32>
    %209 = arith.divf %207, %208 : vector<1x16xf32>
    %c0_119 = arith.constant 0 : index
    %c0_120 = arith.constant 0 : index
    %210 = vector.load %arg4[%c0_119, %c0_120] : memref<1x16xf32, #tpu.memory_space<vmem>>, vector<1x16xf32>
    %211 = arith.mulf %201, %210 : vector<1x16xf32>
    %212 = arith.mulf %195, %203 : vector<1x16xf32>
    %213 = arith.addf %211, %212 : vector<1x16xf32>
    %214 = math.tanh %213 : vector<1x16xf32>
    %215 = arith.mulf %209, %214 : vector<1x16xf32>
    %c0_121 = arith.constant 0 : index
    %c0_122 = arith.constant 0 : index
    %216 = vector.load %arg19[%c0_121, %c0_122] : memref<1x16xf32, #tpu.memory_space<vmem>>, vector<1x16xf32>
    tpu.vector_store %arg19[%c0_121, %c0_122], %215 {strides = array<i32>} : memref<1x16xf32, #tpu.memory_space<vmem>>, vector<1x16xf32>,
    %c0_123 = arith.constant 0 : index
    %c0_124 = arith.constant 0 : index
    %217 = vector.load %arg20[%c0_123, %c0_124] : memref<1x16xf32, #tpu.memory_space<vmem>>, vector<1x16xf32>
    tpu.vector_store %arg20[%c0_123, %c0_124], %213 {strides = array<i32>} : memref<1x16xf32, #tpu.memory_space<vmem>>, vector<1x16xf32>,
    %c0_125 = arith.constant 0 : index
    %c0_126 = arith.constant 0 : index
    %218 = vector.load %arg14[%c0_125, %c0_126] : memref<16x22xf32, #tpu.memory_space<vmem>>, vector<16x22xf32>
    %cst_127 = arith.constant dense<0.000000e+00> : vector<1x22xf32>
    %219 = tpu.matmul %215, %218, %cst_127 {dimension_numbers = #tpu.dot_dimension_numbers<[1], [0], [0], [1], [0, 0, 1, 1], [], []>} : vector<1x16xf32>, vector<16x22xf32>, vector<1x22xf32> -> vector<1x22xf32>
    %c0_128 = arith.constant 0 : index
    %c0_129 = arith.constant 0 : index
    %220 = vector.load %arg15[%c0_128, %c0_129] : memref<1x22xf32, #tpu.memory_space<vmem>>, vector<1x22xf32>
    %221 = arith.addf %219, %220 : vector<1x22xf32>
    %222 = vector.extract_strided_slice %221 {offsets = [0, 0], sizes = [1, 9], strides = [1, 1]} : vector<1x22xf32> to vector<1x9xf32>
    %223 = tpu.iota {dimensions = array<i32: 1>} : vector<1x9xi32>
    %cst_130 = arith.constant dense<0xFF800000> : vector<1xf32>
    %224 = vector.multi_reduction <maximumf>, %222, %cst_130 [1] : vector<1x9xf32> to vector<1xf32>
    %225 = vector.shape_cast %224 : vector<1xf32> to vector<1x1xf32>
    %226 = vector.broadcast %225 : vector<1x1xf32> to vector<1x9xf32>
    %227 = arith.cmpf oeq, %222, %226 : vector<1x9xf32>
    %c9_i32 = arith.constant 9 : i32
    %228 = vector.broadcast %c9_i32 : i32 to vector<1x9xi32>
    %229 = arith.select %227, %223, %228 : vector<1x9xi1>, vector<1x9xi32>
    %cst_131 = arith.constant dense<2147483647> : vector<1xi32>
    %230 = vector.multi_reduction <minsi>, %229, %cst_131 [1] : vector<1x9xi32> to vector<1xi32>
    %231 = vector.shape_cast %230 : vector<1xi32> to vector<1x1xi32>
    %c0_132 = arith.constant 0 : index
    %c0_133 = arith.constant 0 : index
    %232 = vector.load %arg16[%c0_132, %c0_133] : memref<1x1xi32, #tpu.memory_space<vmem>>, vector<1x1xi32>
    tpu.vector_store %arg16[%c0_132, %c0_133], %231 {strides = array<i32>} : memref<1x1xi32, #tpu.memory_space<vmem>>, vector<1x1xi32>,
    %233 = vector.extract_strided_slice %221 {offsets = [0, 9], sizes = [1, 3], strides = [1, 1]} : vector<1x22xf32> to vector<1x3xf32>
    %234 = tpu.iota {dimensions = array<i32: 1>} : vector<1x3xi32>
    %cst_134 = arith.constant dense<0xFF800000> : vector<1xf32>
    %235 = vector.multi_reduction <maximumf>, %233, %cst_134 [1] : vector<1x3xf32> to vector<1xf32>
    %236 = vector.shape_cast %235 : vector<1xf32> to vector<1x1xf32>
    %237 = vector.broadcast %236 : vector<1x1xf32> to vector<1x3xf32>
    %238 = arith.cmpf oeq, %233, %237 : vector<1x3xf32>
    %c3_i32 = arith.constant 3 : i32
    %239 = vector.broadcast %c3_i32 : i32 to vector<1x3xi32>
    %240 = arith.select %238, %234, %239 : vector<1x3xi1>, vector<1x3xi32>
    %cst_135 = arith.constant dense<2147483647> : vector<1xi32>
    %241 = vector.multi_reduction <minsi>, %240, %cst_135 [1] : vector<1x3xi32> to vector<1xi32>
    %242 = vector.shape_cast %241 : vector<1xi32> to vector<1x1xi32>
    %c0_136 = arith.constant 0 : index
    %c0_137 = arith.constant 0 : index
    %243 = vector.load %arg17[%c0_136, %c0_137] : memref<1x1xi32, #tpu.memory_space<vmem>>, vector<1x1xi32>
    tpu.vector_store %arg17[%c0_136, %c0_137], %242 {strides = array<i32>} : memref<1x1xi32, #tpu.memory_space<vmem>>, vector<1x1xi32>,
    %244 = vector.extract_strided_slice %221 {offsets = [0, 12], sizes = [1, 10], strides = [1, 1]} : vector<1x22xf32> to vector<1x10xf32>
    %245 = tpu.iota {dimensions = array<i32: 1>} : vector<1x10xi32>
    %cst_138 = arith.constant dense<0xFF800000> : vector<1xf32>
    %246 = vector.multi_reduction <maximumf>, %244, %cst_138 [1] : vector<1x10xf32> to vector<1xf32>
    %247 = vector.shape_cast %246 : vector<1xf32> to vector<1x1xf32>
    %248 = vector.broadcast %247 : vector<1x1xf32> to vector<1x10xf32>
    %249 = arith.cmpf oeq, %244, %248 : vector<1x10xf32>
    %c10_i32 = arith.constant 10 : i32
    %250 = vector.broadcast %c10_i32 : i32 to vector<1x10xi32>
    %251 = arith.select %249, %245, %250 : vector<1x10xi1>, vector<1x10xi32>
    %cst_139 = arith.constant dense<2147483647> : vector<1xi32>
    %252 = vector.multi_reduction <minsi>, %251, %cst_139 [1] : vector<1x10xi32> to vector<1xi32>
    %253 = vector.shape_cast %252 : vector<1xi32> to vector<1x1xi32>
    %c0_140 = arith.constant 0 : index
    %c0_141 = arith.constant 0 : index
    %254 = vector.load %arg18[%c0_140, %c0_141] : memref<1x1xi32, #tpu.memory_space<vmem>>, vector<1x1xi32>
    tpu.vector_store %arg18[%c0_140, %c0_141], %253 {strides = array<i32>} : memref<1x1xi32, #tpu.memory_space<vmem>>, vector<1x1xi32>,
    return
  }
}

</mosaic_0001>

<bundles_post_ra>
// kernel: policy_net_forward.1
= control target key start
LH: loop header
LB: loop body
LE: loop exit
PB: predicated region body
PF: predicated region fallthrough
CT: control target
= control target key end

     0   :  { %s4823_s0 = inlined_call_operand.vmem [shape: f32[12,12], index: 0, kind: input, shape index: {}]   ;;  %s4824_s1 = inlined_call_operand.vmem [shape: f32[1,250], index: 1, kind: input, shape index: {}]   ;;  %s4825_s2 = inlined_call_operand.vmem [shape: f32[1,3], index: 2, kind: input, shape index: {}]   ;;  %s4826_s3 = inlined_call_operand.vmem [shape: f32[1,16], index: 3, kind: input, shape index: {}, may-alias: {3,4}]   ;;  %s4827_s4 = inlined_call_operand.vmem [shape: f32[1,16], index: 4, kind: input, shape index: {}, may-alias: {3,4}]   ;;  %s4828_s5 = inlined_call_operand.vmem [shape: f32[9,96,12], index: 5, kind: input, shape index: {}]   ;;  %s4829_s6 = inlined_call_operand.vmem [shape: f32[96,1], index: 6, kind: input, shape index: {}]   ;;  %s4830_s7 = inlined_call_operand.vmem [shape: f32[9,48,48], index: 7, kind: input, shape index: {}]   ;;  %s4831_s8 = inlined_call_operand.vmem [shape: f32[48,1], index: 8, kind: input, shape index: {}]   ;;  %s4832_s9 = inlined_call_operand.vmem [shape: f32[253,32], index: 9, kind: input, shape index: {}]   ;;  %s4833_s10 = inlined_call_operand.vmem [shape: f32[1,32], index: 10, kind: input, shape index: {}]   ;;  %s4834_s11 = inlined_call_operand.vmem [shape: f32[3,24,64], index: 11, kind: input, shape index: {}]   ;;  %s4835_s12 = inlined_call_operand.vmem [shape: f32[48,64], index: 12, kind: input, shape index: {}]   ;;  %s4836_s13 = inlined_call_operand.vmem [shape: f32[1,64], index: 13, kind: input, shape index: {}]   ;;  %s4837_s14 = inlined_call_operand.vmem [shape: f32[16,22], index: 14, kind: input, shape index: {}]   ;;  %s4838_s15 = inlined_call_operand.vmem [shape: f32[1,22], index: 15, kind: input, shape index: {}]   ;;  %s4839_s16 = inlined_call_operand.hbm [shape: s32[1,1], index: 16, kind: output, shape index: {0}]   ;;  %s4840_s17 = inlined_call_operand.hbm [shape: s32[1,1], index: 17, kind: output, shape index: {1}]   ;;  %s4841_s18 = inlined_call_operand.hbm [shape: s32[1,1], index: 18, kind: output, shape index: {2}]   ;;  %s4842_s19 = inlined_call_operand.hbm [shape: f32[1,16], index: 19, kind: output, shape index: {3}]   ;;  %s4843_s20 = inlined_call_operand.hbm [shape: f32[1,16], index: 20, kind: output, shape index: {4}]  }
   0x1   :  { %4845 = sst [smem:[#allocation32_spill]] %s4823_s0 }
   0x2   :  { %4846 = sst [smem:[#allocation33_spill]] %s4824_s1 }
   0x3   :  { %4847 = sst [smem:[#allocation34_spill]] %s4825_s2 }
   0x4   :  { %4848 = sst [smem:[#allocation35_spill]] %s4826_s3 }
   0x5   :  { %4849 = sst [smem:[#allocation36_spill]] %s4827_s4 }
   0x6   :  { %26 = vsyncpa [#allocation3], 0 }
   0x7   :  { %27 = vsyncpa [#allocation5], 0  ;;  %s4850_s23 = sld [smem:[#allocation32_spill]]  ;;  %s3288_s24 = smov 1  }
   0xd   :  { %v62_v0 = vld [vmem:[%s4850_s23 + $0x8] sm:$0xf] }
   0xe   :  { %67 = vrot.lane.b32.xlu0 %v62_v0, %s3288_s24 }
   0xf   :  { %28 = vsyncpa [#allocation8], 0  ;;  %v61_v1 = vld [vmem:[%s4850_s23] sm:$0xff]  ;;  %vm71_vm0 = vcmask 7168   ;;  %vm74_vm1 = vcmask 105472   ;;  %vm158_vm2 = vcmask 1043456  }
  0x10   :  { %s3289_s3 = smov 126   ;;  %s3290_s26 = smov 127   ;;  %v89_v8 = vld [vmem:[%s4828_s5] sm:$0xff]  ;;  %vm121_vm3 = vcmask 97280   ;;  %v90_v9 = vld [vmem:[%s4828_s5 + $0x8] sm:$0xff]  ;;  %v91_v11 = vld [vmem:[%s4828_s5 + $0x10] sm:$0xff] }
  0x11   :  { %v2784_v13 = vld [vmem:[%s4828_s5 + $0x120] sm:$0xff]  ;;  %v92_v14 = vld [vmem:[%s4828_s5 + $0x18] sm:$0xff]  ;;  %v2785_v15 = vld [vmem:[%s4828_s5 + $0x128] sm:$0xff]  ;;  %vm1206_vm4 = vcmask 1046528   ;;  %vm1281_vm6 = vcmask 777216   ;;  %vm1392_vm12 = vcmask 1042432  }
  0x12   :  { %v93_v16 = vld [vmem:[%s4828_s5 + $0x20] sm:$0xff]  ;;  %v2786_v18 = vld [vmem:[%s4828_s5 + $0x130] sm:$0xff]  ;;  %v94_v19 = vld [vmem:[%s4828_s5 + $0x28] sm:$0xff]  ;;  %vm1373_vm15 = vcmask 89088   ;;  %s4891_s2 = sld [smem:[#allocation34_spill]]  ;;  %s3294_s25 = smov 122  }
  0x13   :  { %v2720_v20 = vld [vmem:[%s4828_s5 + $0x60] sm:$0xff]  ;;  %v2731_v22 = vld [vmem:[%s4828_s5 + $0xb8] sm:$0xff]  ;;  %v95_v24 = vld [vmem:[%s4828_s5 + $0x30] sm:$0xff]  ;;  %s4892_s1 = sld [smem:[#allocation33_spill]]  ;;  %s3304_s27 = smov 112  }
  0x14   :  { %v2787_v23 = vld [vmem:[%s4828_s5 + $0x138] sm:$0xff]  ;;  %v2721_v25 = vld [vmem:[%s4828_s5 + $0x68] sm:$0xff]  ;;  %v2759_v26 = vld [vmem:[%s4828_s5 + $0xc0] sm:$0xff]  ;;  %s4893_s23 = sld [smem:[#allocation35_spill]]  ;;  %s3305_s28 = smov [#allocation4]  }
  0x15   :  { %v2788_v27 = vld [vmem:[%s4828_s5 + $0x140] sm:$0xff]  ;;  %v96_v28 = vld [vmem:[%s4828_s5 + $0x38] sm:$0xff]  ;;  %v2722_v29 = vld [vmem:[%s4828_s5 + $0x70] sm:$0xff]  ;;  %s2658_s4 = sshll.u32 %s3305_s28, 4  ;;  %s2660_s0 = sshll.u32 %s4840_s17, 4  ;;  %s2659_s4 = int_to_ptr.vmem [resolvable:$true] %s2658_s4  ;;  %s2661_s0 = int_to_ptr.hbm [resolvable:$true] %s2660_s0 }
  0x16   :  { %65 = vrot.lane.b32.xlu0 %v61_v1, %s3288_s24  ;;  %v2760_v30 = vld [vmem:[%s4828_s5 + $0xc8] sm:$0xff]  ;;  %v97_v32 = vld [vmem:[%s4828_s5 + $0x40] sm:$0xff]  ;;  %v2723_v33 = vld [vmem:[%s4828_s5 + $0x78] sm:$0xff]  ;;  %s3307_s17 = smov [#allocation6]   ;;  %s2671_s22 = sshll.u32 %s4841_s18, 4  ;;  %s2672_s22 = int_to_ptr.hbm [resolvable:$true] %s2671_s22 }
  0x17   :  { %v2789_v31 = vld [vmem:[%s4828_s5 + $0x148] sm:$0xff]  ;;  %v2761_v34 = vld [vmem:[%s4828_s5 + $0xd0] sm:$0xff]  ;;  %v2724_v37 = vld [vmem:[%s4828_s5 + $0x80] sm:$0xff]  ;;  %s2669_s21 = sshll.u32 %s3307_s17, 4  ;;  %s2670_s21 = int_to_ptr.vmem [resolvable:$true] %s2669_s21 }
  0x18   :  { %v2790_v35 = vld [vmem:[%s4828_s5 + $0x150] sm:$0xff]  ;;  %v98_v36 = vld [vmem:[%s4828_s5 + $0x48] sm:$0xff]  ;;  %v2762_v38 = vld [vmem:[%s4828_s5 + $0xd8] sm:$0xff] }
  0x19   :  { %v2791_v39 = vld [vmem:[%s4828_s5 + $0x158] sm:$0xff]  ;;  %v99_v40 = vld [vmem:[%s4828_s5 + $0x50] sm:$0xff]  ;;  %v2725_v41 = vld [vmem:[%s4828_s5 + $0x88] sm:$0xff] }
  0x1a   :  { %v2763_v42 = vld [vmem:[%s4828_s5 + $0xe0] sm:$0xff]  ;;  %v100_v44 = vld [vmem:[%s4828_s5 + $0x58] sm:$0xff]  ;;  %v2726_v45 = vld [vmem:[%s4828_s5 + $0x90] sm:$0xff] }
  0x1b   :  { %v2792_v43 = vld [vmem:[%s4828_s5 + $0x160] sm:$0xff]  ;;  %v2764_v46 = vld [vmem:[%s4828_s5 + $0xe8] sm:$0xff]  ;;  %v2727_v48 = vld [vmem:[%s4828_s5 + $0x98] sm:$0xff] }
  0x1c   :  { %v2793_v47 = vld [vmem:[%s4828_s5 + $0x168] sm:$0xff]  ;;  %v2765_v49 = vld [vmem:[%s4828_s5 + $0xf0] sm:$0xff]  ;;  %v2835_v51 = vld [vmem:[%s4828_s5 + $0x1e0] sm:$0xff] }
  0x1d   :  { %v2794_v50 = vld [vmem:[%s4828_s5 + $0x170] sm:$0xff]  ;;  %v2728_v52 = vld [vmem:[%s4828_s5 + $0xa0] sm:$0xff]  ;;  %v2766_v53 = vld [vmem:[%s4828_s5 + $0xf8] sm:$0xff] }
  0x1e   :  { %v2795_v54 = vld [vmem:[%s4828_s5 + $0x178] sm:$0xff]  ;;  %v2836_v55 = vld [vmem:[%s4828_s5 + $0x1e8] sm:$0xff]  ;;  %v2767_v57 = vld [vmem:[%s4828_s5 + $0x100] sm:$0xff] }
  0x1f   :  { %v2729_v56 = vld [vmem:[%s4828_s5 + $0xa8] sm:$0xff]  ;;  %v2837_v58 = vld [vmem:[%s4828_s5 + $0x1f0] sm:$0xff]  ;;  %v2886_v59 = vld [vmem:[%s4828_s5 + $0x2a0] sm:$0xff] }
  0x20   :  { %v2730_v60 = vld [vmem:[%s4828_s5 + $0xb0] sm:$0xff]  ;;  %v2768_v61 = vld [vmem:[%s4828_s5 + $0x108] sm:$0xff]  ;;  %v2838_v62 = vld [vmem:[%s4828_s5 + $0x1f8] sm:$0xff] }
  0x21   :  { %v2887_v63 = vld [vmem:[%s4828_s5 + $0x2a8] sm:$0xff]  ;;  %v2810_v0 = vld [vmem:[%s4828_s5 + $0x180] sm:$0xff]  ;;  %v2769_v1 = vld [vmem:[%s4828_s5 + $0x110] sm:$0xff] }
  0x80   :  { %v68_v2 = vpop.permute.xlu0 %67 }
  0x81   :  { %v73_v3 = vsel %vm71_vm0, 0.0, %v68_v2  ;;  %v2839_v2 = vld [vmem:[%s4828_s5 + $0x200] sm:$0xff] }
  0x82   :  { %v76_v4 = vsel %vm74_vm1, %v73_v3, 0.0  ;;  %v2888_v3 = vld [vmem:[%s4828_s5 + $0x2b0] sm:$0xff] }
  0x83   :  { %320 = vrot.lane.b32.xlu2 %v76_v4, %s3289_s3  ;;  %118 = vrot.lane.b32.xlu1 %v76_v4, %s3290_s26 }
  0x84   :  { %2745 = vmatpush.msk.msra.mxu1 %vm158_vm2, %v76_v4  ;;  %2796 = vmatpush.msk.msra.mxu3 %vm158_vm2, %v76_v4 }
  0x88   :  { %v66_v5 = vpop.permute.xlu0 %65 }
  0x89   :  { %v72_v6 = vsel %vm71_vm0, 0.0, %v66_v5  ;;  %v2770_v5 = vld [vmem:[%s4828_s5 + $0x118] sm:$0xff] }
  0x8a   :  { %2746 = vmatpush.msk.msra.mxu1 %vm74_vm1, %v72_v6  ;;  %2797 = vmatpush.msk.msra.mxu3 %vm74_vm1, %v72_v6  ;;  %v75_v7 = vsel %vm74_vm1, %v72_v6, 0.0 }
  0x8b   :  { %318 = vrot.lane.b32.xlu2 %v75_v7, %s3289_s3  ;;  %116 = vrot.lane.b32.xlu1 %v75_v7, %s3290_s26  ;;  %v2889_v7 = vld [vmem:[%s4828_s5 + $0x2b8] sm:$0xff] }
  0x8c   :  { %2747 = vmatmul.msk.f32.vlgmr.msra.gmra.mxu1 %vm121_vm3, %v89_v8  ;;  %2798 = vmatmul.msk.f32.vlgmr.msra.gmra.mxu3 %vm121_vm3, %v2784_v13  ;;  %v2812_v8 = vld [vmem:[%s4828_s5 + $0x190] sm:$0xff]  ;;  %v2861_v13 = vld [vmem:[%s4828_s5 + $0x248] sm:$0xff] }
  0x94   :  { %2748 = vmatmul.msk.f32.gmra.mxu1 %vm121_vm3, %v90_v9  ;;  %2799 = vmatmul.msk.f32.gmra.mxu3 %vm121_vm3, %v2785_v15  ;;  %v2860_v9 = vld [vmem:[%s4828_s5 + $0x240] sm:$0xff]  ;;  %v2891_v15 = vld [vmem:[%s4828_s5 + $0x2c8] sm:$0xff] }
  0x9c   :  { %2749 = vmatmul.msk.f32.gmra.mxu1 %vm121_vm3, %v91_v11  ;;  %2800 = vmatmul.msk.f32.gmra.mxu3 %vm121_vm3, %v2786_v18  ;;  %v2890_v11 = vld [vmem:[%s4828_s5 + $0x2c0] sm:$0xff] }
  0x9d   :  { %v2843_v18 = vld [vmem:[%s4828_s5 + $0x220] sm:$0xff] }
  0xa4   :  { %2750 = vmatmul.msk.f32.gmra.mxu1 %vm121_vm3, %v92_v14  ;;  %2801 = vmatmul.msk.f32.gmra.mxu3 %vm121_vm3, %v2787_v23  ;;  %v2842_v14 = vld [vmem:[%s4828_s5 + $0x218] sm:$0xff]  ;;  %v2844_v23 = vld [vmem:[%s4828_s5 + $0x228] sm:$0xff] }
  0xac   :  { %2751 = vmatmul.msk.f32.gmra.mxu1 %vm121_vm3, %v93_v16  ;;  %2802 = vmatmul.msk.f32.gmra.mxu3 %vm121_vm3, %v2788_v27  ;;  %v2814_v16 = vld [vmem:[%s4828_s5 + $0x1a0] sm:$0xff] }
  0xad   :  { %v2864_v27 = vld [vmem:[%s4828_s5 + $0x260] sm:$0xff] }
  0xb4   :  { %2752 = vmatmul.msk.f32.gmra.mxu1 %vm121_vm3, %v94_v19  ;;  %2803 = vmatmul.msk.f32.gmra.mxu3 %vm121_vm3, %v2789_v31  ;;  %v2892_v19 = vld [vmem:[%s4828_s5 + $0x2d0] sm:$0xff]  ;;  %v2817_v31 = vld [vmem:[%s4828_s5 + $0x1b8] sm:$0xff] }
  0xbc   :  { %2753 = vmatmul.msk.f32.gmra.mxu1 %vm121_vm3, %v95_v24  ;;  %2804 = vmatmul.msk.f32.gmra.mxu3 %vm121_vm3, %v2790_v35  ;;  %v2893_v24 = vld [vmem:[%s4828_s5 + $0x2d8] sm:$0xff] }
  0xbd   :  { %v2846_v35 = vld [vmem:[%s4828_s5 + $0x238] sm:$0xff] }
  0xc4   :  { %2754 = vmatmul.msk.f32.gmra.mxu1 %vm121_vm3, %v96_v28  ;;  %2805 = vmatmul.msk.f32.gmra.mxu3 %vm121_vm3, %v2791_v39  ;;  %v2845_v28 = vld [vmem:[%s4828_s5 + $0x230] sm:$0xff]  ;;  %v2818_v39 = vld [vmem:[%s4828_s5 + $0x1c0] sm:$0xff] }
  0xcc   :  { %2755 = vmatmul.msk.f32.gmra.mxu1 %vm121_vm3, %v97_v32  ;;  %2806 = vmatmul.msk.f32.gmra.mxu3 %vm121_vm3, %v2792_v43  ;;  %v88_v32 = vld [vmem:[%s4829_s6 + $0x58] sm:$0xff] }
  0xd4   :  { %2756 = vmatmul.msk.f32.gmra.mxu1 %vm121_vm3, %v98_v36  ;;  %2807 = vmatmul.msk.f32.gmra.mxu3 %vm121_vm3, %v2793_v47  ;;  %v2895_v36 = vld [vmem:[%s4828_s5 + $0x2e8] sm:$0xff]  ;;  %v2867_v47 = vld [vmem:[%s4828_s5 + $0x278] sm:$0xff] }
  0xdc   :  { %2757 = vmatmul.msk.f32.gmra.mxu1 %vm121_vm3, %v99_v40  ;;  %2808 = vmatmul.msk.f32.gmra.mxu3 %vm121_vm3, %v2794_v50  ;;  %v83_v40 = vld [vmem:[%s4829_s6 + $0x30] sm:$0xff]  ;;  %v2897_v50 = vld [vmem:[%s4828_s5 + $0x2f8] sm:$0xff] }
  0xdd   :  { %v321_v10 = vpop.permute.xlu2 %320 }
  0xde   :  { %2847 = vmatpush.msk.msrb.mxu1 %vm158_vm2, %v321_v10 }
  0xe4   :  { %2758 = vmatmul.msk.f32.gmra.mxu1 %vm121_vm3, %v100_v44  ;;  %2809 = vmatmul.msk.f32.gmra.mxu3 %vm121_vm3, %v2795_v54  ;;  %v2819_v44 = vld [vmem:[%s4828_s5 + $0x1c8] sm:$0xff]  ;;  %v77_v54 = vld [vmem:[%s4829_s6] sm:$0xff] }
  0xe5   :  { %v319_v12 = vpop.permute.xlu2 %318 }
  0xe6   :  { %718 = vmatpush.msrb.mxu1 %v319_v12 }
  0xec   :  { %2848 = vmatmul.msk.f32.vlgmr.msrb.gmra.mxu1 %vm121_vm3, %v2835_v51 }
  0xf4   :  { %2849 = vmatmul.msk.f32.gmra.mxu1 %vm121_vm3, %v2836_v55  ;;  %v2868_v55 = vld [vmem:[%s4828_s5 + $0x280] sm:$0xff] }
  0xf5   :  { %v119_v17 = vpop.permute.xlu1 %118 }
  0xf6   :  { %2732 = vmatpush.msk.msra.mxu0 %vm158_vm2, %v119_v17  ;;  %3090 = vmatpush.msk.msra.mxu2 %vm158_vm2, %v119_v17 }
  0xf7   :  { %2898 = vmatpush.msk.msrb.mxu3 %vm158_vm2, %v119_v17 }
  0xfc   :  { %2850 = vmatmul.msk.f32.gmra.mxu1 %vm121_vm3, %v2837_v58 }
  0xfd   :  { %v117_v21 = vpop.permute.xlu1 %116 }
  0xfe   :  { %176 = vmatpush.msra.mxu0 %v117_v21  ;;  %3091 = vmatpush.msra.mxu2 %v117_v21 }
  0xff   :  { %946 = vmatpush.msrb.mxu3 %v117_v21  ;;  %2733 = vmatmul.msk.f32.vlgmr.msra.gmra.mxu0 %vm121_vm3, %v2720_v20 }
 0x100   :  { %2744 = vmatmul.msk.f32.vlgmr.msra.gmra.mxu2 %vm121_vm3, %v2731_v22  ;;  %2822 = vmatpush.msk.msrb.mxu0 %vm158_vm2, %v119_v17  ;;  %v2862_v17 = vld [vmem:[%s4828_s5 + $0x250] sm:$0xff]  ;;  %v2863_v22 = vld [vmem:[%s4828_s5 + $0x258] sm:$0xff] }
 0x101   :  { %2771 = vmatpush.msk.msrb.mxu2 %vm158_vm2, %v321_v10  ;;  %2899 = vmatmul.msk.f32.vlgmr.msrb.gmra.mxu3 %vm121_vm3, %v2886_v59 }
 0x102   :  { %604 = vmatpush.msrb.mxu0 %v117_v21  ;;  %v2815_v21 = vld [vmem:[%s4828_s5 + $0x1a8] sm:$0xff] }
 0x103   :  { %376 = vmatpush.msrb.mxu2 %v319_v12 }
 0x104   :  { %2923 = vmatpush.msk.msra.mxu0 %vm158_vm2, %v321_v10  ;;  %2851 = vmatmul.msk.f32.gmra.mxu1 %vm121_vm3, %v2838_v62  ;;  %v2841_v10 = vld [vmem:[%s4828_s5 + $0x210] sm:$0xff]  ;;  %v2869_v62 = vld [vmem:[%s4828_s5 + $0x288] sm:$0xff] }
 0x105   :  { %2872 = vmatpush.msk.msra.mxu2 %vm158_vm2, %v76_v4  ;;  %v2811_v4 = vld [vmem:[%s4828_s5 + $0x188] sm:$0xff]  ;;  %vm2169_vm2 = vcmask 384000  }
 0x106   :  { %1060 = vmatpush.msra.mxu0 %v319_v12  ;;  %v2813_v12 = vld [vmem:[%s4828_s5 + $0x198] sm:$0xff] }
 0x107   :  { %2873 = vmatpush.msk.msra.mxu2 %vm74_vm1, %v72_v6  ;;  %2734 = vmatmul.msk.f32.gmra.mxu0 %vm121_vm3, %v2721_v25  ;;  %v2840_v6 = vld [vmem:[%s4828_s5 + $0x208] sm:$0xff]  ;;  %vm1461_vm1 = vcmask 56320  }
 0x108   :  { %2772 = vmatmul.msk.f32.vlgmr.msrb.gmra.mxu2 %vm121_vm3, %v2759_v26  ;;  %v2816_v26 = vld [vmem:[%s4828_s5 + $0x1b0] sm:$0xff] }
 0x109   :  { %2900 = vmatmul.msk.f32.gmra.mxu3 %vm121_vm3, %v2887_v63  ;;  %v86_v63 = vld [vmem:[%s4829_s6 + $0x48] sm:$0xff] }
 0x10c   :  { %2852 = vmatmul.msk.f32.gmra.mxu1 %vm121_vm3, %v2839_v2 }
 0x10f   :  { %2735 = vmatmul.msk.f32.gmra.mxu0 %vm121_vm3, %v2722_v29  ;;  %v2894_v29 = vld [vmem:[%s4828_s5 + $0x2e0] sm:$0xff]  ;;  %v3830_v51 = vpop.f32.mrf.mxu3 }
 0x110   :  { %2773 = vmatmul.msk.f32.gmra.mxu2 %vm121_vm3, %v2760_v30 }
 0x111   :  { %2901 = vmatmul.msk.f32.gmra.mxu3 %vm121_vm3, %v2888_v3 }
 0x114   :  { %2853 = vmatmul.msk.f32.gmra.mxu1 %vm121_vm3, %v2840_v6  ;;  %v2870_v6 = vld [vmem:[%s4828_s5 + $0x290] sm:$0xff] }
 0x117   :  { %2736 = vmatmul.msk.f32.gmra.mxu0 %vm121_vm3, %v2723_v33  ;;  %v2865_v33 = vld [vmem:[%s4828_s5 + $0x268] sm:$0xff]  ;;  %v3853_v59 = vpop.f32.mrf.mxu3 }
 0x118   :  { %2774 = vmatmul.msk.f32.gmra.mxu2 %vm121_vm3, %v2761_v34  ;;  %v3291_v34 = vmov 0  }
 0x119   :  { %2902 = vmatmul.msk.f32.gmra.mxu3 %vm121_vm3, %v2889_v7  ;;  %3113 = vset.pattern.permute.xlu0 %v3291_v34  ;;  %v84_v7 = vld [vmem:[%s4829_s6 + $0x38] sm:$0xff] }
 0x11a   :  { %3114 = vset.pattern.permute.xlu1 %v3291_v34  ;;  %1167 = vperm.xlu0 %3113, %v88_v32  }
 0x11b   :  { %3115 = vset.pattern.permute.xlu2 %v3291_v34 }
 0x11c   :  { %2854 = vmatmul.msk.f32.gmra.mxu1 %vm121_vm3, %v2841_v10  ;;  %1157 = vperm.xlu2 %3115, %v86_v63  }
 0x11f   :  { %2737 = vmatmul.msk.f32.gmra.mxu0 %vm121_vm3, %v2724_v37 }
 0x120   :  { %2775 = vmatmul.msk.f32.gmra.mxu2 %vm121_vm3, %v2762_v38 }
 0x121   :  { %2903 = vmatmul.msk.f32.gmra.mxu3 %vm121_vm3, %v2890_v11 }
 0x122   :  { %1142 = vperm.xlu0 %3113, %v83_v40  }
 0x124   :  { %2855 = vmatmul.msk.f32.gmra.mxu1 %vm121_vm3, %v2842_v14  ;;  %1147 = vperm.xlu2 %3115, %v84_v7   ;;  %v81_v14 = vld [vmem:[%s4829_s6 + $0x20] sm:$0xff] }
 0x127   :  { %2738 = vmatmul.msk.f32.gmra.mxu0 %vm121_vm3, %v2725_v41  ;;  %v2866_v41 = vld [vmem:[%s4828_s5 + $0x270] sm:$0xff] }
 0x128   :  { %2776 = vmatmul.msk.f32.gmra.mxu2 %vm121_vm3, %v2763_v42  ;;  %v2896_v42 = vld [vmem:[%s4828_s5 + $0x2f0] sm:$0xff] }
 0x129   :  { %2904 = vmatmul.msk.f32.gmra.mxu3 %vm121_vm3, %v2891_v15 }
 0x12c   :  { %2856 = vmatmul.msk.f32.gmra.mxu1 %vm121_vm3, %v2843_v18  ;;  %1132 = vperm.xlu2 %3115, %v81_v14  }
 0x12f   :  { %2739 = vmatmul.msk.f32.gmra.mxu0 %vm121_vm3, %v2726_v45  ;;  %v80_v45 = vld [vmem:[%s4829_s6 + $0x18] sm:$0xff] }
 0x130   :  { %2777 = vmatmul.msk.f32.gmra.mxu2 %vm121_vm3, %v2764_v46  ;;  %v3815_v46 = vpop.f32.mrf.mxu1  ;;  %1127 = vperm.xlu0 %3113, %v80_v45  }
 0x131   :  { %2905 = vmatmul.msk.f32.gmra.mxu3 %vm121_vm3, %v2892_v19  ;;  %v78_v19 = vld [vmem:[%s4829_s6 + $0x8] sm:$0xff] }
 0x134   :  { %2857 = vmatmul.msk.f32.gmra.mxu1 %vm121_vm3, %v2844_v23  ;;  %1117 = vperm.xlu2 %3115, %v78_v19   ;;  %v2922_v19 = vld [vmem:[%s4828_s5 + $0x358] sm:$0xff] }
 0x137   :  { %2740 = vmatmul.msk.f32.gmra.mxu0 %vm121_vm3, %v2727_v48  ;;  %v87_v48 = vld [vmem:[%s4829_s6 + $0x50] sm:$0xff] }
 0x138   :  { %2778 = vmatmul.msk.f32.gmra.mxu2 %vm121_vm3, %v2765_v49  ;;  %1162 = vperm.xlu1 %3114, %v87_v48  }
 0x139   :  { %2906 = vmatmul.msk.f32.gmra.mxu3 %vm121_vm3, %v2893_v24  ;;  %1112 = vperm.xlu0 %3113, %v77_v54   ;;  %v2914_v24 = vld [vmem:[%s4828_s5 + $0x318] sm:$0xff] }
 0x13c   :  { %2858 = vmatmul.msk.f32.gmra.mxu1 %vm121_vm3, %v2845_v28 }
 0x13f   :  { %2741 = vmatmul.msk.f32.gmra.mxu0 %vm121_vm3, %v2728_v52 }
 0x140   :  { %2779 = vmatmul.msk.f32.gmra.mxu2 %vm121_vm3, %v2766_v53  ;;  %v2820_v53 = vld [vmem:[%s4828_s5 + $0x1d0] sm:$0xff] }
 0x141   :  { %2907 = vmatmul.msk.f32.gmra.mxu3 %vm121_vm3, %v2894_v29 }
 0x144   :  { %2859 = vmatmul.msk.f32.gmra.mxu1 %vm121_vm3, %v2846_v35  ;;  %v2916_v35 = vld [vmem:[%s4828_s5 + $0x328] sm:$0xff] }
 0x147   :  { %2742 = vmatmul.msk.f32.gmra.mxu0 %vm121_vm3, %v2729_v56  ;;  %v85_v56 = vld [vmem:[%s4829_s6 + $0x40] sm:$0xff] }
 0x148   :  { %2780 = vmatmul.msk.f32.gmra.mxu2 %vm121_vm3, %v2767_v57  ;;  %1152 = vperm.xlu1 %3114, %v85_v56   ;;  %v3847_v57 = vpop.f32.mrf.mxu1 }
 0x149   :  { %2908 = vmatmul.msk.f32.gmra.mxu3 %vm121_vm3, %v2895_v36 }
 0x14f   :  { %2743 = vmatmul.msk.f32.gmra.mxu0 %vm121_vm3, %v2730_v60 }
 0x150   :  { %2781 = vmatmul.msk.f32.gmra.mxu2 %vm121_vm3, %v2768_v61  ;;  %v2821_v61 = vld [vmem:[%s4828_s5 + $0x1d8] sm:$0xff] }
 0x151   :  { %2909 = vmatmul.msk.f32.gmra.mxu3 %vm121_vm3, %v2896_v42  ;;  %v2917_v42 = vld [vmem:[%s4828_s5 + $0x330] sm:$0xff] }
 0x157   :  { %2823 = vmatmul.msk.f32.vlgmr.msrb.gmra.mxu0 %vm121_vm3, %v2810_v0  ;;  %v82_v0 = vld [vmem:[%s4829_s6 + $0x28] sm:$0xff] }
 0x158   :  { %2782 = vmatmul.msk.f32.gmra.mxu2 %vm121_vm3, %v2769_v1  ;;  %1137 = vperm.xlu1 %3114, %v82_v0   ;;  %v3871_v1 = vpop.f32.mrf.mxu1  ;;  %v2920_v0 = vld [vmem:[%s4828_s5 + $0x348] sm:$0xff] }
 0x159   :  { %2910 = vmatmul.msk.f32.gmra.mxu3 %vm121_vm3, %v2897_v50 }
 0x15f   :  { %2824 = vmatmul.msk.f32.gmra.mxu0 %vm121_vm3, %v2811_v4  ;;  %v2911_v4 = vld [vmem:[%s4828_s5 + $0x300] sm:$0xff] }
 0x160   :  { %2783 = vmatmul.msk.f32.gmra.mxu2 %vm121_vm3, %v2770_v5  ;;  %v3880_v5 = vpop.f32.mrf.mxu3 }
 0x167   :  { %2825 = vmatmul.msk.f32.gmra.mxu0 %vm121_vm3, %v2812_v8  ;;  %v79_v8 = vld [vmem:[%s4829_s6 + $0x10] sm:$0xff]  ;;  %s3298_s6 = smov 16  }
 0x168   :  { %2874 = vmatmul.msk.f32.vlgmr.msra.gmra.mxu2 %vm121_vm3, %v2860_v9  ;;  %1122 = vperm.xlu1 %3114, %v79_v8   ;;  %v3893_v9 = vpop.f32.mrf.mxu1  ;;  %v3908_v15 = vpop.f32.mrf.mxu3  ;;  %v2921_v8 = vld [vmem:[%s4828_s5 + $0x350] sm:$0xff] }
 0x16f   :  { %2826 = vmatmul.msk.f32.gmra.mxu0 %vm121_vm3, %v2813_v12  ;;  %v2912_v12 = vld [vmem:[%s4828_s5 + $0x308] sm:$0xff] }
 0x170   :  { %2875 = vmatmul.msk.f32.gmra.mxu2 %vm121_vm3, %v2861_v13  ;;  %v2871_v13 = vld [vmem:[%s4828_s5 + $0x298] sm:$0xff]  ;;  %v3917_v18 = vpop.f32.mrf.mxu1 }
 0x177   :  { %2827 = vmatmul.msk.f32.gmra.mxu0 %vm121_vm3, %v2814_v16 }
 0x178   :  { %2876 = vmatmul.msk.f32.gmra.mxu2 %vm121_vm3, %v2862_v17  ;;  %v2913_v17 = vld [vmem:[%s4828_s5 + $0x310] sm:$0xff] }
 0x17c   :  { %v3731_v20 = vpop.f32.mrf.mxu0 }
 0x17f   :  { %2828 = vmatmul.msk.f32.gmra.mxu0 %vm121_vm3, %v2815_v21 }
 0x180   :  { %2877 = vmatmul.msk.f32.gmra.mxu2 %vm121_vm3, %v2863_v22  ;;  %v3925_v22 = vpop.f32.mrf.mxu3 }
 0x183   :  { %v3788_v37 = vpop.f32.mrf.mxu2 }
 0x184   :  { %v3749_v25 = vpop.f32.mrf.mxu0 }
 0x187   :  { %2829 = vmatmul.msk.f32.gmra.mxu0 %vm121_vm3, %v2816_v26  ;;  %v3932_v26 = vpop.f32.mrf.mxu1 }
 0x188   :  { %2878 = vmatmul.msk.f32.gmra.mxu2 %vm121_vm3, %v2864_v27  ;;  %v3937_v28 = vpop.f32.mrf.mxu3 }
 0x189   :  { %4852 = vst [vmem:[#allocation14_spill] sm:$0xff] %v3937_v28  ;;  %v270_v28 = vadd.f32 %v3815_v46, %v3731_v20 }
 0x18b   :  { %v3823_v49 = vpop.f32.mrf.mxu2 }
 0x18c   :  { %v3767_v30 = vpop.f32.mrf.mxu0 }
 0x18f   :  { %2830 = vmatmul.msk.f32.gmra.mxu0 %vm121_vm3, %v2817_v31  ;;  %v2915_v31 = vld [vmem:[%s4828_s5 + $0x320] sm:$0xff]  ;;  %v3945_v32 = vpop.f32.mrf.mxu1 }
 0x190   :  { %2879 = vmatmul.msk.f32.gmra.mxu2 %vm121_vm3, %v2865_v33  ;;  %v3954_v36 = vpop.f32.mrf.mxu3 }
 0x191   :  { %4854 = vst [vmem:[#allocation16_spill] sm:$0xff] %v3954_v36 }
 0x193   :  { %v3850_v58 = vpop.f32.mrf.mxu2 }
 0x194   :  { %v3790_v38 = vpop.f32.mrf.mxu0 }
 0x197   :  { %2831 = vmatmul.msk.f32.gmra.mxu0 %vm121_vm3, %v2818_v39  ;;  %v3957_v39 = vpop.f32.mrf.mxu1 }
 0x198   :  { %2880 = vmatmul.msk.f32.gmra.mxu2 %vm121_vm3, %v2866_v41 }
 0x19b   :  { %v3873_v2 = vpop.f32.mrf.mxu2 }
 0x19c   :  { %v3807_v43 = vpop.f32.mrf.mxu0 }
 0x19f   :  { %2832 = vmatmul.msk.f32.gmra.mxu0 %vm121_vm3, %v2819_v44  ;;  %v3966_v44 = vpop.f32.mrf.mxu3  ;;  %v3974_v48 = vpop.f32.mrf.mxu1 }
 0x1a0   :  { %2881 = vmatmul.msk.f32.gmra.mxu2 %vm121_vm3, %v2867_v47  ;;  %4855 = vst [vmem:[#allocation17_spill] sm:$0xff] %v3966_v44  ;;  %v2918_v47 = vld [vmem:[%s4828_s5 + $0x338] sm:$0xff] }
 0x1a3   :  { %v3895_v10 = vpop.f32.mrf.mxu2 }
 0x1a4   :  { %v3833_v52 = vpop.f32.mrf.mxu0 }
 0x1a7   :  { %2833 = vmatmul.msk.f32.gmra.mxu0 %vm121_vm3, %v2820_v53  ;;  %v3979_v53 = vpop.f32.mrf.mxu3  ;;  %v3986_v56 = vpop.f32.mrf.mxu1 }
 0x1a8   :  { %2882 = vmatmul.msk.f32.gmra.mxu2 %vm121_vm3, %v2868_v55  ;;  %4856 = vst [vmem:[#allocation18_spill] sm:$0xff] %v3979_v53  ;;  %v2919_v55 = vld [vmem:[%s4828_s5 + $0x340] sm:$0xff]  ;;  %s3302_s5 = smov 9  }
 0x1ab   :  { %v3922_v21 = vpop.f32.mrf.mxu2 }
 0x1ac   :  { %v3855_v60 = vpop.f32.mrf.mxu0 }
 0x1af   :  { %2834 = vmatmul.msk.f32.gmra.mxu0 %vm121_vm3, %v2821_v61 }
 0x1b0   :  { %2883 = vmatmul.msk.f32.gmra.mxu2 %vm121_vm3, %v2869_v62  ;;  %v3991_v62 = vpop.f32.mrf.mxu3 }
 0x1b3   :  { %v3935_v27 = vpop.f32.mrf.mxu2 }
 0x1b4   :  { %v3875_v3 = vpop.f32.mrf.mxu0  ;;  %4851 = vst [vmem:[#allocation13_spill] sm:$0xff] %v3935_v27  ;;  %v273_v27 = vadd.f32 %v3847_v57, %v3749_v25  ;;  %v276_v25 = vadd.f32 %v3871_v1, %v3767_v30  ;;  %v279_v30 = vadd.f32 %v3893_v9, %v3790_v38  ;;  %v282_v38 = vadd.f32 %v3917_v18, %v3807_v43 }
 0x1b6   :  { %v415_v20 = vadd.f32 %v3850_v58, %v273_v27  ;;  %v416_v27 = vadd.f32 %v3873_v2, %v276_v25 }
 0x1b7   :  { %2924 = vmatmul.msk.f32.vlgmr.msra.gmra.mxu0 %vm121_vm3, %v2911_v4  ;;  %v3999_v4 = vpop.f32.mrf.mxu1 }
 0x1b8   :  { %2884 = vmatmul.msk.f32.gmra.mxu2 %vm121_vm3, %v2870_v6 }
 0x1bb   :  { %v3947_v33 = vpop.f32.mrf.mxu2 }
 0x1bc   :  { %v3897_v11 = vpop.f32.mrf.mxu0  ;;  %4853 = vst [vmem:[#allocation15_spill] sm:$0xff] %v3947_v33 }
 0x1bf   :  { %2925 = vmatmul.msk.f32.gmra.mxu0 %vm121_vm3, %v2912_v12  ;;  %v4008_v12 = vpop.f32.mrf.mxu3 }
 0x1c0   :  { %2885 = vmatmul.msk.f32.gmra.mxu2 %vm121_vm3, %v2871_v13  ;;  %v4011_v13 = vpop.f32.mrf.mxu1 }
 0x1c3   :  { %v3959_v40 = vpop.f32.mrf.mxu2 }
 0x1c4   :  { %v3912_v16 = vpop.f32.mrf.mxu0 }
 0x1c7   :  { %2926 = vmatmul.msk.f32.gmra.mxu0 %vm121_vm3, %v2913_v17 }
 0x1cb   :  { %v3976_v50 = vpop.f32.mrf.mxu2 }
 0x1cc   :  { %v3927_v23 = vpop.f32.mrf.mxu0 }
 0x1cf   :  { %2927 = vmatmul.msk.f32.gmra.mxu0 %vm121_vm3, %v2914_v24  ;;  %v4020_v24 = vpop.f32.mrf.mxu3 }
 0x1d0   :  { %4860 = vst [vmem:[#allocation22_spill] sm:$0xff] %v4020_v24  ;;  %v414_v24 = vadd.f32 %v3823_v49, %v270_v28  ;;  %v529_v49 = vadd.f32 %v3853_v59, %v415_v20  ;;  %v530_v59 = vadd.f32 %v3880_v5, %v416_v27 }
 0x1d3   :  { %v3989_v61 = vpop.f32.mrf.mxu2 }
 0x1d4   :  { %v3939_v29 = vpop.f32.mrf.mxu0 }
 0x1d7   :  { %2928 = vmatmul.msk.f32.gmra.mxu0 %vm121_vm3, %v2915_v31  ;;  %v720_v31 = vpop.f32.mrf.mxu1 }
 0x1db   :  { %v4001_v6 = vpop.f32.mrf.mxu2 }
 0x1dc   :  { %v3949_v34 = vpop.f32.mrf.mxu0 }
 0x1df   :  { %2929 = vmatmul.msk.f32.gmra.mxu0 %vm121_vm3, %v2916_v35 }
 0x1e3   :  { %v4013_v14 = vpop.f32.mrf.mxu2 }
 0x1e4   :  { %v3961_v41 = vpop.f32.mrf.mxu0 }
 0x1e5   :  { %v644_v1 = vadd.f32 %v3961_v41, %v530_v59 }
 0x1e7   :  { %2930 = vmatmul.msk.f32.gmra.mxu0 %vm121_vm3, %v2917_v42 }
 0x1eb   :  { %v834_v42 = vpop.f32.mrf.mxu2 }
 0x1ec   :  { %v3969_v45 = vpop.f32.mrf.mxu0 }
 0x1ef   :  { %2931 = vmatmul.msk.f32.gmra.mxu0 %vm121_vm3, %v2918_v47  ;;  %v948_v47 = vpop.f32.mrf.mxu3 }
 0x1f4   :  { %v3981_v54 = vpop.f32.mrf.mxu0 }
 0x1f7   :  { %2932 = vmatmul.msk.f32.gmra.mxu0 %vm121_vm3, %v2919_v55  ;;  %v4025_v55 = vpop.permute.xlu0 %1167 }
 0x1f8   :  { %4862 = vst [vmem:[#allocation24_spill] sm:$0xff] %v4025_v55 }
 0x1fc   :  { %v3993_v63 = vpop.f32.mrf.mxu0 }
 0x1fd   :  { %4857 = vst [vmem:[#allocation19_spill] sm:$0xff] %v3993_v63  ;;  %v4029_v63 = vpop.permute.xlu2 %1157 }
 0x1fe   :  { %4864 = vst [vmem:[#allocation26_spill] sm:$0xff] %v4029_v63  ;;  %v528_v63 = vadd.f32 %v3830_v51, %v414_v24  ;;  %v643_v51 = vadd.f32 %v3949_v34, %v529_v49 }
 0x1ff   :  { %2933 = vmatmul.msk.f32.gmra.mxu0 %vm121_vm3, %v2920_v0 }
 0x200   :  { %v642_v46 = vadd.f32 %v3939_v29, %v528_v63 }
 0x202   :  { %v756_v28 = vadd.f32 %v720_v31, %v642_v46 }
 0x204   :  { %v4003_v7 = vpop.f32.mrf.mxu0  ;;  %v870_v57 = vadd.f32 %v834_v42, %v756_v28  ;;  %v417_v42 = vadd.f32 %v3895_v10, %v279_v30 }
 0x205   :  { %4858 = vst [vmem:[#allocation20_spill] sm:$0xff] %v4003_v7  ;;  %v837_v7 = vpop.f32.mrf.mxu2  ;;  %v4040_v55 = vpop.permute.xlu2 %1147 }
 0x206   :  { %4867 = vst [vmem:[#allocation29_spill] sm:$0xff] %v4040_v55 }
 0x207   :  { %2934 = vmatmul.msk.f32.gmra.mxu0 %vm121_vm3, %v2921_v8  ;;  %v723_v8 = vpop.f32.mrf.mxu1 }
 0x208   :  { %v757_v55 = vadd.f32 %v723_v8, %v643_v51 }
 0x20a   :  { %v871_v31 = vadd.f32 %v837_v7, %v757_v55 }
 0x20c   :  { %v4015_v17 = vpop.f32.mrf.mxu0 }
 0x20d   :  { %4859 = vst [vmem:[#allocation21_spill] sm:$0xff] %v4015_v17  ;;  %v951_v17 = vpop.f32.mrf.mxu3  ;;  %v4057_v58 = vpop.permute.xlu2 %1132 }
 0x20e   :  { %v985_v2 = vadd.f32 %v951_v17, %v871_v31  ;;  %v418_v17 = vadd.f32 %v3922_v21, %v282_v38 }
 0x20f   :  { %2935 = vmatmul.msk.f32.gmra.mxu0 %vm121_vm3, %v2922_v19  ;;  %v4035_v19 = vpop.permute.xlu0 %1142  ;;  %v726_v44 = vpop.f32.mrf.mxu1  ;;  %vm2230_vm3 = vcmask 1044480  }
 0x210   :  { %4865 = vst [vmem:[#allocation27_spill] sm:$0xff] %v4035_v19  ;;  %v758_v25 = vadd.f32 %v726_v44, %v644_v1  ;;  %v532_v43 = vadd.f32 %v3925_v22, %v418_v17 }
 0x212   :  { %v646_v21 = vadd.f32 %v3981_v54, %v532_v43 }
 0x214   :  { %v4023_v35 = vpop.f32.mrf.mxu0 }
 0x215   :  { %4861 = vst [vmem:[#allocation23_spill] sm:$0xff] %v4023_v35  ;;  %v4038_v35 = vpop.permute.xlu1 %1162  ;;  %v954_v19 = vpop.f32.mrf.mxu3 }
 0x216   :  { %4866 = vst [vmem:[#allocation28_spill] sm:$0xff] %v4038_v35 }
 0x217   :  { %v4049_v33 = vpop.permute.xlu0 %1127  ;;  %v729_v24 = vpop.f32.mrf.mxu1 }
 0x21c   :  { %v4027_v0 = vpop.f32.mrf.mxu0 }
 0x21d   :  { %4863 = vst [vmem:[#allocation25_spill] sm:$0xff] %v4027_v0  ;;  %v840_v0 = vpop.f32.mrf.mxu2  ;;  %v4052_v35 = vpop.permute.xlu1 %1152 }
 0x21e   :  { %4869 = vst [vmem:[#allocation31_spill] sm:$0xff] %v4052_v35  ;;  %v957_v46 = vpop.f32.mrf.mxu3  ;;  %v872_v55 = vadd.f32 %v840_v0, %v758_v25 }
 0x21f   :  { %v1113_v35 = vpop.permute.xlu0 %1112  ;;  %v732_v49 = vpop.f32.mrf.mxu1 }
 0x224   :  { %v4033_v36 = vpop.f32.mrf.mxu0 }
 0x225   :  { %v843_v29 = vpop.f32.mrf.mxu2  ;;  %v4064_v34 = vpop.permute.xlu1 %1137 }
 0x226   :  { %v960_v10 = vpop.f32.mrf.mxu3 }
 0x22c   :  { %v4047_v53 = vpop.f32.mrf.mxu0 }
 0x22d   :  { %4868 = vst [vmem:[#allocation30_spill] sm:$0xff] %v4047_v53  ;;  %v984_v53 = vadd.f32 %v948_v47, %v870_v57  ;;  %v1118_v47 = vpop.permute.xlu2 %1117  ;;  %v846_v7 = vpop.f32.mrf.mxu2 }
 0x22e   :  { %v1123_v59 = vpop.permute.xlu1 %1122 }
 0x234   :  { %v1062_v63 = vpop.f32.mrf.mxu0 }
 0x235   :  { %v1098_v20 = vadd.f32 %v1062_v63, %v984_v53  ;;  %v531_v53 = vadd.f32 %v3908_v15, %v417_v42  ;;  %v4078_v1 = vpop.f32.mrf.mxu2 }
 0x237   :  { %v1170_v28 = vadd.f32 %v1113_v35, %v1098_v20  ;;  %v645_v9 = vadd.f32 %v3969_v45, %v531_v53  ;;  %v986_v35 = vadd.f32 %v954_v19, %v872_v55  ;;  %v4073_v20 = vpop.f32.mrf.mxu1 }
 0x239   :  { %v1182_v51 = vmax.f32 %v1170_v28, 0.0  ;;  %v759_v31 = vadd.f32 %v729_v24, %v645_v9  ;;  %v4081_v28 = vpop.f32.mrf.mxu3 }
 0x23b   :  { %v1207_v27 = vrot.slane %v1182_v51, 1  ;;  %v873_v18 = vadd.f32 %v843_v29, %v759_v31 }
 0x23c   :  { %v1065_v8 = vpop.f32.mrf.mxu0 }
 0x23d   :  { %v1099_v5 = vadd.f32 %v1065_v8, %v985_v2  ;;  %v987_v42 = vadd.f32 %v957_v46, %v873_v18  ;;  %v760_v8 = vadd.f32 %v732_v49, %v646_v21  ;;  %v300_v21 = vadd.f32 %v3999_v4, %v3927_v23 }
 0x23f   :  { %v1171_v57 = vadd.f32 %v1118_v47, %v1099_v5  ;;  %v874_v53 = vadd.f32 %v846_v7, %v760_v8  ;;  %v4087_v29 = vpop.f32.mrf.mxu1  ;;  %v294_v8 = vadd.f32 %v3974_v48, %v3897_v11 }
 0x241   :  { %v1183_v41 = vmax.f32 %v1171_v57, 0.0  ;;  %v988_v54 = vadd.f32 %v960_v10, %v874_v53  ;;  %v4092_v49 = vpop.f32.mrf.mxu3  ;;  %v422_v53 = vadd.f32 %v3976_v50, %v294_v8  ;;  %v4870_v50 = vld [vmem:[#allocation15_spill] sm:$0xff]  ;;  %v4879_v8 = vld [vmem:[#allocation30_spill] sm:$0xff] }
 0x243   :  { %v1208_v44 = vrot.slane %v1183_v41, 1 }
 0x244   :  { %v1068_v63 = vpop.f32.mrf.mxu0 }
 0x245   :  { %v1100_v15 = vadd.f32 %v1068_v63, %v986_v35  ;;  %v1209_v0 = vsel %vm1206_vm4, %v1207_v27, %v1208_v44 }
 0x246   :  { %v4075_v30 = vmax.f32 %v1182_v51, %v1209_v0  ;;  %v4089_v51 = vpop.f32.mrf.mxu2 }
 0x247   :  { %v1172_v45 = vadd.f32 %v1123_v59, %v1100_v15  ;;  %v741_v7 = vpop.f32.mrf.mxu1 }
 0x249   :  { %v1184_v19 = vmax.f32 %v1172_v45, 0.0  ;;  %v4110_v59 = vpop.f32.mrf.mxu3 }
 0x24b   :  { %v1210_v2 = vrot.slane %v1184_v19, 1 }
 0x24c   :  { %v1071_v24 = vpop.f32.mrf.mxu0 }
 0x24d   :  { %v1101_v47 = vadd.f32 %v1071_v24, %v987_v42  ;;  %v1211_v25 = vsel %vm1206_vm4, %v1208_v44, %v1210_v2  ;;  %v424_v42 = vadd.f32 %v4001_v6, %v300_v21 }
 0x24e   :  { %v4084_v5 = vmax.f32 %v1183_v41, %v1211_v25  ;;  %v855_v10 = vpop.f32.mrf.mxu2  ;;  %v291_v25 = vadd.f32 %v3957_v39, %v3875_v3  ;;  %v285_v39 = vadd.f32 %v3932_v26, %v3833_v52  ;;  %v4878_v52 = vld [vmem:[#allocation21_spill] sm:$0xff] }
 0x24f   :  { %v1173_v22 = vadd.f32 %v4049_v33, %v1101_v47  ;;  %v744_v31 = vpop.f32.mrf.mxu1 }
 0x250   :  { %v421_v4 = vadd.f32 %v3959_v40, %v291_v25  ;;  %v4874_v40 = vld [vmem:[#allocation17_spill] sm:$0xff]  ;;  %v4880_v25 = vld [vmem:[#allocation14_spill] sm:$0xff] }
 0x251   :  { %v1185_v55 = vmax.f32 %v1173_v22, 0.0  ;;  %v972_v0 = vpop.f32.mrf.mxu3  ;;  %v538_v22 = vadd.f32 %v4008_v12, %v424_v42  ;;  %v4871_v12 = vld [vmem:[#allocation18_spill] sm:$0xff] }
 0x253   :  { %v1212_v46 = vrot.slane %v1185_v55, 1  ;;  %v652_v48 = vadd.f32 %v4033_v36, %v538_v22  ;;  %v4881_v22 = vld [vmem:[#allocation20_spill] sm:$0xff] }
 0x254   :  { %v1074_v57 = vpop.f32.mrf.mxu0 }
 0x255   :  { %v1102_v38 = vadd.f32 %v1074_v57, %v988_v54  ;;  %v1213_v9 = vsel %vm1206_vm4, %v1210_v2, %v1212_v46 }
 0x256   :  { %v4094_v17 = vmax.f32 %v1184_v19, %v1213_v9  ;;  %v858_v15 = vpop.f32.mrf.mxu2  ;;  %v297_v19 = vadd.f32 %v3986_v56, %v3912_v16  ;;  %v303_v16 = vadd.f32 %v4011_v13, %v3788_v37  ;;  %v288_v56 = vadd.f32 %v3945_v32, %v3855_v60  ;;  %v4872_v37 = vld [vmem:[#allocation25_spill] sm:$0xff]  ;;  %v4876_v9 = vld [vmem:[#allocation22_spill] sm:$0xff] }
 0x257   :  { %v4097_v41 = vadd.f32 %v4057_v58, %v1102_v38  ;;  %v747_v18 = vpop.f32.mrf.mxu1  ;;  %v4873_v60 = vld [vmem:[#allocation13_spill] sm:$0xff] }
 0x258   :  { %v423_v47 = vadd.f32 %v3989_v61, %v297_v19  ;;  %v425_v3 = vadd.f32 %v4013_v14, %v303_v16  ;;  %v420_v6 = vadd.f32 %v4870_v50, %v288_v56  ;;  %v419_v32 = vadd.f32 %v4873_v60, %v285_v39  ;;  %v4882_v39 = vld [vmem:[#allocation19_spill] sm:$0xff] }
 0x259   :  { %v1186_v33 = vmax.f32 %v4097_v41, 0.0  ;;  %v975_v2 = vpop.f32.mrf.mxu3 }
 0x25a   :  { %v537_v11 = vadd.f32 %v3991_v62, %v423_v47  ;;  %v4875_v62 = vld [vmem:[#allocation23_spill] sm:$0xff]  ;;  %v539_v14 = vadd.f32 %v4876_v9, %v425_v3 }
 0x25b   :  { %v4102_v35 = vrot.slane %v1186_v33, 1 }
 0x25c   :  { %v4104_v27 = vpop.f32.mrf.mxu0  ;;  %v651_v13 = vadd.f32 %v4872_v37, %v537_v11  ;;  %v653_v47 = vadd.f32 %v4879_v8, %v539_v14 }
 0x25d   :  { %v1215_v44 = vsel %vm1206_vm4, %v1212_v46, %v4102_v35  ;;  %v535_v46 = vadd.f32 %v4874_v40, %v421_v4 }
 0x25e   :  { %v4108_v63 = vmax.f32 %v1185_v55, %v1215_v44  ;;  %v861_v45 = vpop.f32.mrf.mxu2  ;;  %v536_v55 = vadd.f32 %v4871_v12, %v422_v53  ;;  %v4877_v44 = vld [vmem:[#allocation16_spill] sm:$0xff]  ;;  %v765_v19 = vadd.f32 %v747_v18, %v651_v13  ;;  %v533_v53 = vadd.f32 %v4880_v25, %v419_v32 }
 0x25f   :  { %v750_v23 = vpop.f32.mrf.mxu1  ;;  %v534_v21 = vadd.f32 %v4877_v44, %v420_v6  ;;  %v649_v26 = vadd.f32 %v4878_v52, %v535_v46  ;;  %v4887_v52 = vld [vmem:[#allocation29_spill] sm:$0xff] }
 0x260   :  { %v650_v57 = vadd.f32 %v4875_v62, %v536_v55  ;;  %v766_v36 = vadd.f32 %v750_v23, %v652_v48  ;;  %v879_v11 = vadd.f32 %v861_v45, %v765_v19  ;;  %v647_v23 = vadd.f32 %v4882_v39, %v533_v53 }
 0x261   :  { %v978_v38 = vpop.f32.mrf.mxu3  ;;  %v648_v16 = vadd.f32 %v4881_v22, %v534_v21  ;;  %v763_v48 = vadd.f32 %v741_v7, %v649_v26 }
 0x262   :  { %v764_v56 = vadd.f32 %v744_v31, %v650_v57  ;;  %v993_v37 = vadd.f32 %v975_v2, %v879_v11  ;;  %v761_v32 = vadd.f32 %v4073_v20, %v647_v23  ;;  %v4883_v57 = vld [vmem:[#allocation28_spill] sm:$0xff]  ;;  %v4884_v2 = vld [vmem:[#allocation26_spill] sm:$0xff] }
 0x263   :  { %v762_v18 = vadd.f32 %v4087_v29, %v648_v16 }
 0x264   :  { %v4112_v58 = vpop.f32.mrf.mxu0  ;;  %v878_v50 = vadd.f32 %v858_v15, %v764_v56  ;;  %v875_v7 = vadd.f32 %v4078_v1, %v761_v32 }
 0x265   :  { %v876_v31 = vadd.f32 %v4089_v51, %v762_v18  ;;  %v1254_v18 = vlaneseq }
 0x266   :  { %v864_v61 = vpop.f32.mrf.mxu2  ;;  %v992_v40 = vadd.f32 %v972_v0, %v878_v50  ;;  %v989_v51 = vadd.f32 %v4081_v28, %v875_v7 }
 0x267   :  { %v880_v42 = vadd.f32 %v864_v61, %v766_v36  ;;  %v753_v4 = vpop.f32.mrf.mxu1  ;;  %v877_v61 = vadd.f32 %v855_v10, %v763_v48  ;;  %v990_v29 = vadd.f32 %v4092_v49, %v876_v31  ;;  %v1255_v32 = vshrl.u32 %v1254_v18, 7 }
 0x268   :  { %v767_v55 = vadd.f32 %v753_v4, %v653_v47  ;;  %v1103_v21 = vadd.f32 %v4104_v27, %v989_v51 }
 0x269   :  { %v994_v3 = vadd.f32 %v978_v38, %v880_v42  ;;  %v981_v45 = vpop.f32.mrf.mxu3  ;;  %v991_v15 = vadd.f32 %v4110_v59, %v877_v61  ;;  %v1104_v0 = vadd.f32 %v4112_v58, %v990_v29  ;;  %v4886_v59 = vld [vmem:[#allocation24_spill] sm:$0xff]  ;;  %v1256_v7 = vadd.s32 8, %v1255_v32 }
 0x26a   :  { %v1175_v28 = vadd.f32 %v4064_v34, %v1103_v21  ;;  %v1260_v29 = vadd.s32 40, %v1255_v32  ;;  %v3293_v21 = vmov 1.0  }
 0x26b   :  { %v1264_v41 = vmul.u32 2, %v1256_v7 }
 0x26c   :  { %v4114_v43 = vpop.f32.mrf.mxu0  ;;  %v1187_v39 = vmax.f32 %v1175_v28, 0.0 }
 0x26d   :  { %v1105_v10 = vadd.f32 %v4114_v43, %v991_v15  ;;  %v4888_v43 = vld [vmem:[#allocation27_spill] sm:$0xff] }
 0x26e   :  { %v867_v12 = vpop.f32.mrf.mxu2  ;;  %v1176_v42 = vadd.f32 %v4888_v43, %v1104_v0 }
 0x26f   :  { %v881_v60 = vadd.f32 %v867_v12, %v767_v55  ;;  %v1177_v26 = vadd.f32 %v4887_v52, %v1105_v10 }
 0x270   :  { %v1188_v56 = vmax.f32 %v1176_v42, 0.0 }
 0x271   :  { %v995_v38 = vadd.f32 %v981_v45, %v881_v60  ;;  %v1189_v53 = vmax.f32 %v1177_v26, 0.0  ;;  %v4179_v45 = vand.u32 127, %v1254_v18 }
 0x273   :  { %v1220_v23 = vrot.slane %v1189_v53, 1  ;;  %vm1270_vm7 = vcmp.eq.s32.totalorder %v4179_v45, %v1264_v41 }
 0x274   :  { %v1086_v24 = vpop.f32.mrf.mxu0 }
 0x275   :  { %v1106_v62 = vadd.f32 %v1086_v24, %v992_v40 }
 0x27c   :  { %v1089_v54 = vpop.f32.mrf.mxu0 }
 0x27d   :  { %v1107_v46 = vadd.f32 %v1089_v54, %v993_v37  ;;  %v4885_v54 = vld [vmem:[#allocation31_spill] sm:$0xff] }
 0x27e   :  { %v1178_v1 = vadd.f32 %v4885_v54, %v1106_v62 }
 0x27f   :  { %v1179_v9 = vadd.f32 %v4884_v2, %v1107_v46  ;;  %v1263_v46 = vmul.u32 2, %v1255_v32  ;;  %v1268_v2 = vmul.u32 2, %v1260_v29  ;;  %v1474_v29 = vld [vmem:[%s4830_s7] sm:$0xff] }
 0x280   :  { %v1190_v8 = vmax.f32 %v1178_v1, 0.0 }
 0x281   :  { %v1191_v49 = vmax.f32 %v1179_v9, 0.0  ;;  %vm1269_vm5 = vcmp.eq.s32.totalorder %v4179_v45, %v1263_v46  ;;  %vm1274_vm11 = vcmp.eq.s32.totalorder %v4179_v45, %v1268_v2 }
 0x282   :  { %v1222_v4 = vrot.slane %v1190_v8, 1 }
 0x283   :  { %v1224_v58 = vrot.slane %v1191_v49, 1 }
 0x284   :  { %v1092_v6 = vpop.f32.mrf.mxu0  ;;  %v1223_v34 = vsel %vm1206_vm4, %v1220_v23, %v1222_v4 }
 0x285   :  { %v1108_v13 = vadd.f32 %v1092_v6, %v994_v3  ;;  %v1225_v48 = vsel %vm1206_vm4, %v1222_v4, %v1224_v58  ;;  %v1218_v3 = vrot.slane %v1188_v56, 1  ;;  %v1216_v6 = vrot.slane %v1187_v39, 1 }
 0x286   :  { %v1250_v12 = vmax.f32 %v1190_v8, %v1225_v48  ;;  %v1249_v61 = vmax.f32 %v1189_v53, %v1223_v34 }
 0x287   :  { %v1180_v36 = vadd.f32 %v4883_v57, %v1108_v13  ;;  %v1221_v55 = vsel %vm1206_vm4, %v1218_v3, %v1220_v23  ;;  %v1219_v37 = vsel %vm1206_vm4, %v1216_v6, %v1218_v3  ;;  %v1217_v60 = vsel %vm1206_vm4, %v4102_v35, %v1216_v6 }
 0x288   :  { %v1248_v13 = vmax.f32 %v1188_v56, %v1221_v55  ;;  %v1247_v31 = vmax.f32 %v1187_v39, %v1219_v37  ;;  %v1246_v40 = vmax.f32 %v1186_v33, %v1217_v60  ;;  %v3292_v35 = vmov 0.0  }
 0x289   :  { %v1192_v44 = vmax.f32 %v1180_v36, 0.0  ;;  %v4186_v15 = vsel %vm1269_vm5, 1.0, %v3292_v35  ;;  %v1257_v33 = vadd.s32 16, %v1255_v32  ;;  %v1259_v57 = vadd.s32 32, %v1255_v32 }
 0x28a   :  { %v1280_v9 = vsel %vm1274_vm11, 1.0, %v3292_v35  ;;  %vm2272_vm5 = vcmask 998400  }
 0x28b   :  { %v1226_v47 = vrot.slane %v1192_v44, 1 }
 0x28c   :  { %v1095_v20 = vpop.f32.mrf.mxu0 }
 0x28d   :  { %v1109_v14 = vadd.f32 %v1095_v20, %v995_v38  ;;  %v1227_v27 = vsel %vm1206_vm4, %v1224_v58, %v1226_v47  ;;  %v1267_v38 = vmul.u32 2, %v1259_v57  ;;  %v1470_v57 = vld [vmem:[%s4831_s8 + $0x10] sm:$0xff] }
 0x28e   :  { %v1251_v50 = vmax.f32 %v1191_v49, %v1227_v27 }
 0x28f   :  { %v1181_v24 = vadd.f32 %v4886_v59, %v1109_v14  ;;  %vm1273_vm10 = vcmp.eq.s32.totalorder %v4179_v45, %v1267_v38  ;;  %v1469_v38 = vld [vmem:[%s4831_s8 + $0x8] sm:$0xff] }
 0x290   :  { %v1279_v10 = vsel %vm1273_vm10, 1.0, %v3292_v35 }
 0x291   :  { %v1193_v19 = vmax.f32 %v1181_v24, 0.0  ;;  %v2287_v24 = vld [vmem:[%s4832_s9 + $0x68] sm:$0xff] }
 0x293   :  { %v1228_v25 = vrot.slane %v1193_v19, 1 }
 0x295   :  { %v1253_v22 = vmax.f32 %v1193_v19, %v1228_v25  ;;  %v1229_v16 = vsel %vm1206_vm4, %v1226_v47, %v1228_v25 }
 0x296   :  { %v1252_v11 = vmax.f32 %v1192_v44, %v1229_v16  ;;  %v1368_v44 = vmul.u32 2, %v4179_v45 }
 0x297   :  { %2936 = vmatpush.msk.msra.mxu1 %vm1206_vm4, %v1253_v22 }
 0x298   :  { %vm1370_vm13 = vcmp.eq.s32.totalorder %v1256_v7, %v1368_v44  ;;  %vm4220_vm14 = vcmp.eq.s32.totalorder %v1255_v32, %v1368_v44 }
 0x299   :  { %1308 = vmatpush.msra.mxu1 %v1252_v11  ;;  %v1372_v59 = vsel %vm1370_vm13, 1.0, %v3292_v35  ;;  %vm2548_vm13 = vcmask 130048  }
 0x29a   :  { %2943 = vmatpush.msk.msrb.mxu2 %vm1392_vm12, %v1372_v59 }
 0x29b   :  { %1309 = vmatpush.msra.mxu1 %v1251_v50 }
 0x29c   :  { %2944 = vmatpush.msk.msrb.mxu2 %vm4220_vm14, %v3293_v21 }
 0x29d   :  { %1310 = vmatpush.msra.mxu1 %v1250_v12 }
 0x29f   :  { %1311 = vmatpush.msra.mxu1 %v1249_v61 }
 0x2a1   :  { %1312 = vmatpush.msra.mxu1 %v1248_v13 }
 0x2a3   :  { %1313 = vmatpush.msra.mxu1 %v1247_v31 }
 0x2a5   :  { %1314 = vmatpush.msra.mxu1 %v1246_v40 }
 0x2a7   :  { %1315 = vmatpush.msra.mxu1 %v4108_v63  ;;  %v4193_v63 = vsel %vm1270_vm7, 1.0, %v3292_v35  ;;  %vm2458_vm7 = vcmask 261120  }
 0x2a9   :  { %1316 = vmatpush.msra.mxu1 %v4094_v17  ;;  %v1265_v17 = vmul.u32 2, %v1257_v33 }
 0x2ab   :  { %1317 = vmatpush.msra.mxu1 %v4084_v5  ;;  %vm1271_vm8 = vcmp.eq.s32.totalorder %v4179_v45, %v1265_v17  ;;  %v1258_v5 = vadd.s32 24, %v1255_v32  ;;  %v1471_v17 = vld [vmem:[%s4831_s8 + $0x18] sm:$0xff] }
 0x2ac   :  { %v4199_v62 = vsel %vm1271_vm8, 1.0, %v3292_v35  ;;  %vm2377_vm8 = vcmask 523264  }
 0x2ad   :  { %1318 = vmatpush.msra.mxu1 %v4075_v30  ;;  %v1266_v30 = vmul.u32 2, %v1258_v5  ;;  %v1473_v5 = vld [vmem:[%s4831_s8 + $0x28] sm:$0xff] }
 0x2ae   :  { %2937 = vmatmul.msk.f32.vlgmr.msra.gmra.mxu1 %vm1281_vm6, %v4186_v15 }
 0x2af   :  { %vm1272_vm9 = vcmp.eq.s32.totalorder %v4179_v45, %v1266_v30  ;;  %v1468_v30 = vld [vmem:[%s4831_s8] sm:$0xff] }
 0x2b0   :  { %v1278_v36 = vsel %vm1272_vm9, 1.0, %v3292_v35 }
 0x2b6   :  { %2938 = vmatmul.msk.f32.gmra.mxu1 %vm1281_vm6, %v4193_v63 }
 0x2be   :  { %2939 = vmatmul.msk.f32.gmra.mxu1 %vm1281_vm6, %v4199_v62 }
 0x2c6   :  { %2940 = vmatmul.msk.f32.gmra.mxu1 %vm1281_vm6, %v1278_v36  ;;  %v1472_v36 = vld [vmem:[%s4831_s8 + $0x20] sm:$0xff]  ;;  %s3295_s8 = smov 32  }
 0x2ce   :  { %2941 = vmatmul.msk.f32.gmra.mxu1 %vm1281_vm6, %v1279_v10  ;;  %v1475_v10 = vld [vmem:[%s4830_s7 + $0x8] sm:$0xff] }
 0x2d6   :  { %2942 = vmatmul.msk.f32.gmra.mxu1 %vm1281_vm6, %v1280_v9  ;;  %vm2307_vm6 = vcmask 1022976  }
 0x32b   :  { %v1320_v20 = vpop.f32.mrf.mxu1 }
 0x32c   :  { %1344 = vrot.lane.b32.xlu1 %v1320_v20, %s3290_s26 }
 0x333   :  { %v1323_v14 = vpop.f32.mrf.mxu1 }
 0x334   :  { %1346 = vrot.lane.b32.xlu2 %v1323_v14, %s3290_s26 }
 0x33b   :  { %v1326_v51 = vpop.f32.mrf.mxu1 }
 0x33c   :  { %1348 = vrot.lane.b32.xlu0 %v1326_v51, %s3290_s26 }
 0x343   :  { %v1329_v0 = vpop.f32.mrf.mxu1 }
 0x344   :  { %1350 = vrot.lane.b32.xlu1 %v1329_v0, %s3290_s26 }
 0x34b   :  { %v1332_v54 = vpop.f32.mrf.mxu1 }
 0x34c   :  { %1352 = vrot.lane.b32.xlu2 %v1332_v54, %s3290_s26 }
 0x353   :  { %v1335_v1 = vpop.f32.mrf.mxu1 }
 0x354   :  { %1354 = vrot.lane.b32.xlu0 %v1335_v1, %s3290_s26 }
 0x38e   :  { %v1347_v49 = vpop.permute.xlu2 %1346 }
 0x38f   :  { %v1363_v19 = vmax.f32 %v1323_v14, %v1347_v49 }
 0x39e   :  { %v1345_v52 = vpop.permute.xlu1 %1344 }
 0x39f   :  { %v1362_v26 = vmax.f32 %v1320_v20, %v1345_v52 }
 0x3a1   :  { %2945 = vmatmul.msk.f32.vlgmr.msrb.gmra.mxu2 %vm1373_vm15, %v1362_v26 }
 0x3a6   :  { %v1353_v25 = vpop.permute.xlu2 %1352 }
 0x3a7   :  { %v1366_v28 = vmax.f32 %v1332_v54, %v1353_v25  ;;  %v1476_v54 = vld [vmem:[%s4830_s7 + $0x10] sm:$0xff] }
 0x3a9   :  { %2946 = vmatmul.msk.f32.gmra.mxu2 %vm1373_vm15, %v1363_v19  ;;  %v2951_v19 = vld [vmem:[%s4830_s7 + $0x30] sm:$0xff] }
 0x3ae   :  { %v1349_v43 = vpop.permute.xlu0 %1348 }
 0x3af   :  { %v1364_v42 = vmax.f32 %v1326_v51, %v1349_v43 }
 0x3b1   :  { %2947 = vmatmul.msk.f32.gmra.mxu2 %vm1373_vm15, %v1364_v42 }
 0x3b6   :  { %v1351_v8 = vpop.permute.xlu1 %1350 }
 0x3b7   :  { %v1365_v47 = vmax.f32 %v1329_v0, %v1351_v8 }
 0x3b9   :  { %2948 = vmatmul.msk.f32.gmra.mxu2 %vm1373_vm15, %v1365_v47 }
 0x3c1   :  { %2949 = vmatmul.msk.f32.gmra.mxu2 %vm1373_vm15, %v1366_v28  ;;  %v2952_v28 = vld [vmem:[%s4830_s7 + $0x38] sm:$0xff] }
 0x3c6   :  { %v1355_v53 = vpop.permute.xlu0 %1354 }
 0x3c7   :  { %v1367_v58 = vmax.f32 %v1335_v1, %v1355_v53  ;;  %v2975_v53 = vld [vmem:[%s4830_s7 + $0x60] sm:$0xff] }
 0x3c9   :  { %2950 = vmatmul.msk.f32.gmra.mxu2 %vm1373_vm15, %v1367_v58  ;;  %v1477_v58 = vld [vmem:[%s4830_s7 + $0x18] sm:$0xff]  ;;  %vm2618_vm15 = vcmask 172128  }
 0x424   :  { %v1413_v22 = vpop.f32.mrf.mxu2 }
 0x42c   :  { %v1416_v16 = vpop.f32.mrf.mxu2 }
 0x434   :  { %v1419_v56 = vpop.f32.mrf.mxu2 }
 0x43c   :  { %v1422_v4 = vpop.f32.mrf.mxu2 }
 0x43d   :  { %1443 = vrot.lane.b32.xlu0 %v1422_v4, %s3288_s24  ;;  %v2954_v4 = vld [vmem:[%s4830_s7 + $0x48] sm:$0xff] }
 0x444   :  { %v1425_v11 = vpop.f32.mrf.mxu2 }
 0x445   :  { %1445 = vrot.lane.b32.xlu2 %v1425_v11, %s3288_s24  ;;  %1437 = vrot.lane.b32.xlu0 %v1413_v22, %s3288_s24  ;;  %v2953_v22 = vld [vmem:[%s4830_s7 + $0x40] sm:$0xff]  ;;  %v2977_v11 = vld [vmem:[%s4830_s7 + $0x70] sm:$0xff] }
 0x44c   :  { %v1428_v27 = vpop.f32.mrf.mxu2 }
 0x44d   :  { %1439 = vrot.lane.b32.xlu2 %v1416_v16, %s3288_s24  ;;  %1447 = vrot.lane.b32.xlu1 %v1428_v27, %s3288_s24  ;;  %v2976_v16 = vld [vmem:[%s4830_s7 + $0x68] sm:$0xff]  ;;  %v3005_v27 = vld [vmem:[%s4830_s7 + $0xc0] sm:$0xff] }
 0x455   :  { %1441 = vrot.lane.b32.xlu1 %v1419_v56, %s3288_s24  ;;  %v1478_v56 = vld [vmem:[%s4830_s7 + $0x20] sm:$0xff] }
 0x49f   :  { %v1446_v39 = vpop.permute.xlu2 %1445 }
 0x4a0   :  { %v4250_v18 = vsel %vm71_vm0, 0.0, %v1446_v39  ;;  %v1479_v39 = vld [vmem:[%s4830_s7 + $0x28] sm:$0xff] }
 0x4a1   :  { %v1466_v13 = vsel %vm1461_vm1, %v4250_v18, 0.0 }
 0x4a7   :  { %v1440_v48 = vpop.permute.xlu2 %1439 }
 0x4a8   :  { %v4239_v50 = vsel %vm71_vm0, 0.0, %v1440_v48  ;;  %v2978_v48 = vld [vmem:[%s4830_s7 + $0x78] sm:$0xff] }
 0x4a9   :  { %v1463_v12 = vsel %vm1461_vm1, %v4239_v50, 0.0 }
 0x4af   :  { %v1444_v23 = vpop.permute.xlu0 %1443 }
 0x4b0   :  { %v4264_v31 = vsel %vm71_vm0, 0.0, %v1444_v23  ;;  %v2955_v23 = vld [vmem:[%s4830_s7 + $0x50] sm:$0xff] }
 0x4b1   :  { %v1465_v7 = vsel %vm1461_vm1, %v4264_v31, 0.0 }
 0x4b7   :  { %v1438_v3 = vpop.permute.xlu0 %1437 }
 0x4b8   :  { %v4242_v34 = vsel %vm71_vm0, 0.0, %v1438_v3  ;;  %v3017_v3 = vld [vmem:[%s4830_s7 + $0xf0] sm:$0xff] }
 0x4b9   :  { %v1462_v6 = vsel %vm1461_vm1, %v4242_v34, 0.0 }
 0x4ba   :  { %v3126_v55 = vpack.i.bf16 %v1462_v6, %v1463_v12  ;;  %v2979_v12 = vld [vmem:[%s4830_s7 + $0x80] sm:$0xff]  ;;  %v3007_v6 = vld [vmem:[%s4830_s7 + $0xd0] sm:$0xff] }
 0x4bc   :  { %3127 = vrot.lane.b32.xlu0 %v3126_v55, %s3290_s26 }
 0x4bf   :  { %v1448_v61 = vpop.permute.xlu1 %1447 }
 0x4c0   :  { %v4253_v37 = vsel %vm71_vm0, 0.0, %v1448_v61  ;;  %v2980_v61 = vld [vmem:[%s4830_s7 + $0x88] sm:$0xff] }
 0x4c1   :  { %v1467_v60 = vsel %vm1461_vm1, %v4253_v37, 0.0  ;;  %2963 = vmatpush.msk.msrb.mxu1 %vm1461_vm1, %v4253_v37 }
 0x4c2   :  { %v3116_v32 = vpack.i.bf16 %v1466_v13, %v1467_v60  ;;  %v3019_v13 = vld [vmem:[%s4830_s7 + $0x100] sm:$0xff]  ;;  %v2988_v60 = vld [vmem:[%s4830_s7 + $0x98] sm:$0xff] }
 0x4c3   :  { %2964 = vmatpush.msk.msrb.mxu1 %vm1461_vm1, %v4250_v18 }
 0x4c4   :  { %3117 = vrot.lane.b32.xlu1 %v3116_v32, %s3290_s26  ;;  %3142 = vrot.lane.b32.xlu0 %v3126_v55, %s3289_s3  ;;  %v3018_v55 = vld [vmem:[%s4830_s7 + $0xf8] sm:$0xff] }
 0x4c5   :  { %2965 = vmatpush.msk.msrb.mxu1 %vm1461_vm1, %v4264_v31 }
 0x4c7   :  { %v1442_v40 = vpop.permute.xlu1 %1441 }
 0x4c8   :  { %v4271_v46 = vsel %vm71_vm0, 0.0, %v1442_v40  ;;  %vm1511_vm0 = vcmask 392192   ;;  %v3020_v40 = vld [vmem:[%s4830_s7 + $0x108] sm:$0xff] }
 0x4c9   :  { %v1464_v41 = vsel %vm1461_vm1, %v4271_v46, 0.0  ;;  %2966 = vmatpush.msk.msrb.mxu1 %vm1461_vm1, %v4271_v46 }
 0x4ca   :  { %v3121_v33 = vpack.i.bf16 %v1464_v41, %v1465_v7  ;;  %v3030_v7 = vld [vmem:[%s4830_s7 + $0x128] sm:$0xff] }
 0x4cb   :  { %2967 = vmatpush.msk.msrb.mxu1 %vm1461_vm1, %v4239_v50  ;;  %v3010_v41 = vld [vmem:[%s4830_s7 + $0xe8] sm:$0xff] }
 0x4cc   :  { %3132 = vrot.lane.b32.xlu1 %v3116_v32, %s3289_s3  ;;  %3122 = vrot.lane.b32.xlu2 %v3121_v33, %s3290_s26  ;;  %v3029_v32 = vld [vmem:[%s4830_s7 + $0x120] sm:$0xff] }
 0x4cd   :  { %2115 = vperm.xlu0 %3113, %v1471_v17   ;;  %2968 = vmatpush.msk.msrb.mxu1 %vm1461_vm1, %v4242_v34  ;;  %v2990_v17 = vld [vmem:[%s4830_s7 + $0xa8] sm:$0xff] }
 0x4ce   :  { %2969 = vmatmul.msk.f32.vlgmr.msrb.gmra.mxu1 %vm1511_vm0, %v1474_v29  ;;  %v3060_v29 = vld [vmem:[%s4830_s7 + $0x188] sm:$0xff] }
 0x4d4   :  { %2125 = vperm.xlu1 %3114, %v1473_v5   ;;  %3137 = vrot.lane.b32.xlu2 %v3121_v33, %s3289_s3  ;;  %v3021_v33 = vld [vmem:[%s4830_s7 + $0x110] sm:$0xff] }
 0x4d5   :  { %2100 = vperm.xlu0 %3113, %v1468_v30   ;;  %v3031_v5 = vld [vmem:[%s4830_s7 + $0x130] sm:$0xff]  ;;  %v3059_v30 = vld [vmem:[%s4830_s7 + $0x180] sm:$0xff] }
 0x4d6   :  { %2970 = vmatmul.msk.f32.gmra.mxu1 %vm1511_vm0, %v1475_v10  ;;  %v2992_v10 = vld [vmem:[%s4830_s7 + $0xb8] sm:$0xff] }
 0x4dc   :  { %2110 = vperm.xlu1 %3114, %v1470_v57   ;;  %2120 = vperm.xlu2 %3115, %v1472_v36   ;;  %v3022_v57 = vld [vmem:[%s4830_s7 + $0x118] sm:$0xff]  ;;  %v2991_v36 = vld [vmem:[%s4830_s7 + $0xb0] sm:$0xff] }
 0x4de   :  { %2971 = vmatmul.msk.f32.gmra.mxu1 %vm1511_vm0, %v1476_v54  ;;  %v3063_v54 = vld [vmem:[%s4830_s7 + $0x1a0] sm:$0xff] }
 0x4e4   :  { %2105 = vperm.xlu2 %3115, %v1469_v38   ;;  %v3032_v38 = vld [vmem:[%s4830_s7 + $0x138] sm:$0xff] }
 0x4e6   :  { %2972 = vmatmul.msk.f32.gmra.mxu1 %vm1511_vm0, %v1477_v58 }
 0x4ee   :  { %2973 = vmatmul.msk.f32.gmra.mxu1 %vm1511_vm0, %v1478_v56 }
 0x4f6   :  { %2974 = vmatmul.msk.f32.gmra.mxu1 %vm1511_vm0, %v1479_v39 }
 0x526   :  { %v3123_v9 = vpop.permute.xlu2 %3122 }
 0x527   :  { %v4314_v51 = vunpack.i.l.bf16 %v3123_v9  ;;  %v4321_v1 = vunpack.i.h.bf16 %v3123_v9  ;;  %v3061_v9 = vld [vmem:[%s4830_s7 + $0x190] sm:$0xff] }
 0x52e   :  { %v3128_v0 = vpop.permute.xlu0 %3127  ;;  %v3138_v52 = vpop.permute.xlu2 %3137 }
 0x52f   :  { %v4326_v59 = vunpack.i.l.bf16 %v3128_v0  ;;  %v3130_v26 = vunpack.i.h.bf16 %v3128_v0  ;;  %v3139_v43 = vunpack.i.l.bf16 %v3138_v52  ;;  %v3140_v8 = vunpack.i.h.bf16 %v3138_v52  ;;  %v3048_v0 = vld [vmem:[%s4830_s7 + $0x158] sm:$0xff] }
 0x536   :  { %v3118_v2 = vpop.permute.xlu1 %3117  ;;  %v3143_v42 = vpop.permute.xlu0 %3142 }
 0x537   :  { %v3119_v20 = vunpack.i.l.bf16 %v3118_v2  ;;  %v4312_v14 = vunpack.i.h.bf16 %v3118_v2  ;;  %v3144_v47 = vunpack.i.l.bf16 %v3143_v42  ;;  %v3145_v25 = vunpack.i.h.bf16 %v3143_v42  ;;  %v3033_v2 = vld [vmem:[%s4830_s7 + $0x140] sm:$0xff] }
 0x539   :  { %1540 = vmatpush.msra.mxu3 %v3119_v20  ;;  %1803 = vmatpush.msrb.mxu0 %v3119_v20 }
 0x53b   :  { %1541 = vmatpush.msra.mxu3 %v4312_v14  ;;  %1804 = vmatpush.msrb.mxu0 %v4312_v14 }
 0x53d   :  { %1542 = vmatpush.msra.mxu3 %v4314_v51  ;;  %1805 = vmatpush.msrb.mxu0 %v4314_v51 }
 0x53e   :  { %v3133_v44 = vpop.permute.xlu1 %3132 }
 0x53f   :  { %v3134_v21 = vunpack.i.l.bf16 %v3133_v44  ;;  %1543 = vmatpush.msra.mxu3 %v4321_v1  ;;  %1806 = vmatpush.msrb.mxu0 %v4321_v1  ;;  %v3135_v49 = vunpack.i.h.bf16 %v3133_v44  ;;  %v3064_v44 = vld [vmem:[%s4830_s7 + $0x1a8] sm:$0xff] }
 0x541   :  { %1544 = vmatpush.msra.mxu3 %v4326_v59  ;;  %1671 = vmatpush.msra.mxu2 %v3134_v21 }
 0x542   :  { %1807 = vmatpush.msrb.mxu0 %v4326_v59  ;;  %1869 = vmatpush.msra.mxu1 %v3134_v21 }
 0x543   :  { %1545 = vmatpush.msra.mxu3 %v3130_v26  ;;  %1672 = vmatpush.msra.mxu2 %v3135_v49 }
 0x544   :  { %1808 = vmatpush.msrb.mxu0 %v3130_v26  ;;  %1870 = vmatpush.msra.mxu1 %v3135_v49 }
 0x545   :  { %2957 = vmatmul.msk.f32.vlgmr.msra.gmra.mxu3 %vm1511_vm0, %v2951_v19  ;;  %1673 = vmatpush.msra.mxu2 %v3139_v43  ;;  %v3052_v19 = vld [vmem:[%s4830_s7 + $0x178] sm:$0xff] }
 0x546   :  { %2067 = vmatpush.msra.mxu0 %v3134_v21  ;;  %2993 = vmatpush.msk.msrb.mxu3 %vm1461_vm1, %v4253_v37  ;;  %v3051_v21 = vld [vmem:[%s4830_s7 + $0x170] sm:$0xff] }
 0x547   :  { %1871 = vmatpush.msra.mxu1 %v3139_v43  ;;  %1674 = vmatpush.msra.mxu2 %v3140_v8 }
 0x548   :  { %2068 = vmatpush.msra.mxu0 %v3135_v49  ;;  %2994 = vmatpush.msk.msrb.mxu3 %vm1461_vm1, %v4250_v18 }
 0x549   :  { %1872 = vmatpush.msra.mxu1 %v3140_v8  ;;  %1675 = vmatpush.msra.mxu2 %v3144_v47 }
 0x54a   :  { %2069 = vmatpush.msra.mxu0 %v3139_v43  ;;  %2995 = vmatpush.msk.msrb.mxu3 %vm1461_vm1, %v4264_v31 }
 0x54b   :  { %1873 = vmatpush.msra.mxu1 %v3144_v47  ;;  %1676 = vmatpush.msra.mxu2 %v3145_v25  ;;  %v1600_v52 = vpop.f32.mrf.mxu1 }
 0x54c   :  { %2070 = vmatpush.msra.mxu0 %v3140_v8  ;;  %2996 = vmatpush.msk.msrb.mxu3 %vm1461_vm1, %v4271_v46 }
 0x54d   :  { %1874 = vmatpush.msra.mxu1 %v3145_v25  ;;  %2958 = vmatmul.msk.f32.gmra.mxu3 %vm1511_vm0, %v2952_v28 }
 0x54e   :  { %2997 = vmatpush.msk.msrb.mxu3 %vm1461_vm1, %v4239_v50  ;;  %3035 = vmatpush.msk.msrb.mxu2 %vm1461_vm1, %v4253_v37  ;;  %v3008_v37 = vld [vmem:[%s4830_s7 + $0xd8] sm:$0xff] }
 0x54f   :  { %2071 = vmatpush.msra.mxu0 %v3144_v47  ;;  %2981 = vmatmul.msk.f32.vlgmr.msra.gmra.mxu2 %vm1511_vm0, %v2975_v53 }
 0x550   :  { %2998 = vmatpush.msk.msrb.mxu3 %vm1461_vm1, %v4242_v34  ;;  %3036 = vmatpush.msk.msrb.mxu2 %vm1461_vm1, %v4250_v18  ;;  %v2987_v18 = vld [vmem:[%s4830_s7 + $0x90] sm:$0xff] }
 0x551   :  { %2072 = vmatpush.msra.mxu0 %v3145_v25  ;;  %3023 = vmatmul.msk.f32.vlgmr.msra.gmra.mxu1 %vm1511_vm0, %v3017_v3 }
 0x552   :  { %2001 = vmatpush.msra.mxu3 %v3119_v20  ;;  %3037 = vmatpush.msk.msrb.mxu2 %vm1461_vm1, %v4264_v31  ;;  %v3009_v31 = vld [vmem:[%s4830_s7 + $0xe0] sm:$0xff]  ;;  %v3047_v20 = vld [vmem:[%s4830_s7 + $0x150] sm:$0xff] }
 0x553   :  { %3011 = vmatmul.msk.f32.vlgmr.msrb.gmra.mxu0 %vm1511_vm0, %v3005_v27  ;;  %v1603_v43 = vpop.f32.mrf.mxu1 }
 0x554   :  { %2002 = vmatpush.msra.mxu3 %v4312_v14  ;;  %3038 = vmatpush.msk.msrb.mxu2 %vm1461_vm1, %v4271_v46  ;;  %v2989_v46 = vld [vmem:[%s4830_s7 + $0xa0] sm:$0xff]  ;;  %v3034_v14 = vld [vmem:[%s4830_s7 + $0x148] sm:$0xff] }
 0x555   :  { %2959 = vmatmul.msk.f32.gmra.mxu3 %vm1511_vm0, %v2953_v22 }
 0x556   :  { %2003 = vmatpush.msra.mxu3 %v4314_v51  ;;  %3039 = vmatpush.msk.msrb.mxu2 %vm1461_vm1, %v4239_v50  ;;  %v3006_v50 = vld [vmem:[%s4830_s7 + $0xc8] sm:$0xff]  ;;  %v3062_v51 = vld [vmem:[%s4830_s7 + $0x198] sm:$0xff] }
 0x557   :  { %2982 = vmatmul.msk.f32.gmra.mxu2 %vm1511_vm0, %v2976_v16 }
 0x558   :  { %2004 = vmatpush.msra.mxu3 %v4321_v1  ;;  %3040 = vmatpush.msk.msrb.mxu2 %vm1461_vm1, %v4242_v34  ;;  %v2956_v34 = vld [vmem:[%s4830_s7 + $0x58] sm:$0xff]  ;;  %v3049_v1 = vld [vmem:[%s4830_s7 + $0x160] sm:$0xff]  ;;  %vm2594_vm1 = vcmask 90184  }
 0x559   :  { %3024 = vmatmul.msk.f32.gmra.mxu1 %vm1511_vm0, %v3018_v55 }
 0x55a   :  { %2005 = vmatpush.msra.mxu3 %v4326_v59  ;;  %v3050_v59 = vld [vmem:[%s4830_s7 + $0x168] sm:$0xff] }
 0x55b   :  { %3012 = vmatmul.msk.f32.gmra.mxu0 %vm1511_vm0, %v3006_v50  ;;  %v1606_v28 = vpop.f32.mrf.mxu1 }
 0x55c   :  { %2006 = vmatpush.msra.mxu3 %v3130_v26 }
 0x55d   :  { %2960 = vmatmul.msk.f32.gmra.mxu3 %vm1511_vm0, %v2954_v4 }
 0x55f   :  { %2983 = vmatmul.msk.f32.gmra.mxu2 %vm1511_vm0, %v2977_v11 }
 0x561   :  { %3025 = vmatmul.msk.f32.gmra.mxu1 %vm1511_vm0, %v3019_v13 }
 0x563   :  { %3013 = vmatmul.msk.f32.gmra.mxu0 %vm1511_vm0, %v3007_v6 }
 0x565   :  { %2961 = vmatmul.msk.f32.gmra.mxu3 %vm1511_vm0, %v2955_v23 }
 0x567   :  { %2984 = vmatmul.msk.f32.gmra.mxu2 %vm1511_vm0, %v2978_v48 }
 0x569   :  { %3026 = vmatmul.msk.f32.gmra.mxu1 %vm1511_vm0, %v3020_v40 }
 0x56b   :  { %3014 = vmatmul.msk.f32.gmra.mxu0 %vm1511_vm0, %v3008_v37 }
 0x56d   :  { %2962 = vmatmul.msk.f32.gmra.mxu3 %vm1511_vm0, %v2956_v34 }
 0x56f   :  { %2985 = vmatmul.msk.f32.gmra.mxu2 %vm1511_vm0, %v2979_v12  ;;  %v1609_v12 = vpop.f32.mrf.mxu1 }
 0x571   :  { %3027 = vmatmul.msk.f32.gmra.mxu1 %vm1511_vm0, %v3021_v33 }
 0x573   :  { %3015 = vmatmul.msk.f32.gmra.mxu0 %vm1511_vm0, %v3009_v31 }
 0x575   :  { %2999 = vmatmul.msk.f32.vlgmr.msrb.gmra.mxu3 %vm1511_vm0, %v2987_v18 }
 0x577   :  { %2986 = vmatmul.msk.f32.gmra.mxu2 %vm1511_vm0, %v2980_v61 }
 0x579   :  { %3028 = vmatmul.msk.f32.gmra.mxu1 %vm1511_vm0, %v3022_v57 }
 0x57b   :  { %3016 = vmatmul.msk.f32.gmra.mxu0 %vm1511_vm0, %v3010_v41 }
 0x57d   :  { %3000 = vmatmul.msk.f32.gmra.mxu3 %vm1511_vm0, %v2988_v60  ;;  %v1612_v60 = vpop.f32.mrf.mxu1 }
 0x57f   :  { %3041 = vmatmul.msk.f32.vlgmr.msrb.gmra.mxu2 %vm1511_vm0, %v3029_v32 }
 0x583   :  { %3065 = vmatmul.msk.f32.vlgmr.msra.gmra.mxu0 %vm1511_vm0, %v3059_v30 }
 0x585   :  { %3001 = vmatmul.msk.f32.gmra.mxu3 %vm1511_vm0, %v2989_v46  ;;  %v1615_v41 = vpop.f32.mrf.mxu1 }
 0x587   :  { %3042 = vmatmul.msk.f32.gmra.mxu2 %vm1511_vm0, %v3030_v7 }
 0x58b   :  { %3066 = vmatmul.msk.f32.gmra.mxu0 %vm1511_vm0, %v3060_v29 }
 0x58d   :  { %3002 = vmatmul.msk.f32.gmra.mxu3 %vm1511_vm0, %v2990_v17 }
 0x58f   :  { %3043 = vmatmul.msk.f32.gmra.mxu2 %vm1511_vm0, %v3031_v5 }
 0x593   :  { %3067 = vmatmul.msk.f32.gmra.mxu0 %vm1511_vm0, %v3061_v9 }
 0x595   :  { %3003 = vmatmul.msk.f32.gmra.mxu3 %vm1511_vm0, %v2991_v36 }
 0x597   :  { %3044 = vmatmul.msk.f32.gmra.mxu2 %vm1511_vm0, %v3032_v38 }
 0x59b   :  { %3068 = vmatmul.msk.f32.gmra.mxu0 %vm1511_vm0, %v3062_v51 }
 0x59d   :  { %3004 = vmatmul.msk.f32.gmra.mxu3 %vm1511_vm0, %v2992_v10 }
 0x59f   :  { %3045 = vmatmul.msk.f32.gmra.mxu2 %vm1511_vm0, %v3033_v2 }
 0x5a3   :  { %3069 = vmatmul.msk.f32.gmra.mxu0 %vm1511_vm0, %v3063_v54 }
 0x5a5   :  { %3053 = vmatmul.msk.f32.vlgmr.msra.gmra.mxu3 %vm1511_vm0, %v3047_v20  ;;  %v2116_v20 = vpop.permute.xlu0 %2115 }
 0x5a7   :  { %3046 = vmatmul.msk.f32.gmra.mxu2 %vm1511_vm0, %v3034_v14 }
 0x5ab   :  { %3070 = vmatmul.msk.f32.gmra.mxu0 %vm1511_vm0, %v3064_v44 }
 0x5ad   :  { %3054 = vmatmul.msk.f32.gmra.mxu3 %vm1511_vm0, %v3048_v0 }
 0x5b5   :  { %3055 = vmatmul.msk.f32.gmra.mxu3 %vm1511_vm0, %v3049_v1  ;;  %v4572_v1 = vpop.permute.xlu2 %2120 }
 0x5bd   :  { %3056 = vmatmul.msk.f32.gmra.mxu3 %vm1511_vm0, %v3050_v59 }
 0x5c5   :  { %3057 = vmatmul.msk.f32.gmra.mxu3 %vm1511_vm0, %v3051_v21 }
 0x5c8   :  { %v1547_v26 = vpop.f32.mrf.mxu3 }
 0x5c9   :  { %v1601_v49 = vadd.f32 %v1600_v52, %v1547_v26 }
 0x5cd   :  { %3058 = vmatmul.msk.f32.gmra.mxu3 %vm1511_vm0, %v3052_v19 }
 0x5ce   :  { %v1876_v30 = vpop.f32.mrf.mxu1 }
 0x5d0   :  { %v1550_v42 = vpop.f32.mrf.mxu3  ;;  %v1810_v27 = vpop.f32.mrf.mxu0 }
 0x5d1   :  { %v1604_v8 = vadd.f32 %v1603_v43, %v1550_v42 }
 0x5d2   :  { %v1678_v47 = vpop.f32.mrf.mxu2 }
 0x5d3   :  { %v1696_v25 = vadd.f32 %v1678_v47, %v1601_v49  ;;  %v2101_v49 = vpop.permute.xlu0 %2100  ;;  %v4574_v47 = vpop.permute.xlu1 %2125 }
 0x5d6   :  { %v1879_v10 = vpop.f32.mrf.mxu1 }
 0x5d8   :  { %v1553_v53 = vpop.f32.mrf.mxu3  ;;  %v1813_v23 = vpop.f32.mrf.mxu0 }
 0x5d9   :  { %v1607_v22 = vadd.f32 %v1606_v28, %v1553_v53 }
 0x5da   :  { %v1681_v58 = vpop.f32.mrf.mxu2 }
 0x5db   :  { %v1697_v16 = vadd.f32 %v1681_v58, %v1604_v8  ;;  %v2106_v58 = vpop.permute.xlu2 %2105 }
 0x5de   :  { %v1882_v44 = vpop.f32.mrf.mxu1 }
 0x5e0   :  { %v1556_v56 = vpop.f32.mrf.mxu3  ;;  %v1816_v50 = vpop.f32.mrf.mxu0 }
 0x5e1   :  { %v1610_v43 = vadd.f32 %v1609_v12, %v1556_v56 }
 0x5e2   :  { %v1684_v4 = vpop.f32.mrf.mxu2 }
 0x5e3   :  { %v1698_v11 = vadd.f32 %v1684_v4, %v1607_v22 }
 0x5e8   :  { %v1559_v39 = vpop.f32.mrf.mxu3  ;;  %v1819_v61 = vpop.f32.mrf.mxu0 }
 0x5ea   :  { %v1687_v55 = vpop.f32.mrf.mxu2 }
 0x5eb   :  { %v1699_v28 = vadd.f32 %v1687_v55, %v1610_v43 }
 0x5f0   :  { %v4564_v48 = vpop.f32.mrf.mxu3  ;;  %v4566_v46 = vpop.f32.mrf.mxu0 }
 0x5f2   :  { %v1690_v32 = vpop.f32.mrf.mxu2 }
 0x5f8   :  { %v1744_v3 = vpop.f32.mrf.mxu3  ;;  %v4570_v5 = vpop.f32.mrf.mxu0 }
 0x5f9   :  { %v1762_v34 = vadd.f32 %v1744_v3, %v1696_v25  ;;  %v1613_v3 = vadd.f32 %v1612_v60, %v1559_v39  ;;  %v1616_v60 = vadd.f32 %v1615_v41, %v4564_v48 }
 0x5fa   :  { %v4568_v33 = vpop.f32.mrf.mxu2 }
 0x5fb   :  { %v1828_v6 = vadd.f32 %v1810_v27, %v1762_v34  ;;  %v1885_v27 = vpop.f32.mrf.mxu1 }
 0x5fd   :  { %v1894_v9 = vadd.f32 %v1876_v30, %v1828_v6 }
 0x600   :  { %v1747_v18 = vpop.f32.mrf.mxu3  ;;  %v2074_v38 = vpop.f32.mrf.mxu0 }
 0x601   :  { %v1763_v37 = vadd.f32 %v1747_v18, %v1697_v16 }
 0x602   :  { %v1942_v36 = vpop.f32.mrf.mxu2 }
 0x603   :  { %v1829_v13 = vadd.f32 %v1813_v23, %v1763_v37  ;;  %v1960_v14 = vadd.f32 %v1942_v36, %v1894_v9  ;;  %v1888_v9 = vpop.f32.mrf.mxu1 }
 0x605   :  { %v1895_v59 = vadd.f32 %v1879_v10, %v1829_v13  ;;  %v1700_v13 = vadd.f32 %v1690_v32, %v1613_v3 }
 0x608   :  { %v1750_v31 = vpop.f32.mrf.mxu3  ;;  %v2077_v0 = vpop.f32.mrf.mxu0 }
 0x609   :  { %v1764_v40 = vadd.f32 %v1750_v31, %v1698_v11 }
 0x60a   :  { %v1945_v2 = vpop.f32.mrf.mxu2 }
 0x60b   :  { %v1830_v7 = vadd.f32 %v1816_v50, %v1764_v40  ;;  %v1961_v26 = vadd.f32 %v1945_v2, %v1895_v59  ;;  %v2111_v40 = vpop.permute.xlu1 %2110 }
 0x60d   :  { %v1896_v16 = vadd.f32 %v1882_v44, %v1830_v7 }
 0x610   :  { %v1753_v17 = vpop.f32.mrf.mxu3  ;;  %v2080_v25 = vpop.f32.mrf.mxu0 }
 0x611   :  { %v1765_v22 = vadd.f32 %v1753_v17, %v1699_v28 }
 0x612   :  { %v1948_v52 = vpop.f32.mrf.mxu2 }
 0x613   :  { %v1962_v23 = vadd.f32 %v1948_v52, %v1896_v16  ;;  %v1831_v18 = vadd.f32 %v1819_v61, %v1765_v22 }
 0x615   :  { %v1897_v36 = vadd.f32 %v1885_v27, %v1831_v18 }
 0x618   :  { %v1756_v57 = vpop.f32.mrf.mxu3  ;;  %v2083_v30 = vpop.f32.mrf.mxu0 }
 0x619   :  { %v1766_v7 = vadd.f32 %v1756_v57, %v1700_v13  ;;  %v2305_v13 = vld [vmem:[%s4832_s9 + $0xf8] sm:$0x1f] }
 0x61a   :  { %v1951_v34 = vpop.f32.mrf.mxu2 }
 0x61b   :  { %v1963_v10 = vadd.f32 %v1951_v34, %v1897_v36  ;;  %v1832_v61 = vadd.f32 %v4566_v46, %v1766_v7  ;;  %v2282_v7 = vld [vmem:[%s4832_s9 + $0x40] sm:$0xff] }
 0x61c   :  { %v2302_v36 = vld [vmem:[%s4832_s9 + $0xe0] sm:$0xff] }
 0x620   :  { %v1759_v29 = vpop.f32.mrf.mxu3 }
 0x622   :  { %v1954_v32 = vpop.f32.mrf.mxu2 }
 0x628   :  { %v2008_v51 = vpop.f32.mrf.mxu3 }
 0x629   :  { %v2026_v54 = vadd.f32 %v2008_v51, %v1960_v14 }
 0x62b   :  { %v2092_v21 = vadd.f32 %v2074_v38, %v2026_v54 }
 0x62d   :  { %v2128_v42 = vadd.f32 %v2101_v49, %v2092_v21  ;;  %v1898_v21 = vadd.f32 %v1888_v9, %v1832_v61  ;;  %v2300_v9 = vld [vmem:[%s4832_s9 + $0xd0] sm:$0xff]  ;;  %v2278_v61 = vld [vmem:[%s4832_s9 + $0x20] sm:$0xff] }
 0x62f   :  { %v2134_v4 = vmax.f32 %v2128_v42, 0.0  ;;  %v1964_v49 = vadd.f32 %v1954_v32, %v1898_v21  ;;  %v1891_v42 = vpop.f32.mrf.mxu1  ;;  %v2297_v32 = vld [vmem:[%s4832_s9 + $0xb8] sm:$0xff] }
 0x630   :  { %v2011_v19 = vpop.f32.mrf.mxu3 }
 0x631   :  { %v2027_v8 = vadd.f32 %v2011_v19, %v1961_v26  ;;  %v2146_v56 = vrot.slane %v2134_v4, 1  ;;  %v2086_v26 = vpop.f32.mrf.mxu0 }
 0x633   :  { %v2093_v53 = vadd.f32 %v2077_v0, %v2027_v8  ;;  %v1701_v0 = vadd.f32 %v4568_v33, %v1616_v60  ;;  %v1957_v33 = vpop.f32.mrf.mxu2  ;;  %v2299_v60 = vld [vmem:[%s4832_s9 + $0xc8] sm:$0xff] }
 0x635   :  { %v2129_v11 = vadd.f32 %v2106_v58, %v2093_v53  ;;  %v1767_v57 = vadd.f32 %v1759_v29, %v1701_v0 }
 0x637   :  { %v2135_v50 = vmax.f32 %v2129_v11, 0.0  ;;  %v1833_v48 = vadd.f32 %v4570_v5, %v1767_v57  ;;  %v2296_v57 = vld [vmem:[%s4832_s9 + $0xb0] sm:$0xff] }
 0x638   :  { %v2014_v6 = vpop.f32.mrf.mxu3 }
 0x639   :  { %v2147_v12 = vrot.slane %v2135_v50, 1  ;;  %v2028_v37 = vadd.f32 %v2014_v6, %v1962_v23  ;;  %v1899_v53 = vadd.f32 %v1891_v42, %v1833_v48  ;;  %v2089_v16 = vpop.f32.mrf.mxu0  ;;  %v2291_v42 = vld [vmem:[%s4832_s9 + $0x88] sm:$0xff] }
 0x63b   :  { %v2094_v31 = vadd.f32 %v2080_v25, %v2028_v37  ;;  %v2148_v55 = vsel %vm1206_vm4, %v2146_v56, %v2147_v12  ;;  %v1965_v29 = vadd.f32 %v1957_v33, %v1899_v53 }
 0x63c   :  { %v2163_v17 = vmax.f32 %v2134_v4, %v2148_v55  ;;  %v2286_v55 = vld [vmem:[%s4832_s9 + $0x60] sm:$0xff] }
 0x63d   :  { %v2130_v38 = vadd.f32 %v2111_v40, %v2094_v31  ;;  %v2303_v31 = vld [vmem:[%s4832_s9 + $0xe8] sm:$0xff]  ;;  %v2285_v40 = vld [vmem:[%s4832_s9 + $0x58] sm:$0xff] }
 0x63f   :  { %v2136_v2 = vmax.f32 %v2130_v38, 0.0  ;;  %v2281_v38 = vld [vmem:[%s4832_s9 + $0x38] sm:$0xff] }
 0x640   :  { %v2017_v39 = vpop.f32.mrf.mxu3 }
 0x641   :  { %v2149_v14 = vrot.slane %v2136_v2, 1  ;;  %v2029_v51 = vadd.f32 %v2017_v39, %v1963_v10  ;;  %v2301_v10 = vld [vmem:[%s4832_s9 + $0xd8] sm:$0xff]  ;;  %v2279_v39 = vld [vmem:[%s4832_s9 + $0x28] sm:$0xff] }
 0x643   :  { %v2095_v54 = vadd.f32 %v2083_v30, %v2029_v51  ;;  %v2150_v44 = vsel %vm1206_vm4, %v2147_v12, %v2149_v14  ;;  %v2284_v30 = vld [vmem:[%s4832_s9 + $0x50] sm:$0xff]  ;;  %v2277_v51 = vld [vmem:[%s4832_s9 + $0x18] sm:$0xff] }
 0x644   :  { %v2164_v59 = vmax.f32 %v2135_v50, %v2150_v44 }
 0x645   :  { %v2131_v52 = vadd.f32 %v2116_v20, %v2095_v54  ;;  %v2260_v54 = vld [vmem:[%s4892_s1] sm:$0x3]  ;;  %s4894_s1 = sld [smem:[#allocation36_spill]] }
 0x646   :  { %v2263_v21 = vperm.slane %v2260_v54, 0  ;;  %v2264_v48 = vperm.slane %v2260_v54, 1 }
 0x647   :  { %v2137_v19 = vmax.f32 %v2131_v52, 0.0  ;;  %v2275_v52 = vld [vmem:[%s4832_s9 + $0x8] sm:$0xff] }
 0x648   :  { %v2020_v43 = vpop.f32.mrf.mxu3 }
 0x649   :  { %v2151_v41 = vrot.slane %v2137_v19, 1  ;;  %v2030_v46 = vadd.f32 %v2020_v43, %v1964_v49  ;;  %v2274_v49 = vld [vmem:[%s4832_s9] sm:$0xff]  ;;  %v2293_v43 = vld [vmem:[%s4832_s9 + $0x98] sm:$0xff] }
 0x64b   :  { %v2096_v8 = vadd.f32 %v2086_v26, %v2030_v46  ;;  %v2152_v25 = vsel %vm1206_vm4, %v2149_v14, %v2151_v41  ;;  %v2298_v14 = vld [vmem:[%s4832_s9 + $0xc0] sm:$0xff]  ;;  %v2295_v26 = vld [vmem:[%s4832_s9 + $0xa8] sm:$0xff] }
 0x64c   :  { %v2165_v28 = vmax.f32 %v2136_v2, %v2152_v25  ;;  %v2280_v2 = vld [vmem:[%s4832_s9 + $0x30] sm:$0xff]  ;;  %v3153_v25 = vld [vmem:[%s4893_s23] ss:$0 sm:$0xff] }
 0x64d   :  { %v2132_v58 = vadd.f32 %v4572_v1, %v2096_v8  ;;  %v3152_v1 = vld [vmem:[%s4891_s2] ss:$0 sm:$0xff] }
 0x64e   :  { %2269 = vrot.lane.b32.xlu1 %v3152_v1, %s3294_s25  ;;  %v2290_v8 = vld [vmem:[%s4832_s9 + $0x80] sm:$0xff]  ;;  %s2682_s25 = sshll.u32 %s4842_s19, 4  ;;  %s3306_s19 = smov [#allocation2]   ;;  %s2683_s25 = int_to_ptr.hbm [resolvable:$true] %s2682_s25 }
 0x64f   :  { %v2138_v22 = vmax.f32 %v2132_v58, 0.0  ;;  %v2460_v1 = vld [vmem:[%s4835_s12] sm:$0xff] }
 0x650   :  { %v2023_v20 = vpop.f32.mrf.mxu3 }
 0x651   :  { %v2153_v4 = vrot.slane %v2138_v22, 1  ;;  %v2031_v11 = vadd.f32 %v2023_v20, %v1965_v29  ;;  %v2465_v20 = vld [vmem:[%s4835_s12 + $0x28] sm:$0xff] }
 0x653   :  { %v2097_v27 = vadd.f32 %v2089_v16, %v2031_v11  ;;  %v2154_v5 = vsel %vm1206_vm4, %v2151_v41, %v2153_v4  ;;  %v2292_v41 = vld [vmem:[%s4832_s9 + $0x90] sm:$0xff]  ;;  %v2464_v16 = vld [vmem:[%s4835_s12 + $0x20] sm:$0xff] }
 0x654   :  { %v2166_v23 = vmax.f32 %v2137_v19, %v2154_v5  ;;  %v2294_v19 = vld [vmem:[%s4832_s9 + $0xa0] sm:$0xff] }
 0x655   :  { %v2133_v50 = vadd.f32 %v4574_v47, %v2097_v27  ;;  %v2463_v27 = vld [vmem:[%s4835_s12 + $0x18] sm:$0xff] }
 0x657   :  { %v2139_v3 = vmax.f32 %v2133_v50, 0.0  ;;  %v2462_v50 = vld [vmem:[%s4835_s12 + $0x10] sm:$0xff] }
 0x659   :  { %v2155_v34 = vrot.slane %v2139_v3, 1 }
 0x65b   :  { %v2168_v6 = vmax.f32 %v2139_v3, %v2155_v34  ;;  %v2156_v18 = vsel %vm1206_vm4, %v2153_v4, %v2155_v34  ;;  %v2306_v4 = vld [vmem:[%s4833_s10] sm:$0x1]  ;;  %v2461_v34 = vld [vmem:[%s4835_s12 + $0x8] sm:$0xff]  ;;  %s2647_s10 = sshll.u32 %s3306_s19, 4  ;;  %s2648_s10 = int_to_ptr.vmem [resolvable:$true] %s2647_s10 }
 0x65c   :  { %v2167_v56 = vmax.f32 %v2138_v22, %v2156_v18 }
 0x65d   :  { %3071 = vmatpush.msk.msrb.mxu1 %vm1206_vm4, %v2168_v6  ;;  %vm2220_vm4 = vcmask 39936   ;;  %v3296_v6 = vmov 1  }
 0x65f   :  { %2190 = vmatpush.msrb.mxu1 %v2167_v56 }
 0x661   :  { %2191 = vmatpush.msrb.mxu1 %v2166_v23 }
 0x663   :  { %2192 = vmatpush.msrb.mxu1 %v2165_v28 }
 0x665   :  { %2193 = vmatpush.msrb.mxu1 %v2164_v59  ;;  %v2276_v59 = vld [vmem:[%s4832_s9 + $0x10] sm:$0xff] }
 0x667   :  { %2194 = vmatpush.msrb.mxu1 %v2163_v17  ;;  %v2283_v17 = vld [vmem:[%s4832_s9 + $0x48] sm:$0xff] }
 0x668   :  { %3072 = vmatmul.msk.f32.vlgmr.msrb.gmra.mxu1 %vm2169_vm2, %v4186_v15  ;;  %v1371_v15 = vsel %vm4220_vm14, 1.0, %v3292_v35  ;;  %v2304_v35 = vld [vmem:[%s4832_s9 + $0xf0] sm:$0xff]  ;;  %vm2537_vm14 = vcmask 122880  }
 0x669   :  { %3075 = vmatpush.msk.msra.mxu2 %vm2230_vm3, %v1371_v15  ;;  %3079 = vmatpush.msk.msra.mxu1 %vm2230_vm3, %v2305_v13 }
 0x66b   :  { %2335 = vmatpush.msra.mxu1 %v2304_v35  ;;  %v2358_v35 = vld [vmem:[%s4834_s11 + $0x10] sm:$0xff] }
 0x66d   :  { %2336 = vmatpush.msra.mxu1 %v2303_v31  ;;  %v2357_v31 = vld [vmem:[%s4834_s11 + $0x8] sm:$0xff] }
 0x66f   :  { %2337 = vmatpush.msra.mxu1 %v2302_v36 }
 0x670   :  { %3073 = vmatmul.msk.f32.gmra.mxu1 %vm2169_vm2, %v4193_v63  ;;  %v2289_v63 = vld [vmem:[%s4832_s9 + $0x78] sm:$0xff] }
 0x671   :  { %2314 = vmatpush.msrb.mxu3 %v2289_v63  ;;  %2338 = vmatpush.msra.mxu1 %v2301_v10  ;;  %v2510_v63 = vld [vmem:[%s4894_s1] sm:$0x1]  ;;  %s3299_s1 = smov 96  }
 0x673   :  { %2339 = vmatpush.msra.mxu1 %v2300_v9 }
 0x675   :  { %2340 = vmatpush.msra.mxu1 %v2299_v60 }
 0x677   :  { %2341 = vmatpush.msra.mxu1 %v2298_v14  ;;  %v3082_v14 = vld [vmem:[%s4834_s11 + $0x20] sm:$0xff] }
 0x678   :  { %3074 = vmatmul.msk.f32.gmra.mxu1 %vm2169_vm2, %v4199_v62  ;;  %v2288_v62 = vld [vmem:[%s4832_s9 + $0x70] sm:$0xff] }
 0x679   :  { %2315 = vmatpush.msrb.mxu3 %v2288_v62  ;;  %2342 = vmatpush.msra.mxu1 %v2297_v32 }
 0x67b   :  { %2316 = vmatpush.msrb.mxu3 %v2287_v24  ;;  %2343 = vmatpush.msra.mxu1 %v2296_v57  ;;  %v2356_v24 = vld [vmem:[%s4834_s11] sm:$0xff] }
 0x67d   :  { %2317 = vmatpush.msrb.mxu3 %v2286_v55  ;;  %2344 = vmatpush.msra.mxu1 %v2295_v26 }
 0x67f   :  { %2318 = vmatpush.msrb.mxu3 %v2285_v40  ;;  %2345 = vmatpush.msra.mxu1 %v2294_v19 }
 0x681   :  { %2319 = vmatpush.msrb.mxu3 %v2284_v30  ;;  %2346 = vmatpush.msra.mxu1 %v2293_v43 }
 0x683   :  { %2320 = vmatpush.msrb.mxu3 %v2283_v17  ;;  %2347 = vmatpush.msra.mxu1 %v2292_v41 }
 0x685   :  { %2321 = vmatpush.msrb.mxu3 %v2282_v7  ;;  %2348 = vmatpush.msra.mxu1 %v2291_v42 }
 0x687   :  { %2322 = vmatpush.msrb.mxu3 %v2281_v38  ;;  %2349 = vmatpush.msra.mxu1 %v2290_v8 }
 0x689   :  { %2323 = vmatpush.msrb.mxu3 %v2280_v2  ;;  %v3081_v2 = vld [vmem:[%s4834_s11 + $0x18] sm:$0xff] }
 0x68b   :  { %2324 = vmatpush.msrb.mxu3 %v2279_v39 }
 0x68d   :  { %2325 = vmatpush.msrb.mxu3 %v2278_v61  ;;  %v3083_v61 = vld [vmem:[%s4834_s11 + $0x28] sm:$0xff] }
 0x68f   :  { %2326 = vmatpush.msrb.mxu3 %v2277_v51 }
 0x691   :  { %2327 = vmatpush.msrb.mxu3 %v2276_v59 }
 0x693   :  { %2328 = vmatpush.msrb.mxu3 %v2275_v52 }
 0x695   :  { %2329 = vmatpush.msrb.mxu3 %v2274_v49  ;;  %v3085_v49 = vld [vmem:[%s4834_s11 + $0x38] sm:$0xff] }
 0x696   :  { %2330 = vmatmul.f32.vlgmr.msrb.gmra.mxu3 %v2263_v21 }
 0x697   :  { %2479 = vmatpush.msra.mxu3 %v2465_v20 }
 0x699   :  { %2480 = vmatpush.msra.mxu3 %v2464_v16 }
 0x69b   :  { %2481 = vmatpush.msra.mxu3 %v2463_v27 }
 0x69d   :  { %2482 = vmatpush.msra.mxu3 %v2462_v50 }
 0x69f   :  { %2483 = vmatpush.msra.mxu3 %v2461_v34 }
 0x6a1   :  { %2484 = vmatpush.msra.mxu3 %v2460_v1 }
 0x6c0   :  { %v2270_v46 = vpop.permute.xlu1 %2269 }
 0x6c1   :  { %v2273_v33 = vsel %vm2272_vm5, %v2264_v48, %v2270_v46  ;;  %v3086_v48 = vld [vmem:[%s4834_s11 + $0x40] sm:$0xff]  ;;  %v3084_v46 = vld [vmem:[%s4834_s11 + $0x30] sm:$0xff]  ;;  %s2649_s11 = sshll.u32 %s4839_s16, 4  ;;  %s3308_s16 = smov [#allocation9]   ;;  %s2650_s11 = int_to_ptr.hbm [resolvable:$true] %s2649_s11 }
 0x6c2   :  { %3080 = vmatmul.msk.f32.vlgmr.msra.gmra.mxu1 %vm2307_vm6, %v2273_v33  ;;  %s2691_s3 = sshll.u32 %s3308_s16, 4  ;;  %s2692_s3 = int_to_ptr.vmem [resolvable:$true] %s2691_s3 }
 0x6e5   :  { %v2196_v47 = vpop.f32.mrf.mxu1 }
 0x6e6   :  { %2208 = vrot.lane.b32.xlu2 %v2196_v47, %s3290_s26 }
 0x6ed   :  { %v4595_v12 = vpop.f32.mrf.mxu1 }
 0x6ee   :  { %2210 = vrot.lane.b32.xlu0 %v4595_v12, %s3290_s26  ;;  %2455 = vrot.lane.b32.xlu2 %v3153_v25, %s3295_s8 }
 0x6f5   :  { %v4599_v37 = vpop.f32.mrf.mxu1 }
 0x6f6   :  { %2212 = vrot.lane.b32.xlu1 %v4599_v37, %s3290_s26 }
 0x719   :  { %v2331_v11 = vpop.f32.mrf.mxu3 }
 0x71a   :  { %v2332_v5 = vadd.f32 %v2331_v11, %v2306_v4 }
 0x73f   :  { %v2351_v23 = vpop.f32.mrf.mxu1 }
 0x740   :  { %v2209_v0 = vpop.permute.xlu2 %2208  ;;  %v2352_v3 = vadd.f32 %v2351_v23, %v2332_v5 }
 0x741   :  { %v2217_v44 = vmax.f32 %v2196_v47, %v2209_v0 }
 0x742   :  { %v2354_v18 = vmax.f32 %v2352_v3, 0.0 }
 0x743   :  { %3076 = vmatmul.msk.f32.vlgmr.msra.gmra.mxu2 %vm2220_vm4, %v2217_v44 }
 0x748   :  { %v2456_v56 = vpop.permute.xlu2 %2455 }
 0x749   :  { %v2459_v47 = vsel %vm2458_vm7, %v2354_v18, %v2456_v56  ;;  %v2355_v56 = vld [vmem:[%s4836_s13] sm:$0x1] }
 0x74a   :  { %3087 = vmatmul.msk.f32.vlgmr.msra.gmra.mxu3 %vm1511_vm0, %v2459_v47  ;;  %vm2571_vm0 = vcmask 65536  }
 0x760   :  { %v2211_v28 = vpop.permute.xlu0 %2210 }
 0x761   :  { %v2218_v53 = vmax.f32 %v4595_v12, %v2211_v28  ;;  %v3297_v12 = vmov 2  }
 0x763   :  { %3077 = vmatmul.msk.f32.gmra.mxu2 %vm2220_vm4, %v2218_v53 }
 0x768   :  { %v2213_v58 = vpop.permute.xlu1 %2212 }
 0x769   :  { %v2219_v29 = vmax.f32 %v4599_v37, %v2213_v58 }
 0x76b   :  { %3078 = vmatmul.msk.f32.gmra.mxu2 %vm2220_vm4, %v2219_v29 }
 0x7c6   :  { %v2251_v22 = vpop.f32.mrf.mxu2 }
 0x7c7   :  { %2361 = vperm.xlu0 %3113, %v2251_v22  }
 0x7cf   :  { %3146 = vset.pattern.permute.xlu0 %v3296_v6 }
 0x7d0   :  { %2395 = vperm.xlu0 %3146, %v2251_v22  }
 0x7d8   :  { %3151 = vset.pattern.permute.xlu0 %v3297_v12 }
 0x7e6   :  { %v2254_v37 = vpop.f32.mrf.mxu2 }
 0x7e7   :  { %2366 = vperm.xlu1 %3114, %v2254_v37  }
 0x7ee   :  { %v2257_v15 = vpop.f32.mrf.mxu2 }
 0x7ef   :  { %3147 = vset.pattern.permute.xlu1 %v3296_v6  ;;  %2434 = vperm.xlu0 %3151, %v2257_v15  }
 0x7f0   :  { %2371 = vperm.xlu2 %3115, %v2257_v15   ;;  %2399 = vperm.xlu1 %3147, %v2254_v37  }
 0x7f8   :  { %3149 = vset.pattern.permute.xlu2 %v3296_v6  ;;  %3148 = vset.pattern.permute.xlu1 %v3297_v12 }
 0x7f9   :  { %2403 = vperm.xlu2 %3149, %v2257_v15   ;;  %2426 = vperm.xlu1 %3148, %v2251_v22  }
 0x801   :  { %3150 = vset.pattern.permute.xlu2 %v3297_v12 }
 0x802   :  { %2430 = vperm.xlu2 %3150, %v2254_v37  }
 0x80a   :  { %2512 = vrot.lane.b32.xlu2 %v2510_v63, %s3298_s6 }
 0x839   :  { %v2362_v13 = vpop.permute.xlu0 %2361 }
 0x83a   :  { %v2374_v55 = vmul.f32 %v2362_v13, %v2356_v24  ;;  %v2486_v13 = vpop.f32.mrf.mxu3 }
 0x83c   :  { %v2378_v7 = vsel %vm2377_vm8, %v2374_v55, 0.0 }
 0x842   :  { %v2396_v9 = vpop.permute.xlu0 %2395 }
 0x843   :  { %v2406_v51 = vmul.f32 %v3081_v2, %v2396_v9 }
 0x845   :  { %v2409_v59 = vsel %vm2377_vm8, %v2406_v51, 0.0 }
 0x84a   :  { %v2372_v62 = vpop.permute.xlu2 %2371 }
 0x84b   :  { %v2376_v30 = vmul.f32 %v2372_v62, %v2358_v35 }
 0x84d   :  { %v2381_v39 = vsel %vm2377_vm8, %v2376_v30, 0.0 }
 0x853   :  { %v2404_v38 = vpop.permute.xlu2 %2403 }
 0x854   :  { %v2408_v0 = vmul.f32 %v3083_v61, %v2404_v38 }
 0x856   :  { %v2412_v52 = vsel %vm2377_vm8, %v2408_v0, 0.0 }
 0x859   :  { %v2367_v40 = vpop.permute.xlu1 %2366 }
 0x85a   :  { %v2375_v17 = vmul.f32 %v2367_v40, %v2357_v31 }
 0x85c   :  { %v2379_v36 = vsel %vm2377_vm8, %v2375_v17, 0.0  ;;  %v2431_v19 = vpop.permute.xlu2 %2430 }
 0x85d   :  { %v2380_v10 = vadd.f32 %v2379_v36, %v2378_v7  ;;  %v2438_v42 = vmul.f32 %v3085_v49, %v2431_v19  ;;  %v2547_v19 = vld [vmem:[%s4838_s15] sm:$0x1]  ;;  %s3303_s15 = smov [#allocation7]  }
 0x85e   :  { %s2680_s7 = sshll.u32 %s3303_s15, 4  ;;  %s2681_s7 = int_to_ptr.vmem [resolvable:$true] %s2680_s7 }
 0x85f   :  { %v2382_v60 = vadd.f32 %v2381_v39, %v2380_v10  ;;  %v2441_v29 = vsel %vm2377_vm8, %v2438_v42, 0.0 }
 0x861   :  { %v2383_v54 = vrot.slane %v2382_v60, 4  ;;  %v2435_v41 = vpop.permute.xlu0 %2434 }
 0x862   :  { %v2400_v32 = vpop.permute.xlu1 %2399  ;;  %v2439_v28 = vmul.f32 %v3086_v48, %v2435_v41 }
 0x863   :  { %v2407_v44 = vmul.f32 %v3082_v14, %v2400_v32  ;;  %v2384_v26 = vadd.f32 %v2383_v54, %v2382_v60 }
 0x864   :  { %v2443_v11 = vsel %vm2377_vm8, %v2439_v28, 0.0  ;;  %v2513_v51 = vpop.permute.xlu2 %2512 }
 0x865   :  { %v2410_v57 = vsel %vm2377_vm8, %v2407_v44, 0.0  ;;  %v2385_v25 = vrot.slane %v2384_v26, 2 }
 0x866   :  { %v2411_v21 = vadd.f32 %v2410_v57, %v2409_v59  ;;  %v2546_v59 = vld [vmem:[%s4837_s14 + $0x8] sm:$0xff]  ;;  %v2545_v57 = vld [vmem:[%s4837_s14] sm:$0xff]  ;;  %s3301_s14 = smov 12  }
 0x867   :  { %v2386_v16 = vadd.f32 %v2385_v25, %v2384_v26  ;;  %2565 = vmatpush.msrb.mxu3 %v2546_v59 }
 0x868   :  { %v2413_v43 = vadd.f32 %v2412_v52, %v2411_v21 }
 0x869   :  { %v2387_v50 = vrot.slane %v2386_v16, 1  ;;  %2566 = vmatpush.msrb.mxu3 %v2545_v57 }
 0x86a   :  { %v2414_v8 = vrot.slane %v2413_v43, 4 }
 0x86b   :  { %v2427_v33 = vpop.permute.xlu1 %2426  ;;  %v2388_v6 = vadd.f32 %v2387_v50, %v2386_v16 }
 0x86c   :  { %v2415_v53 = vadd.f32 %v2414_v8, %v2413_v43  ;;  %v2437_v58 = vmul.f32 %v3084_v46, %v2427_v33 }
 0x86d   :  { %v2389_v12 = vadd.f32 %v2388_v6, %v2355_v56 }
 0x86e   :  { %v2416_v22 = vrot.slane %v2415_v53, 2  ;;  %v2440_v20 = vsel %vm2377_vm8, %v2437_v58, 0.0  ;;  %vm2592_vm8 = vcmask 0  }
 0x86f   :  { %v2442_v4 = vadd.f32 %v2441_v29, %v2440_v20 }
 0x870   :  { %v2417_v5 = vadd.f32 %v2416_v22, %v2415_v53 }
 0x871   :  { %v2444_v27 = vadd.f32 %v2443_v11, %v2442_v4 }
 0x872   :  { %v2418_v34 = vrot.slane %v2417_v5, 1 }
 0x873   :  { %v2445_v23 = vrot.slane %v2444_v27, 4 }
 0x874   :  { %v2419_v1 = vadd.f32 %v2418_v34, %v2417_v5 }
 0x875   :  { %v2446_v3 = vadd.f32 %v2445_v23, %v2444_v27 }
 0x876   :  { %v2420_v15 = vadd.f32 %v2419_v1, %v2389_v12 }
 0x877   :  { %v2447_v18 = vrot.slane %v2446_v3, 2 }
 0x879   :  { %v2448_v47 = vadd.f32 %v2447_v18, %v2446_v3 }
 0x87b   :  { %v2449_v37 = vrot.slane %v2448_v47, 1 }
 0x87d   :  { %v2450_v63 = vadd.f32 %v2449_v37, %v2448_v47 }
 0x87f   :  { %v2451_v62 = vadd.f32 %v2450_v63, %v2420_v15 }
 0x881   :  { %v2489_v24 = vadd.f32 %v2486_v13, %v2451_v62 }
 0x883   :  { %3154 = vtanh.f32 %v2489_v24  ;;  %v3088_v31 = vmul.f32 -1.442695, %v2489_v24 }
 0x885   :  { %3156 = vpow2.f32 %v3088_v31 }
 0x889   :  { %v3155_v35 = vpop.eup %3154 }
 0x88a   :  { %2517 = vrot.lane.b32.xlu1 %v3155_v35, %s3299_s1 }
 0x88b   :  { %v3157_v55 = vpop.eup %3156 }
 0x88c   :  { %v2493_v40 = vadd.f32 1.0, %v3157_v55 }
 0x88e   :  { %3158 = vrcp.f32 %v2493_v40  ;;  %v2505_v10 = vand.u32 2147483648, %v2493_v40  ;;  %vm2499_vm10 = vweird.f32 %v2493_v40  ;;  %v2503_v2 = vand.u32 2147483647, %v2493_v40 }
 0x890   :  { %v2506_v39 = vor.u32 1.1754944e-38, %v2505_v10  ;;  %vm2504_vm12 = vcmp.eq.f32.partialorder %v2503_v2, 8.507059e+37 }
 0x894   :  { %v3159_v30 = vpop.eup %3158 }
 0x895   :  { %v2495_v17 = vmul.f32 %v3159_v30, %v2493_v40  ;;  %vm2500_vm9 = vweird.f32 %v3159_v30 }
 0x896   :  { %vm2501_vm11 = vmor %vm2499_vm10, %vm2500_vm9 }
 0x897   :  { %v2496_v7 = vsub.f32 1.0, %v2495_v17 }
 0x899   :  { %v2497_v36 = vmul.f32 %v3159_v30, %v2496_v7 }
 0x89b   :  { %v2498_v38 = vadd.f32 %v3159_v30, %v2497_v36 }
 0x89d   :  { %v2502_v9 = vsel %vm2501_vm11, %v3159_v30, %v2498_v38 }
 0x89e   :  { %v2507_v60 = vsel %vm2504_vm12, %v2506_v39, %v2502_v9 }
 0x89f   :  { %v2515_v32 = vmul.f32 %v2513_v51, %v2507_v60 }
 0x8fc   :  { %v2518_v61 = vpop.permute.xlu1 %2517 }
 0x8fd   :  { %v2520_v14 = vmul.f32 %v2518_v61, %v2507_v60 }
 0x8ff   :  { %2522 = vrot.lane.b32.xlu1 %v2520_v14, %s3298_s6  ;;  %s3300_s6 = smov 80  }
 0x971   :  { %v2523_v0 = vpop.permute.xlu1 %2522 }
 0x972   :  { %v4780_v54 = vadd.f32 %v2523_v0, %v2515_v32 }
 0x974   :  { %3160 = vtanh.f32 %v4780_v54  ;;  %v2540_v13 = vperm.slane %v4780_v54, 0 }
 0x97a   :  { %v3161_v44 = vpop.eup %3160 }
 0x97b   :  { %2528 = vrot.lane.b32.xlu2 %v3161_v44, %s3295_s8  ;;  %s2693_s8 = sshll.u32 %s4843_s20, 4  ;;  %s2694_s8 = int_to_ptr.hbm [resolvable:$true] %s2693_s8 }
 0x9d5   :  { %v2529_v21 = vpop.permute.xlu2 %2528 }
 0x9d6   :  { %v2531_v52 = vmul.f32 %v2529_v21, %v2507_v60 }
 0x9d8   :  { %v2533_v26 = vperm.slane %v2531_v52, 0 }
 0x9da   :  { %2534 = vrot.lane.b32.xlu0 %v2533_v26, %s3300_s6 }
 0xa4c   :  { %v2535_v49 = vpop.permute.xlu0 %2534 }
 0xa4d   :  { %3089 = vmatmul.msk.f32.vlgmr.msrb.gmra.mxu3 %vm2548_vm13, %v2535_v49  ;;  %2538 = vst.msk [vmem:[#allocation7] sm:$0x1] %vm2537_vm14, %v2535_v49 }
 0xa4e   :  { %2685 = dma.vmem_to_hbm [thread:$0]  %s2681_s7, 16, %s2683_s25, [#allocation8]  }
 0xad0   :  { %v2568_v43 = vpop.f32.mrf.mxu3 }
 0xad1   :  { %v2569_v48 = vadd.f32 %v2568_v43, %v2547_v19 }
 0xad3   :  { %v2619_v41 = vsel %vm2618_vm15, %v2569_v48, -inf  ;;  %v2595_v46 = vsel %vm2594_vm1, %v2569_v48, -inf  ;;  %v2572_v42 = vsel %vm2571_vm0, %v2569_v48, -inf }
 0xad4   :  { %2620 = vmax.xlane.f32.xlu0 %v2619_v41  ;;  %2596 = vmax.xlane.f32.xlu1 %v2595_v46 }
 0xad5   :  { %2573 = vmax.xlane.f32.xlu2 %v2572_v42 }
 0xaed   :  { %2623 = vrot.lane.b32.xlu1 %v4179_v45, %s3301_s14  ;;  %2599 = vrot.lane.b32.xlu2 %v4179_v45, %s3302_s5 }
 0xb47   :  { %v2597_v25 = vpop.xlane.xlu1 %2596  ;;  %v2621_v4 = vpop.xlane.xlu0 %2620 }
 0xb48   :  { %v2574_v8 = vpop.xlane.xlu2 %2573  ;;  %vm2598_vm2 = vcmp.eq.f32.partialorder %v2569_v48, %v2597_v25  ;;  %vm2622_vm4 = vcmp.eq.f32.partialorder %v2569_v48, %v2621_v4 }
 0xb49   :  { %vm2575_vm3 = vcmp.eq.f32.partialorder %v2569_v48, %v2574_v8 }
 0xb4a   :  { %v2576_v58 = vsel %vm2575_vm3, %v4179_v45, 9 }
 0xb4b   :  { %v2577_v20 = vsel %vm2571_vm0, %v2576_v58, 2147483647 }
 0xb4c   :  { %v2579_v16 = vshra.s32 %v2577_v20, 16  ;;  %v2578_v56 = vand.u32 65535, %v2577_v20 }
 0xb4e   :  { %v2581_v11 = vcvt.s32.f32 %v2579_v16  ;;  %v2580_v47 = vcvt.s32.f32 %v2578_v56 }
 0xb50   :  { %v2600_v33 = vpop.permute.xlu2 %2599 }
 0xb51   :  { %v2601_v28 = vsel %vm2598_vm2, %v2600_v33, 3 }
 0xb52   :  { %v2602_v53 = vsel %vm2594_vm1, %v2601_v28, 2147483647 }
 0xb53   :  { %v2604_v29 = vshra.s32 %v2602_v53, 16  ;;  %v2603_v34 = vand.u32 65535, %v2602_v53 }
 0xb55   :  { %v2606_v22 = vcvt.s32.f32 %v2604_v29  ;;  %v2605_v45 = vcvt.s32.f32 %v2603_v34 }
 0xb57   :  { %2607 = vmin.xlane.f32.xlu0 %v2606_v22 }
 0xb5f   :  { %2582 = vmin.xlane.f32.xlu0 %v2581_v11  ;;  %v2624_v27 = vpop.permute.xlu1 %2623 }
 0xb60   :  { %v2625_v5 = vsel %vm2622_vm4, %v2624_v27, 10 }
 0xb61   :  { %v2626_v23 = vsel %vm2618_vm15, %v2625_v5, 2147483647 }
 0xb62   :  { %v2628_v50 = vshra.s32 %v2626_v23, 16  ;;  %v2627_v37 = vand.u32 65535, %v2626_v23 }
 0xb64   :  { %v2630_v3 = vcvt.s32.f32 %v2628_v50  ;;  %v2629_v63 = vcvt.s32.f32 %v2627_v37 }
 0xb66   :  { %2631 = vmin.xlane.f32.xlu2 %v2630_v3 }
 0xbca   :  { %v2608_v6 = vpop.xlane.xlu0 %2607 }
 0xbcb   :  { %vm2609_vm5 = vcmp.eq.f32.partialorder %v2606_v22, %v2608_v6  ;;  %v2614_v24 = vcvt.f32.s32 %v2608_v6 }
 0xbcc   :  { %v2610_v18 = vsel %vm2609_vm5, %v2605_v45, inf }
 0xbcd   :  { %2611 = vmin.xlane.f32.xlu0 %v2610_v18  ;;  %v2615_v31 = vshll.u32 %v2614_v24, 16 }
 0xbd2   :  { %v2583_v1 = vpop.xlane.xlu0 %2582 }
 0xbd3   :  { %vm2584_vm6 = vcmp.eq.f32.partialorder %v2581_v11, %v2583_v1  ;;  %v2589_v30 = vcvt.f32.s32 %v2583_v1 }
 0xbd4   :  { %v2585_v12 = vsel %vm2584_vm6, %v2580_v47, inf }
 0xbd5   :  { %2586 = vmin.xlane.f32.xlu1 %v2585_v12  ;;  %v2590_v7 = vshll.u32 %v2589_v30, 16 }
 0xbd9   :  { %v2632_v15 = vpop.xlane.xlu2 %2631 }
 0xbda   :  { %vm2633_vm7 = vcmp.eq.f32.partialorder %v2630_v3, %v2632_v15  ;;  %v2638_v10 = vcvt.f32.s32 %v2632_v15 }
 0xbdb   :  { %v2634_v62 = vsel %vm2633_vm7, %v2629_v63, inf }
 0xbdc   :  { %2635 = vmin.xlane.f32.xlu0 %v2634_v62  ;;  %v2639_v9 = vshll.u32 %v2638_v10, 16 }
 0xbf0   :  { %2541 = vrot.lane.b32.xlu0 %v2540_v13, %s3304_s27 }
 0xc40   :  { %v2612_v35 = vpop.xlane.xlu0 %2611 }
 0xc41   :  { %v2613_v55 = vcvt.f32.s32 %v2612_v35 }
 0xc43   :  { %v2616_v40 = vadd.s32 %v2615_v31, %v2613_v55 }
 0xc45   :  { %2617 = vst.msk [vmem:[#allocation4] sm:$0x1] %vm2592_vm8, %v2616_v40 }
 0xc46   :  { %2663 = dma.vmem_to_hbm [thread:$0]  %s2659_s4, 16, %s2661_s0, [#allocation5]  }
 0xc48   :  { %v2587_v17 = vpop.xlane.xlu1 %2586 }
 0xc49   :  { %v2588_v36 = vcvt.f32.s32 %v2587_v17 }
 0xc4b   :  { %v2591_v38 = vadd.s32 %v2590_v7, %v2588_v36 }
 0xc4d   :  { %2593 = vst.msk [vmem:[#allocation2] sm:$0x1] %vm2592_vm8, %v2591_v38 }
 0xc4e   :  { %2652 = dma.vmem_to_hbm [thread:$0]  %s2648_s10, 16, %s2650_s11, [#allocation3]  }
 0xc4f   :  { %v2636_v2 = vpop.xlane.xlu0 %2635 }
 0xc50   :  { %v2637_v39 = vcvt.f32.s32 %v2636_v2 }
 0xc52   :  { %v2640_v60 = vadd.s32 %v2639_v9, %v2637_v39 }
 0xc54   :  { %2641 = vst.msk [vmem:[#allocation6] sm:$0x1] %vm2592_vm8, %v2640_v60 }
 0xc55   :  { %2674 = dma.vmem_to_hbm [thread:$0]  %s2670_s21, 16, %s2672_s22, [#allocation5]  }
 0xc62   :  { %v2542_v61 = vpop.permute.xlu0 %2541 }
 0xc63   :  { %2544 = vst.msk [vmem:[#allocation9] sm:$0x1] %vm2537_vm14, %v2542_v61 }
 0xc64   :  { %2696 = dma.vmem_to_hbm [thread:$0]  %s2692_s3, 16, %s2694_s8, [#allocation8]  }
 0xc65   :  { %3282 = dma.done.wait [#allocation3], 16  }
 0xc66   :  { %3283 = vsyncadd [#allocation3], 4294967280 }
 0xc67   :  { %3284 = dma.done.wait [#allocation5], 32  }
 0xc68   :  { %3285 = vsyncadd [#allocation5], 4294967264 }
 0xc69   :  { %3286 = dma.done.wait [#allocation8], 32  }
 0xc6a   :  { %3287 = vsyncadd [#allocation8], 4294967264 }
 0xc6b   :  { %2717 = vsyncpa [#allocation3], 1 }
 0xc6c   :  { %2718 = vsyncpa [#allocation5], 1 }
 0xc6d   :  { %2719 = vsyncpa [#allocation8], 1 }

</bundles_post_ra>
